<compile_context>
chip_gen: v5e
topology: v5e:2x2
jax: 0.10.0
libtpu: 0.0.40
codegen_flags: <defaults>
</compile_context>

<pallas_src>
import jax
import jax.numpy as jnp
import numpy as np
from jax import lax
from jax.experimental import pallas as pl
from jax.experimental.pallas import tpu as pltpu

# ---- norse LSNNParameters defaults + ExpFilter constants ----
DT = 1e-3
TAU_SYN_INV = 1.0 / 5e-3       # 200.0
TAU_MEM_INV = 1.0 / 1e-2       # 100.0
TAU_ADAPT_INV = 1.0 / 700.0
V_LEAK = 0.0
V_TH = 1.0
V_RESET = 0.0
BETA = 1.8
TAU_FILTER_INV = 223.1435511314  # = 1000 * ln(1.25)


def _round_up(x, m):
    return (x + m - 1) // m * m


def _tpu_vmem_budget_and_cores():
    """Generation-aware VMEM budget (bytes) and TensorCores-per-chip estimate."""
    vmem_bytes = 128 * 1024 * 1024
    cores = 1
    try:
        kind = (jax.devices()[0].device_kind or "").lower()
    except Exception:
        kind = ""
    if "v7" in kind:
        vmem_bytes = 64 * 1024 * 1024
        cores = 2
    try:
        info = pltpu.get_tpu_info()
        cap = getattr(info, "vmem_capacity_bytes", None)
        if cap:
            vmem_bytes = int(cap)
    except Exception:
        pass
    budget = min(int(vmem_bytes * 0.75), 100 * 1024 * 1024)
    return budget, cores


def _pick_time_chunk(T, BpB, F, Hp, Op, budget_bytes):
    """Largest time chunk that fits the VMEM budget; prefer a divisor of T."""
    # fixed VMEM: single-buffered weights + state outputs (2 bufs) + filter state
    fixed = 4 * (F * Hp + Hp * Hp + Hp * Op + Op + 8 * BpB * Hp + BpB * Op)
    # per-timestep VMEM: x/y pipeline blocks (2 bufs each) + xw_s + zh_s + lin_s
    per_t = 4 * BpB * (2 * F + 2 * Hp + 3 * Op)
    avail = budget_bytes - fixed - (2 << 20)           # headroom for Mosaic internals
    tc = int(max(8, min(256, avail // per_t))) if per_t > 0 else 256
    tc = max(1, min(tc, T))
    # prefer a divisor of T (removes the per-step tail-masking selects entirely)
    for d in range(tc, max(0, tc // 2), -1):
        if T % d == 0:
            return d
    return tc


def _make_snn_alif_kernel(T, TC, BpB, needs_mask, unroll):
    """Kernel closure over the static time/chunk/batch-block configuration."""

    def kernel(x_ref, w_in_hbm, w_rec_hbm, w_out_hbm, b_out_hbm,       # inputs
               y_ref, z_ref, v_ref, i_ref, b_ref,                      # outputs
               w_in_s, w_rec_s, w_out_s, b_out_s,                      # weights (1-buffered VMEM)
               xw_s, zh_s, lin_s, f_s, dma_sem):                       # chunk scratch
        c = pl.program_id(1)   # time-chunk index (sequential / "arbitrary" axis)

        # ---- once per batch block: load weights (single-buffered) + init state ----
        @pl.when(c == 0)
        def _init():
            copies = (
                pltpu.make_async_copy(w_in_hbm, w_in_s, dma_sem.at[0]),
                pltpu.make_async_copy(w_rec_hbm, w_rec_s, dma_sem.at[1]),
                pltpu.make_async_copy(w_out_hbm, w_out_s, dma_sem.at[2]),
                pltpu.make_async_copy(b_out_hbm, b_out_s, dma_sem.at[3]),
            )
            for cp in copies:
                cp.start()
            # neuron + filter state (neuron state lives directly in the output refs)
            z_ref[...] = jnp.zeros_like(z_ref)
            v_ref[...] = jnp.full_like(v_ref, V_LEAK)
            i_ref[...] = jnp.zeros_like(i_ref)
            b_ref[...] = jnp.full_like(b_ref, V_TH)
            f_s[...] = jnp.zeros_like(f_s)
            for cp in copies:
                cp.wait()

        # ---- hoisted input projection: one MXU matmul per chunk (off serial path) ----
        # x_ref: (TC*BpB, F); rows [s*BpB, (s+1)*BpB) belong to timestep s.
        xw_s[...] = jnp.dot(x_ref[...], w_in_s[...],
                            preferred_element_type=jnp.float32)

        # ---- serial recurrence over the chunk (only z @ W_rec^T is sequential) ----
        def step(s, carry):
            z, v, i, b = carry
            row0 = pl.multiple_of(s * BpB, 8)

            v_dec = v + DT * TAU_MEM_INV * ((V_LEAK - v) + i)
            i_dec = i - DT * TAU_SYN_INV * i
            b_dec = b + DT * TAU_ADAPT_INV * (V_TH - b)

            z_new = (v_dec - b_dec > 0.0).astype(jnp.float32)
            v_new = (1.0 - z_new) * v_dec + z_new * V_RESET
            # TODO(synk): a weight-stationary MXU path (matmul_push_rhs) and/or a bf16
            # hi+residual split of W_rec^T would cut per-step MXU passes on this serial
            # dot, but both need heaviside-parity validation vs the f32 reference first.
            i_new = (i_dec
                     + xw_s[pl.ds(row0, BpB), :]
                     + jnp.dot(z, w_rec_s[...],
                               preferred_element_type=jnp.float32))
            b_new = b_dec + z_new * (TAU_ADAPT_INV * BETA)

            if needs_mask:  # only emitted when TC does not divide T (rare: wrapper prefers divisors)
                valid = (c * TC + s) < T
                z_new = jnp.where(valid, z_new, z)
                v_new = jnp.where(valid, v_new, v)
                i_new = jnp.where(valid, i_new, i)
                b_new = jnp.where(valid, b_new, b)

            zh_s[pl.ds(row0, BpB), :] = z_new     # stage spikes for deferred readout
            return z_new, v_new, i_new, b_new

        zc, vc, ic, bc = lax.fori_loop(
            0, TC, step, (z_ref[...], v_ref[...], i_ref[...], b_ref[...]),
            unroll=unroll)
        z_ref[...] = zc
        v_ref[...] = vc
        i_ref[...] = ic
        b_ref[...] = bc

        # ---- deferred readout: one MXU matmul per chunk + bias broadcast once ----
        lin_s[...] = (jnp.dot(zh_s[...], w_out_s[...],
                              preferred_element_type=jnp.float32)
                      + b_out_s[...])

        # ---- ExpFilter: elementwise Euler low-pass over the chunk results ----
        # TODO(synk): cgtasknet's ExpFilter first-step convention (out0 = linear(z0))
        # may differ; here the filter state starts at 0 (matches the validated reference).
        alpha = DT * TAU_FILTER_INV

        def filt(s, f):
            row0 = pl.multiple_of(s * BpB, 8)
            f_new = f + alpha * (lin_s[pl.ds(row0, BpB), :] - f)
            y_ref[s] = f_new          # lane-dense store into the VMEM output block
            return f_new

        f_s[...] = lax.fori_loop(0, TC, filt, f_s[...], unroll=unroll)

    return kernel


def snn_alif_forward(x, w_in, w_rec, w_out, b_out, *,
                     time_chunk=None, batch_blocks=None):
    """x: (T, B, F) float32, time-major. Weights in PyTorch (out, in) layout.
    Returns (outputs (T,B,O), (z, v, i, b) final state, each (B,H))."""
    x = jnp.asarray(x, jnp.float32)
    T, B, F = x.shape
    H = w_in.shape[0]
    O = w_out.shape[0]

    budget, cores = _tpu_vmem_budget_and_cores()

    if batch_blocks is None:
        batch_blocks = 2 if (cores >= 2 and B >= 16) else 1   # 2nd TC only on v7x
    nb = max(1, int(batch_blocks))

    Bp = _round_up(B, 8 * nb)       # sublane-pad batch (per batch block)
    BpB = Bp // nb
    Hp = _round_up(H, 128)          # lane-pad hidden
    Op = _round_up(O, 128)          # lane-pad output (lane-dense y stores)

    if time_chunk is None:
        TC = _pick_time_chunk(T, BpB, F, Hp, Op, budget)
    else:
        TC = max(1, min(int(time_chunk), T))
    T_pad = _round_up(T, TC)
    n_chunks = T_pad // TC
    needs_mask = (T_pad != T)
    unroll = True if TC <= 32 else 8

    # ---- glue: zero-pad + reorganize so the kernel does plain (M,K)@(K,N) matmuls ----
    # x: (T,B,F) -> (nb, n_chunks, TC*BpB, F); rows [s*BpB,(s+1)*BpB) = timestep s.
    x_p = jnp.zeros((T_pad, Bp, F), jnp.float32).at[:T, :B, :].set(x)
    x_p = (x_p.reshape(T_pad, nb, BpB, F)
              .transpose(1, 0, 2, 3)
              .reshape(nb, n_chunks, TC * BpB, F))

    w_in_t = jnp.zeros((F, Hp), jnp.float32).at[:, :H].set(
        jnp.asarray(w_in, jnp.float32).T)
    w_rec_t = jnp.zeros((Hp, Hp), jnp.float32).at[:H, :H].set(
        jnp.asarray(w_rec, jnp.float32).T)
    w_out_t = jnp.zeros((Hp, Op), jnp.float32).at[:H, :O].set(
        jnp.asarray(w_out, jnp.float32).T)
    b_out_p = jnp.zeros((1, Op), jnp.float32).at[0, :O].set(
        jnp.asarray(b_out, jnp.float32))

    kernel = _make_snn_alif_kernel(T=T, TC=TC, BpB=BpB,
                                   needs_mask=needs_mask, unroll=unroll)

    out_shapes = (
        jax.ShapeDtypeStruct((nb, T_pad, BpB, Op), jnp.float32),  # filtered readout
        jax.ShapeDtypeStruct((nb, BpB, Hp), jnp.float32),         # z final
        jax.ShapeDtypeStruct((nb, BpB, Hp), jnp.float32),         # v final
        jax.ShapeDtypeStruct((nb, BpB, Hp), jnp.float32),         # i final
        jax.ShapeDtypeStruct((nb, BpB, Hp), jnp.float32),         # b final
    )

    state_spec = pl.BlockSpec((None, BpB, Hp), lambda bb, c: (bb, 0, 0))

    grid_spec = pltpu.PrefetchScalarGridSpec(
        num_scalar_prefetch=0,
        grid=(nb, n_chunks),
        in_specs=[
            pl.BlockSpec((None, None, TC * BpB, F), lambda bb, c: (bb, c, 0, 0)),
            pl.BlockSpec(memory_space=pl.ANY),   # W_in^T  (HBM; DMA'd once, 1 buffer)
            pl.BlockSpec(memory_space=pl.ANY),   # W_rec^T (HBM; DMA'd once, 1 buffer)
            pl.BlockSpec(memory_space=pl.ANY),   # W_out^T (HBM; DMA'd once, 1 buffer)
            pl.BlockSpec(memory_space=pl.ANY),   # bias    (HBM; DMA'd once, 1 buffer)
        ],
        out_specs=[
            pl.BlockSpec((None, TC, BpB, Op), lambda bb, c: (bb, c, 0, 0)),  # y chunk
            state_spec, state_spec, state_spec, state_spec,                 # z/v/i/b
        ],
        scratch_shapes=[
            pltpu.VMEM((F, Hp), jnp.float32),          # W_in^T  resident copy
            pltpu.VMEM((Hp, Hp), jnp.float32),         # W_rec^T resident copy
            pltpu.VMEM((Hp, Op), jnp.float32),         # W_out^T resident copy
            pltpu.VMEM((1, Op), jnp.float32),          # bias    resident copy
            pltpu.VMEM((TC * BpB, Hp), jnp.float32),   # x @ W_in^T for the chunk
            pltpu.VMEM((TC * BpB, Hp), jnp.float32),   # spike history for the chunk
            pltpu.VMEM((TC * BpB, Op), jnp.float32),   # linear readout for the chunk
            pltpu.VMEM((BpB, Op), jnp.float32),        # exp-filter state
            pltpu.SemaphoreType.DMA((4,)),             # weight-load semaphores
        ],
    )

    y_p, zf, vf, if_, bf = pl.pallas_call(
        kernel,
        out_shape=out_shapes,
        grid_spec=grid_spec,
        compiler_params=pltpu.CompilerParams(
            dimension_semantics=("parallel", "arbitrary"),  # batch x time(sequential)
            vmem_limit_bytes=int(budget),
        ),
    )(x_p, w_in_t, w_rec_t, w_out_t, b_out_p)

    y = (y_p.transpose(1, 0, 2, 3).reshape(T_pad, Bp, Op))[:T, :B, :O]

    def unsplit(a):
        return a.reshape(Bp, Hp)[:B, :H]

    return y, (unsplit(zf), unsplit(vf), unsplit(if_), unsplit(bf))


def snn_alif_reference(x, w_in, w_rec, w_out, b_out):
    """Pure-JAX reference (lax.scan) of the same semantics."""
    T, B, F = x.shape
    H = w_in.shape[0]
    O = w_out.shape[0]
    state0 = (jnp.zeros((B, H)), jnp.full((B, H), V_LEAK),
              jnp.zeros((B, H)), jnp.full((B, H), V_TH),
              jnp.zeros((B, O)))

    def step(carry, x_t):
        z, v, i, b, f = carry
        v_dec = v + DT * TAU_MEM_INV * ((V_LEAK - v) + i)
        i_dec = i - DT * TAU_SYN_INV * i
        b_dec = b + DT * TAU_ADAPT_INV * (V_TH - b)
        z_new = (v_dec - b_dec > 0.0).astype(jnp.float32)
        v_new = (1.0 - z_new) * v_dec + z_new * V_RESET
        i_new = i_dec + x_t @ w_in.T + z @ w_rec.T
        b_new = b_dec + z_new * (TAU_ADAPT_INV * BETA)
        lin = z_new @ w_out.T + b_out
        f_new = f + DT * TAU_FILTER_INV * (lin - f)
        return (z_new, v_new, i_new, b_new, f_new), f_new

    (zf, vf, if_, bf, _), ys = jax.lax.scan(step, state0, x)
    return ys, (zf, vf, if_, bf)


if __name__ == "__main__":
    FEATURE, HIDDEN, OUTPUT = 16, 32, 8
    T = 20

    key = jax.random.PRNGKey(0)
    k_x, k_win, k_wrec, k_wout, k_bout, k_x2 = jax.random.split(key, 6)

    # deterministic parameter init (matches norse / torch.nn.Linear init recipes)
    w_in = jax.random.normal(k_win, (HIDDEN, FEATURE), jnp.float32) * np.sqrt(2.0 / HIDDEN)
    w_rec = jax.random.normal(k_wrec, (HIDDEN, HIDDEN), jnp.float32) * np.sqrt(2.0 / HIDDEN)
    lim = 1.0 / np.sqrt(HIDDEN)
    w_out = jax.random.uniform(k_wout, (OUTPUT, HIDDEN), jnp.float32, -lim, lim)
    b_out = jax.random.uniform(k_bout, (OUTPUT,), jnp.float32, -lim, lim)

    x_small = jax.random.normal(k_x, (T, 2, FEATURE), jnp.float32)
    x_big = jax.random.normal(k_x2, (T, 32, FEATURE), jnp.float32)

    configs = [
        (x_small, {}),                                        # auto TC (divisor of T, 1 chunk)
        (x_small, dict(time_chunk=8)),                        # multi-chunk carry + tail mask
        (x_big, dict(time_chunk=5, batch_blocks=2)),          # batch-parallel grid axis path
    ]
    for x_in, kwargs in configs:
        y, (zf, vf, if_, bf) = snn_alif_forward(x_in, w_in, w_rec, w_out, b_out, **kwargs)
        jax.block_until_ready(y)
        y_ref, (zf_r, vf_r, if_r, bf_r) = snn_alif_reference(x_in, w_in, w_rec, w_out, b_out)
        np.testing.assert_allclose(np.asarray(y), np.asarray(y_ref), rtol=1e-5, atol=1e-5)
        np.testing.assert_allclose(np.asarray(zf), np.asarray(zf_r), rtol=1e-5, atol=1e-5)
        np.testing.assert_allclose(np.asarray(vf), np.asarray(vf_r), rtol=1e-5, atol=1e-5)
        np.testing.assert_allclose(np.asarray(if_), np.asarray(if_r), rtol=1e-5, atol=1e-5)
        np.testing.assert_allclose(np.asarray(bf), np.asarray(bf_r), rtol=1e-5, atol=1e-5)

    print("KERNEL_OK")
</pallas_src>

<mosaic_0001>
module attributes {stable_mosaic.version = 11 : i64} {
  func.func @kernel(%arg0: i32, %arg1: i32, %arg2: memref<1x1x160x16xf32, #tpu.memory_space<vmem>>, %arg3: memref<16x128xf32, #tpu.memory_space<any>>, %arg4: memref<128x128xf32, #tpu.memory_space<any>>, %arg5: memref<128x128xf32, #tpu.memory_space<any>>, %arg6: memref<1x128xf32, #tpu.memory_space<any>>, %arg7: memref<1x20x8x128xf32, #tpu.memory_space<vmem>>, %arg8: memref<1x8x128xf32, #tpu.memory_space<vmem>>, %arg9: memref<1x8x128xf32, #tpu.memory_space<vmem>>, %arg10: memref<1x8x128xf32, #tpu.memory_space<vmem>>, %arg11: memref<1x8x128xf32, #tpu.memory_space<vmem>>, %arg12: memref<16x128xf32, #tpu.memory_space<vmem>>, %arg13: memref<128x128xf32, #tpu.memory_space<vmem>>, %arg14: memref<128x128xf32, #tpu.memory_space<vmem>>, %arg15: memref<1x128xf32, #tpu.memory_space<vmem>>, %arg16: memref<160x128xf32, #tpu.memory_space<vmem>>, %arg17: memref<160x128xf32, #tpu.memory_space<vmem>>, %arg18: memref<160x128xf32, #tpu.memory_space<vmem>>, %arg19: memref<8x128xf32, #tpu.memory_space<vmem>>, %arg20: memref<4x!tpu.dma_semaphore, #tpu.memory_space<semaphore_mem>>) attributes {dimension_semantics = [#tpu.dimension_semantics<parallel>, #tpu.dimension_semantics<arbitrary>], iteration_bounds = array<i64: 1, 1>, scalar_prefetch = 0 : i64, scratch_operands = 9 : i64, tpu.core_type = #tpu.core_type<tc>, window_params = [{transform_indices = @transform_0, window_bounds = array<i64: 1, 1, 160, 16>}, {}, {}, {}, {}, {transform_indices = @transform_5, window_bounds = array<i64: 1, 20, 8, 128>}, {transform_indices = @transform_6, window_bounds = array<i64: 1, 8, 128>}, {transform_indices = @transform_7, window_bounds = array<i64: 1, 8, 128>}, {transform_indices = @transform_8, window_bounds = array<i64: 1, 8, 128>}, {transform_indices = @transform_9, window_bounds = array<i64: 1, 8, 128>}]} {
    %c0_i32 = arith.constant 0 : i32
    %0 = arith.cmpi eq, %arg1, %c0_i32 : i32
    %1 = arith.extui %0 : i1 to i32
    %c0_i32_0 = arith.constant 0 : i32
    %2 = arith.cmpi ne, %1, %c0_i32_0 : i32
    scf.if %2 {
      %c0_i32_487 = arith.constant 0 : i32
      %1037 = tpu.memref_slice %arg20[%c0_i32_487] : memref<4x!tpu.dma_semaphore, #tpu.memory_space<semaphore_mem>> -> memref<1x!tpu.dma_semaphore, #tpu.memory_space<semaphore_mem>>
      %1038 = tpu.memref_squeeze %1037 : memref<1x!tpu.dma_semaphore, #tpu.memory_space<semaphore_mem>> -> memref<!tpu.dma_semaphore, #tpu.memory_space<semaphore_mem>>
      tpu.enqueue_dma source(%arg3 : memref<16x128xf32, #tpu.memory_space<any>>) target(%arg12 : memref<16x128xf32, #tpu.memory_space<vmem>>) target_semaphore(%1038 : memref<!tpu.dma_semaphore, #tpu.memory_space<semaphore_mem>>)
      %c1_i32_488 = arith.constant 1 : i32
      %1039 = tpu.memref_slice %arg20[%c1_i32_488] : memref<4x!tpu.dma_semaphore, #tpu.memory_space<semaphore_mem>> -> memref<1x!tpu.dma_semaphore, #tpu.memory_space<semaphore_mem>>
      %1040 = tpu.memref_squeeze %1039 : memref<1x!tpu.dma_semaphore, #tpu.memory_space<semaphore_mem>> -> memref<!tpu.dma_semaphore, #tpu.memory_space<semaphore_mem>>
      tpu.enqueue_dma source(%arg4 : memref<128x128xf32, #tpu.memory_space<any>>) target(%arg13 : memref<128x128xf32, #tpu.memory_space<vmem>>) target_semaphore(%1040 : memref<!tpu.dma_semaphore, #tpu.memory_space<semaphore_mem>>)
      %c2_i32_489 = arith.constant 2 : i32
      %1041 = tpu.memref_slice %arg20[%c2_i32_489] : memref<4x!tpu.dma_semaphore, #tpu.memory_space<semaphore_mem>> -> memref<1x!tpu.dma_semaphore, #tpu.memory_space<semaphore_mem>>
      %1042 = tpu.memref_squeeze %1041 : memref<1x!tpu.dma_semaphore, #tpu.memory_space<semaphore_mem>> -> memref<!tpu.dma_semaphore, #tpu.memory_space<semaphore_mem>>
      tpu.enqueue_dma source(%arg5 : memref<128x128xf32, #tpu.memory_space<any>>) target(%arg14 : memref<128x128xf32, #tpu.memory_space<vmem>>) target_semaphore(%1042 : memref<!tpu.dma_semaphore, #tpu.memory_space<semaphore_mem>>)
      %c3_i32_490 = arith.constant 3 : i32
      %1043 = tpu.memref_slice %arg20[%c3_i32_490] : memref<4x!tpu.dma_semaphore, #tpu.memory_space<semaphore_mem>> -> memref<1x!tpu.dma_semaphore, #tpu.memory_space<semaphore_mem>>
      %1044 = tpu.memref_squeeze %1043 : memref<1x!tpu.dma_semaphore, #tpu.memory_space<semaphore_mem>> -> memref<!tpu.dma_semaphore, #tpu.memory_space<semaphore_mem>>
      tpu.enqueue_dma source(%arg6 : memref<1x128xf32, #tpu.memory_space<any>>) target(%arg15 : memref<1x128xf32, #tpu.memory_space<vmem>>) target_semaphore(%1044 : memref<!tpu.dma_semaphore, #tpu.memory_space<semaphore_mem>>)
      %cst_491 = arith.constant 0.000000e+00 : f32
      %1045 = vector.broadcast %cst_491 : f32 to vector<8x128xf32>
      %c0_492 = arith.constant 0 : index
      %c0_493 = arith.constant 0 : index
      %c0_494 = arith.constant 0 : index
      %1046 = vector.load %arg8[%c0_492, %c0_493, %c0_494] : memref<1x8x128xf32, #tpu.memory_space<vmem>>, vector<1x8x128xf32>
      %1047 = vector.shape_cast %1046 : vector<1x8x128xf32> to vector<8x128xf32>
      %1048 = vector.shape_cast %1045 : vector<8x128xf32> to vector<1x8x128xf32>
      tpu.vector_store %arg8[%c0_492, %c0_493, %c0_494], %1048 {strides = array<i32>} : memref<1x8x128xf32, #tpu.memory_space<vmem>>, vector<1x8x128xf32>,
      %cst_495 = arith.constant 0.000000e+00 : f32
      %1049 = vector.broadcast %cst_495 : f32 to vector<8x128xf32>
      %c0_496 = arith.constant 0 : index
      %c0_497 = arith.constant 0 : index
      %c0_498 = arith.constant 0 : index
      %1050 = vector.load %arg9[%c0_496, %c0_497, %c0_498] : memref<1x8x128xf32, #tpu.memory_space<vmem>>, vector<1x8x128xf32>
      %1051 = vector.shape_cast %1050 : vector<1x8x128xf32> to vector<8x128xf32>
      %1052 = vector.shape_cast %1049 : vector<8x128xf32> to vector<1x8x128xf32>
      tpu.vector_store %arg9[%c0_496, %c0_497, %c0_498], %1052 {strides = array<i32>} : memref<1x8x128xf32, #tpu.memory_space<vmem>>, vector<1x8x128xf32>,
      %cst_499 = arith.constant 0.000000e+00 : f32
      %1053 = vector.broadcast %cst_499 : f32 to vector<8x128xf32>
      %c0_500 = arith.constant 0 : index
      %c0_501 = arith.constant 0 : index
      %c0_502 = arith.constant 0 : index
      %1054 = vector.load %arg10[%c0_500, %c0_501, %c0_502] : memref<1x8x128xf32, #tpu.memory_space<vmem>>, vector<1x8x128xf32>
      %1055 = vector.shape_cast %1054 : vector<1x8x128xf32> to vector<8x128xf32>
      %1056 = vector.shape_cast %1053 : vector<8x128xf32> to vector<1x8x128xf32>
      tpu.vector_store %arg10[%c0_500, %c0_501, %c0_502], %1056 {strides = array<i32>} : memref<1x8x128xf32, #tpu.memory_space<vmem>>, vector<1x8x128xf32>,
      %cst_503 = arith.constant 1.000000e+00 : f32
      %1057 = vector.broadcast %cst_503 : f32 to vector<8x128xf32>
      %c0_504 = arith.constant 0 : index
      %c0_505 = arith.constant 0 : index
      %c0_506 = arith.constant 0 : index
      %1058 = vector.load %arg11[%c0_504, %c0_505, %c0_506] : memref<1x8x128xf32, #tpu.memory_space<vmem>>, vector<1x8x128xf32>
      %1059 = vector.shape_cast %1058 : vector<1x8x128xf32> to vector<8x128xf32>
      %1060 = vector.shape_cast %1057 : vector<8x128xf32> to vector<1x8x128xf32>
      tpu.vector_store %arg11[%c0_504, %c0_505, %c0_506], %1060 {strides = array<i32>} : memref<1x8x128xf32, #tpu.memory_space<vmem>>, vector<1x8x128xf32>,
      %cst_507 = arith.constant 0.000000e+00 : f32
      %1061 = vector.broadcast %cst_507 : f32 to vector<8x128xf32>
      %c0_508 = arith.constant 0 : index
      %c0_509 = arith.constant 0 : index
      %1062 = vector.load %arg19[%c0_508, %c0_509] : memref<8x128xf32, #tpu.memory_space<vmem>>, vector<8x128xf32>
      tpu.vector_store %arg19[%c0_508, %c0_509], %1061 {strides = array<i32>} : memref<8x128xf32, #tpu.memory_space<vmem>>, vector<8x128xf32>,
      %c0_i32_510 = arith.constant 0 : i32
      %1063 = tpu.memref_slice %arg20[%c0_i32_510] : memref<4x!tpu.dma_semaphore, #tpu.memory_space<semaphore_mem>> -> memref<1x!tpu.dma_semaphore, #tpu.memory_space<semaphore_mem>>
      %1064 = tpu.memref_squeeze %1063 : memref<1x!tpu.dma_semaphore, #tpu.memory_space<semaphore_mem>> -> memref<!tpu.dma_semaphore, #tpu.memory_space<semaphore_mem>>
      tpu.wait_dma2 semaphore(%1064 : memref<!tpu.dma_semaphore, #tpu.memory_space<semaphore_mem>>) src(%arg3 : memref<16x128xf32, #tpu.memory_space<any>>) dst(%arg12 : memref<16x128xf32, #tpu.memory_space<vmem>>)
      %c1_i32_511 = arith.constant 1 : i32
      %1065 = tpu.memref_slice %arg20[%c1_i32_511] : memref<4x!tpu.dma_semaphore, #tpu.memory_space<semaphore_mem>> -> memref<1x!tpu.dma_semaphore, #tpu.memory_space<semaphore_mem>>
      %1066 = tpu.memref_squeeze %1065 : memref<1x!tpu.dma_semaphore, #tpu.memory_space<semaphore_mem>> -> memref<!tpu.dma_semaphore, #tpu.memory_space<semaphore_mem>>
      tpu.wait_dma2 semaphore(%1066 : memref<!tpu.dma_semaphore, #tpu.memory_space<semaphore_mem>>) src(%arg4 : memref<128x128xf32, #tpu.memory_space<any>>) dst(%arg13 : memref<128x128xf32, #tpu.memory_space<vmem>>)
      %c2_i32_512 = arith.constant 2 : i32
      %1067 = tpu.memref_slice %arg20[%c2_i32_512] : memref<4x!tpu.dma_semaphore, #tpu.memory_space<semaphore_mem>> -> memref<1x!tpu.dma_semaphore, #tpu.memory_space<semaphore_mem>>
      %1068 = tpu.memref_squeeze %1067 : memref<1x!tpu.dma_semaphore, #tpu.memory_space<semaphore_mem>> -> memref<!tpu.dma_semaphore, #tpu.memory_space<semaphore_mem>>
      tpu.wait_dma2 semaphore(%1068 : memref<!tpu.dma_semaphore, #tpu.memory_space<semaphore_mem>>) src(%arg5 : memref<128x128xf32, #tpu.memory_space<any>>) dst(%arg14 : memref<128x128xf32, #tpu.memory_space<vmem>>)
      %c3_i32_513 = arith.constant 3 : i32
      %1069 = tpu.memref_slice %arg20[%c3_i32_513] : memref<4x!tpu.dma_semaphore, #tpu.memory_space<semaphore_mem>> -> memref<1x!tpu.dma_semaphore, #tpu.memory_space<semaphore_mem>>
      %1070 = tpu.memref_squeeze %1069 : memref<1x!tpu.dma_semaphore, #tpu.memory_space<semaphore_mem>> -> memref<!tpu.dma_semaphore, #tpu.memory_space<semaphore_mem>>
      tpu.wait_dma2 semaphore(%1070 : memref<!tpu.dma_semaphore, #tpu.memory_space<semaphore_mem>>) src(%arg6 : memref<1x128xf32, #tpu.memory_space<any>>) dst(%arg15 : memref<1x128xf32, #tpu.memory_space<vmem>>)
    } else {
    }
    %c0 = arith.constant 0 : index
    %c0_1 = arith.constant 0 : index
    %c0_2 = arith.constant 0 : index
    %c0_3 = arith.constant 0 : index
    %3 = vector.load %arg2[%c0, %c0_1, %c0_2, %c0_3] : memref<1x1x160x16xf32, #tpu.memory_space<vmem>>, vector<1x1x160x16xf32>
    %4 = vector.shape_cast %3 : vector<1x1x160x16xf32> to vector<160x16xf32>
    %c0_4 = arith.constant 0 : index
    %c0_5 = arith.constant 0 : index
    %5 = vector.load %arg12[%c0_4, %c0_5] : memref<16x128xf32, #tpu.memory_space<vmem>>, vector<16x128xf32>
    %cst = arith.constant dense<0.000000e+00> : vector<160x128xf32>
    %6 = tpu.matmul %4, %5, %cst {dimension_numbers = #tpu.dot_dimension_numbers<[1], [0], [0], [1], [0, 0, 1, 1], [], []>} : vector<160x16xf32>, vector<16x128xf32>, vector<160x128xf32> -> vector<160x128xf32>
    %c0_6 = arith.constant 0 : index
    %c0_7 = arith.constant 0 : index
    %7 = vector.load %arg16[%c0_6, %c0_7] : memref<160x128xf32, #tpu.memory_space<vmem>>, vector<160x128xf32>
    tpu.vector_store %arg16[%c0_6, %c0_7], %6 {strides = array<i32>} : memref<160x128xf32, #tpu.memory_space<vmem>>, vector<160x128xf32>,
    %c0_8 = arith.constant 0 : index
    %c0_9 = arith.constant 0 : index
    %c0_10 = arith.constant 0 : index
    %8 = vector.load %arg8[%c0_8, %c0_9, %c0_10] : memref<1x8x128xf32, #tpu.memory_space<vmem>>, vector<1x8x128xf32>
    %9 = vector.shape_cast %8 : vector<1x8x128xf32> to vector<8x128xf32>
    %c0_11 = arith.constant 0 : index
    %c0_12 = arith.constant 0 : index
    %c0_13 = arith.constant 0 : index
    %10 = vector.load %arg9[%c0_11, %c0_12, %c0_13] : memref<1x8x128xf32, #tpu.memory_space<vmem>>, vector<1x8x128xf32>
    %11 = vector.shape_cast %10 : vector<1x8x128xf32> to vector<8x128xf32>
    %c0_14 = arith.constant 0 : index
    %c0_15 = arith.constant 0 : index
    %c0_16 = arith.constant 0 : index
    %12 = vector.load %arg10[%c0_14, %c0_15, %c0_16] : memref<1x8x128xf32, #tpu.memory_space<vmem>>, vector<1x8x128xf32>
    %13 = vector.shape_cast %12 : vector<1x8x128xf32> to vector<8x128xf32>
    %c0_17 = arith.constant 0 : index
    %c0_18 = arith.constant 0 : index
    %c0_19 = arith.constant 0 : index
    %14 = vector.load %arg11[%c0_17, %c0_18, %c0_19] : memref<1x8x128xf32, #tpu.memory_space<vmem>>, vector<1x8x128xf32>
    %15 = vector.shape_cast %14 : vector<1x8x128xf32> to vector<8x128xf32>
    %c0_i32_20 = arith.constant 0 : i32
    %c8_i32 = arith.constant 8 : i32
    %16 = arith.muli %c0_i32_20, %c8_i32 : i32
    %17 = tpu.assume_multiple %16, 8 : i32
    %cst_21 = arith.constant 0.000000e+00 : f32
    %18 = vector.broadcast %cst_21 : f32 to vector<8x128xf32>
    %19 = arith.subf %18, %11 : vector<8x128xf32>
    %20 = arith.addf %19, %13 : vector<8x128xf32>
    %cst_22 = arith.constant 1.000000e-01 : f32
    %21 = vector.broadcast %cst_22 : f32 to vector<8x128xf32>
    %22 = arith.mulf %21, %20 : vector<8x128xf32>
    %23 = arith.addf %11, %22 : vector<8x128xf32>
    %cst_23 = arith.constant 2.000000e-01 : f32
    %24 = vector.broadcast %cst_23 : f32 to vector<8x128xf32>
    %25 = arith.mulf %24, %13 : vector<8x128xf32>
    %26 = arith.subf %13, %25 : vector<8x128xf32>
    %cst_24 = arith.constant 1.000000e+00 : f32
    %27 = vector.broadcast %cst_24 : f32 to vector<8x128xf32>
    %28 = arith.subf %27, %15 : vector<8x128xf32>
    %cst_25 = arith.constant 1.42857141E-6 : f32
    %29 = vector.broadcast %cst_25 : f32 to vector<8x128xf32>
    %30 = arith.mulf %29, %28 : vector<8x128xf32>
    %31 = arith.addf %15, %30 : vector<8x128xf32>
    %32 = arith.subf %23, %31 : vector<8x128xf32>
    %cst_26 = arith.constant 0.000000e+00 : f32
    %33 = vector.broadcast %cst_26 : f32 to vector<8x128xf32>
    %34 = arith.cmpf ogt, %32, %33 : vector<8x128xf32>
    %35 = arith.extui %34 : vector<8x128xi1> to vector<8x128xi32>
    %36 = arith.sitofp %35 : vector<8x128xi32> to vector<8x128xf32>
    %cst_27 = arith.constant 1.000000e+00 : f32
    %37 = vector.broadcast %cst_27 : f32 to vector<8x128xf32>
    %38 = arith.subf %37, %36 : vector<8x128xf32>
    %39 = arith.mulf %38, %23 : vector<8x128xf32>
    %cst_28 = arith.constant 0.000000e+00 : f32
    %40 = vector.broadcast %cst_28 : f32 to vector<8x128xf32>
    %41 = arith.mulf %36, %40 : vector<8x128xf32>
    %42 = arith.addf %39, %41 : vector<8x128xf32>
    %43 = arith.index_cast %17 : i32 to index
    %c0_29 = arith.constant 0 : index
    %44 = vector.load %arg16[%43, %c0_29] : memref<160x128xf32, #tpu.memory_space<vmem>>, vector<8x128xf32>
    %45 = arith.addf %26, %44 : vector<8x128xf32>
    %c0_30 = arith.constant 0 : index
    %c0_31 = arith.constant 0 : index
    %46 = vector.load %arg13[%c0_30, %c0_31] : memref<128x128xf32, #tpu.memory_space<vmem>>, vector<128x128xf32>
    %cst_32 = arith.constant dense<0.000000e+00> : vector<8x128xf32>
    %47 = tpu.matmul %9, %46, %cst_32 {dimension_numbers = #tpu.dot_dimension_numbers<[1], [0], [0], [1], [0, 0, 1, 1], [], []>} : vector<8x128xf32>, vector<128x128xf32>, vector<8x128xf32> -> vector<8x128xf32>
    %48 = arith.addf %45, %47 : vector<8x128xf32>
    %cst_33 = arith.constant 0.00257142866 : f32
    %49 = vector.broadcast %cst_33 : f32 to vector<8x128xf32>
    %50 = arith.mulf %36, %49 : vector<8x128xf32>
    %51 = arith.addf %31, %50 : vector<8x128xf32>
    %52 = arith.index_cast %17 : i32 to index
    %c0_34 = arith.constant 0 : index
    %53 = vector.load %arg17[%52, %c0_34] : memref<160x128xf32, #tpu.memory_space<vmem>>, vector<8x128xf32>
    tpu.vector_store %arg17[%52, %c0_34], %36 {strides = array<i32>} : memref<160x128xf32, #tpu.memory_space<vmem>>, vector<8x128xf32>,
    %c1_i32 = arith.constant 1 : i32
    %c8_i32_35 = arith.constant 8 : i32
    %54 = arith.muli %c1_i32, %c8_i32_35 : i32
    %55 = tpu.assume_multiple %54, 8 : i32
    %cst_36 = arith.constant 0.000000e+00 : f32
    %56 = vector.broadcast %cst_36 : f32 to vector<8x128xf32>
    %57 = arith.subf %56, %42 : vector<8x128xf32>
    %58 = arith.addf %57, %48 : vector<8x128xf32>
    %cst_37 = arith.constant 1.000000e-01 : f32
    %59 = vector.broadcast %cst_37 : f32 to vector<8x128xf32>
    %60 = arith.mulf %59, %58 : vector<8x128xf32>
    %61 = arith.addf %42, %60 : vector<8x128xf32>
    %cst_38 = arith.constant 2.000000e-01 : f32
    %62 = vector.broadcast %cst_38 : f32 to vector<8x128xf32>
    %63 = arith.mulf %62, %48 : vector<8x128xf32>
    %64 = arith.subf %48, %63 : vector<8x128xf32>
    %cst_39 = arith.constant 1.000000e+00 : f32
    %65 = vector.broadcast %cst_39 : f32 to vector<8x128xf32>
    %66 = arith.subf %65, %51 : vector<8x128xf32>
    %cst_40 = arith.constant 1.42857141E-6 : f32
    %67 = vector.broadcast %cst_40 : f32 to vector<8x128xf32>
    %68 = arith.mulf %67, %66 : vector<8x128xf32>
    %69 = arith.addf %51, %68 : vector<8x128xf32>
    %70 = arith.subf %61, %69 : vector<8x128xf32>
    %cst_41 = arith.constant 0.000000e+00 : f32
    %71 = vector.broadcast %cst_41 : f32 to vector<8x128xf32>
    %72 = arith.cmpf ogt, %70, %71 : vector<8x128xf32>
    %73 = arith.extui %72 : vector<8x128xi1> to vector<8x128xi32>
    %74 = arith.sitofp %73 : vector<8x128xi32> to vector<8x128xf32>
    %cst_42 = arith.constant 1.000000e+00 : f32
    %75 = vector.broadcast %cst_42 : f32 to vector<8x128xf32>
    %76 = arith.subf %75, %74 : vector<8x128xf32>
    %77 = arith.mulf %76, %61 : vector<8x128xf32>
    %cst_43 = arith.constant 0.000000e+00 : f32
    %78 = vector.broadcast %cst_43 : f32 to vector<8x128xf32>
    %79 = arith.mulf %74, %78 : vector<8x128xf32>
    %80 = arith.addf %77, %79 : vector<8x128xf32>
    %81 = arith.index_cast %55 : i32 to index
    %c0_44 = arith.constant 0 : index
    %82 = vector.load %arg16[%81, %c0_44] : memref<160x128xf32, #tpu.memory_space<vmem>>, vector<8x128xf32>
    %83 = arith.addf %64, %82 : vector<8x128xf32>
    %c0_45 = arith.constant 0 : index
    %c0_46 = arith.constant 0 : index
    %84 = vector.load %arg13[%c0_45, %c0_46] : memref<128x128xf32, #tpu.memory_space<vmem>>, vector<128x128xf32>
    %cst_47 = arith.constant dense<0.000000e+00> : vector<8x128xf32>
    %85 = tpu.matmul %36, %84, %cst_47 {dimension_numbers = #tpu.dot_dimension_numbers<[1], [0], [0], [1], [0, 0, 1, 1], [], []>} : vector<8x128xf32>, vector<128x128xf32>, vector<8x128xf32> -> vector<8x128xf32>
    %86 = arith.addf %83, %85 : vector<8x128xf32>
    %cst_48 = arith.constant 0.00257142866 : f32
    %87 = vector.broadcast %cst_48 : f32 to vector<8x128xf32>
    %88 = arith.mulf %74, %87 : vector<8x128xf32>
    %89 = arith.addf %69, %88 : vector<8x128xf32>
    %90 = arith.index_cast %55 : i32 to index
    %c0_49 = arith.constant 0 : index
    %91 = vector.load %arg17[%90, %c0_49] : memref<160x128xf32, #tpu.memory_space<vmem>>, vector<8x128xf32>
    tpu.vector_store %arg17[%90, %c0_49], %74 {strides = array<i32>} : memref<160x128xf32, #tpu.memory_space<vmem>>, vector<8x128xf32>,
    %c2_i32 = arith.constant 2 : i32
    %c8_i32_50 = arith.constant 8 : i32
    %92 = arith.muli %c2_i32, %c8_i32_50 : i32
    %93 = tpu.assume_multiple %92, 8 : i32
    %cst_51 = arith.constant 0.000000e+00 : f32
    %94 = vector.broadcast %cst_51 : f32 to vector<8x128xf32>
    %95 = arith.subf %94, %80 : vector<8x128xf32>
    %96 = arith.addf %95, %86 : vector<8x128xf32>
    %cst_52 = arith.constant 1.000000e-01 : f32
    %97 = vector.broadcast %cst_52 : f32 to vector<8x128xf32>
    %98 = arith.mulf %97, %96 : vector<8x128xf32>
    %99 = arith.addf %80, %98 : vector<8x128xf32>
    %cst_53 = arith.constant 2.000000e-01 : f32
    %100 = vector.broadcast %cst_53 : f32 to vector<8x128xf32>
    %101 = arith.mulf %100, %86 : vector<8x128xf32>
    %102 = arith.subf %86, %101 : vector<8x128xf32>
    %cst_54 = arith.constant 1.000000e+00 : f32
    %103 = vector.broadcast %cst_54 : f32 to vector<8x128xf32>
    %104 = arith.subf %103, %89 : vector<8x128xf32>
    %cst_55 = arith.constant 1.42857141E-6 : f32
    %105 = vector.broadcast %cst_55 : f32 to vector<8x128xf32>
    %106 = arith.mulf %105, %104 : vector<8x128xf32>
    %107 = arith.addf %89, %106 : vector<8x128xf32>
    %108 = arith.subf %99, %107 : vector<8x128xf32>
    %cst_56 = arith.constant 0.000000e+00 : f32
    %109 = vector.broadcast %cst_56 : f32 to vector<8x128xf32>
    %110 = arith.cmpf ogt, %108, %109 : vector<8x128xf32>
    %111 = arith.extui %110 : vector<8x128xi1> to vector<8x128xi32>
    %112 = arith.sitofp %111 : vector<8x128xi32> to vector<8x128xf32>
    %cst_57 = arith.constant 1.000000e+00 : f32
    %113 = vector.broadcast %cst_57 : f32 to vector<8x128xf32>
    %114 = arith.subf %113, %112 : vector<8x128xf32>
    %115 = arith.mulf %114, %99 : vector<8x128xf32>
    %cst_58 = arith.constant 0.000000e+00 : f32
    %116 = vector.broadcast %cst_58 : f32 to vector<8x128xf32>
    %117 = arith.mulf %112, %116 : vector<8x128xf32>
    %118 = arith.addf %115, %117 : vector<8x128xf32>
    %119 = arith.index_cast %93 : i32 to index
    %c0_59 = arith.constant 0 : index
    %120 = vector.load %arg16[%119, %c0_59] : memref<160x128xf32, #tpu.memory_space<vmem>>, vector<8x128xf32>
    %121 = arith.addf %102, %120 : vector<8x128xf32>
    %c0_60 = arith.constant 0 : index
    %c0_61 = arith.constant 0 : index
    %122 = vector.load %arg13[%c0_60, %c0_61] : memref<128x128xf32, #tpu.memory_space<vmem>>, vector<128x128xf32>
    %cst_62 = arith.constant dense<0.000000e+00> : vector<8x128xf32>
    %123 = tpu.matmul %74, %122, %cst_62 {dimension_numbers = #tpu.dot_dimension_numbers<[1], [0], [0], [1], [0, 0, 1, 1], [], []>} : vector<8x128xf32>, vector<128x128xf32>, vector<8x128xf32> -> vector<8x128xf32>
    %124 = arith.addf %121, %123 : vector<8x128xf32>
    %cst_63 = arith.constant 0.00257142866 : f32
    %125 = vector.broadcast %cst_63 : f32 to vector<8x128xf32>
    %126 = arith.mulf %112, %125 : vector<8x128xf32>
    %127 = arith.addf %107, %126 : vector<8x128xf32>
    %128 = arith.index_cast %93 : i32 to index
    %c0_64 = arith.constant 0 : index
    %129 = vector.load %arg17[%128, %c0_64] : memref<160x128xf32, #tpu.memory_space<vmem>>, vector<8x128xf32>
    tpu.vector_store %arg17[%128, %c0_64], %112 {strides = array<i32>} : memref<160x128xf32, #tpu.memory_space<vmem>>, vector<8x128xf32>,
    %c3_i32 = arith.constant 3 : i32
    %c8_i32_65 = arith.constant 8 : i32
    %130 = arith.muli %c3_i32, %c8_i32_65 : i32
    %131 = tpu.assume_multiple %130, 8 : i32
    %cst_66 = arith.constant 0.000000e+00 : f32
    %132 = vector.broadcast %cst_66 : f32 to vector<8x128xf32>
    %133 = arith.subf %132, %118 : vector<8x128xf32>
    %134 = arith.addf %133, %124 : vector<8x128xf32>
    %cst_67 = arith.constant 1.000000e-01 : f32
    %135 = vector.broadcast %cst_67 : f32 to vector<8x128xf32>
    %136 = arith.mulf %135, %134 : vector<8x128xf32>
    %137 = arith.addf %118, %136 : vector<8x128xf32>
    %cst_68 = arith.constant 2.000000e-01 : f32
    %138 = vector.broadcast %cst_68 : f32 to vector<8x128xf32>
    %139 = arith.mulf %138, %124 : vector<8x128xf32>
    %140 = arith.subf %124, %139 : vector<8x128xf32>
    %cst_69 = arith.constant 1.000000e+00 : f32
    %141 = vector.broadcast %cst_69 : f32 to vector<8x128xf32>
    %142 = arith.subf %141, %127 : vector<8x128xf32>
    %cst_70 = arith.constant 1.42857141E-6 : f32
    %143 = vector.broadcast %cst_70 : f32 to vector<8x128xf32>
    %144 = arith.mulf %143, %142 : vector<8x128xf32>
    %145 = arith.addf %127, %144 : vector<8x128xf32>
    %146 = arith.subf %137, %145 : vector<8x128xf32>
    %cst_71 = arith.constant 0.000000e+00 : f32
    %147 = vector.broadcast %cst_71 : f32 to vector<8x128xf32>
    %148 = arith.cmpf ogt, %146, %147 : vector<8x128xf32>
    %149 = arith.extui %148 : vector<8x128xi1> to vector<8x128xi32>
    %150 = arith.sitofp %149 : vector<8x128xi32> to vector<8x128xf32>
    %cst_72 = arith.constant 1.000000e+00 : f32
    %151 = vector.broadcast %cst_72 : f32 to vector<8x128xf32>
    %152 = arith.subf %151, %150 : vector<8x128xf32>
    %153 = arith.mulf %152, %137 : vector<8x128xf32>
    %cst_73 = arith.constant 0.000000e+00 : f32
    %154 = vector.broadcast %cst_73 : f32 to vector<8x128xf32>
    %155 = arith.mulf %150, %154 : vector<8x128xf32>
    %156 = arith.addf %153, %155 : vector<8x128xf32>
    %157 = arith.index_cast %131 : i32 to index
    %c0_74 = arith.constant 0 : index
    %158 = vector.load %arg16[%157, %c0_74] : memref<160x128xf32, #tpu.memory_space<vmem>>, vector<8x128xf32>
    %159 = arith.addf %140, %158 : vector<8x128xf32>
    %c0_75 = arith.constant 0 : index
    %c0_76 = arith.constant 0 : index
    %160 = vector.load %arg13[%c0_75, %c0_76] : memref<128x128xf32, #tpu.memory_space<vmem>>, vector<128x128xf32>
    %cst_77 = arith.constant dense<0.000000e+00> : vector<8x128xf32>
    %161 = tpu.matmul %112, %160, %cst_77 {dimension_numbers = #tpu.dot_dimension_numbers<[1], [0], [0], [1], [0, 0, 1, 1], [], []>} : vector<8x128xf32>, vector<128x128xf32>, vector<8x128xf32> -> vector<8x128xf32>
    %162 = arith.addf %159, %161 : vector<8x128xf32>
    %cst_78 = arith.constant 0.00257142866 : f32
    %163 = vector.broadcast %cst_78 : f32 to vector<8x128xf32>
    %164 = arith.mulf %150, %163 : vector<8x128xf32>
    %165 = arith.addf %145, %164 : vector<8x128xf32>
    %166 = arith.index_cast %131 : i32 to index
    %c0_79 = arith.constant 0 : index
    %167 = vector.load %arg17[%166, %c0_79] : memref<160x128xf32, #tpu.memory_space<vmem>>, vector<8x128xf32>
    tpu.vector_store %arg17[%166, %c0_79], %150 {strides = array<i32>} : memref<160x128xf32, #tpu.memory_space<vmem>>, vector<8x128xf32>,
    %c4_i32 = arith.constant 4 : i32
    %c8_i32_80 = arith.constant 8 : i32
    %168 = arith.muli %c4_i32, %c8_i32_80 : i32
    %169 = tpu.assume_multiple %168, 8 : i32
    %cst_81 = arith.constant 0.000000e+00 : f32
    %170 = vector.broadcast %cst_81 : f32 to vector<8x128xf32>
    %171 = arith.subf %170, %156 : vector<8x128xf32>
    %172 = arith.addf %171, %162 : vector<8x128xf32>
    %cst_82 = arith.constant 1.000000e-01 : f32
    %173 = vector.broadcast %cst_82 : f32 to vector<8x128xf32>
    %174 = arith.mulf %173, %172 : vector<8x128xf32>
    %175 = arith.addf %156, %174 : vector<8x128xf32>
    %cst_83 = arith.constant 2.000000e-01 : f32
    %176 = vector.broadcast %cst_83 : f32 to vector<8x128xf32>
    %177 = arith.mulf %176, %162 : vector<8x128xf32>
    %178 = arith.subf %162, %177 : vector<8x128xf32>
    %cst_84 = arith.constant 1.000000e+00 : f32
    %179 = vector.broadcast %cst_84 : f32 to vector<8x128xf32>
    %180 = arith.subf %179, %165 : vector<8x128xf32>
    %cst_85 = arith.constant 1.42857141E-6 : f32
    %181 = vector.broadcast %cst_85 : f32 to vector<8x128xf32>
    %182 = arith.mulf %181, %180 : vector<8x128xf32>
    %183 = arith.addf %165, %182 : vector<8x128xf32>
    %184 = arith.subf %175, %183 : vector<8x128xf32>
    %cst_86 = arith.constant 0.000000e+00 : f32
    %185 = vector.broadcast %cst_86 : f32 to vector<8x128xf32>
    %186 = arith.cmpf ogt, %184, %185 : vector<8x128xf32>
    %187 = arith.extui %186 : vector<8x128xi1> to vector<8x128xi32>
    %188 = arith.sitofp %187 : vector<8x128xi32> to vector<8x128xf32>
    %cst_87 = arith.constant 1.000000e+00 : f32
    %189 = vector.broadcast %cst_87 : f32 to vector<8x128xf32>
    %190 = arith.subf %189, %188 : vector<8x128xf32>
    %191 = arith.mulf %190, %175 : vector<8x128xf32>
    %cst_88 = arith.constant 0.000000e+00 : f32
    %192 = vector.broadcast %cst_88 : f32 to vector<8x128xf32>
    %193 = arith.mulf %188, %192 : vector<8x128xf32>
    %194 = arith.addf %191, %193 : vector<8x128xf32>
    %195 = arith.index_cast %169 : i32 to index
    %c0_89 = arith.constant 0 : index
    %196 = vector.load %arg16[%195, %c0_89] : memref<160x128xf32, #tpu.memory_space<vmem>>, vector<8x128xf32>
    %197 = arith.addf %178, %196 : vector<8x128xf32>
    %c0_90 = arith.constant 0 : index
    %c0_91 = arith.constant 0 : index
    %198 = vector.load %arg13[%c0_90, %c0_91] : memref<128x128xf32, #tpu.memory_space<vmem>>, vector<128x128xf32>
    %cst_92 = arith.constant dense<0.000000e+00> : vector<8x128xf32>
    %199 = tpu.matmul %150, %198, %cst_92 {dimension_numbers = #tpu.dot_dimension_numbers<[1], [0], [0], [1], [0, 0, 1, 1], [], []>} : vector<8x128xf32>, vector<128x128xf32>, vector<8x128xf32> -> vector<8x128xf32>
    %200 = arith.addf %197, %199 : vector<8x128xf32>
    %cst_93 = arith.constant 0.00257142866 : f32
    %201 = vector.broadcast %cst_93 : f32 to vector<8x128xf32>
    %202 = arith.mulf %188, %201 : vector<8x128xf32>
    %203 = arith.addf %183, %202 : vector<8x128xf32>
    %204 = arith.index_cast %169 : i32 to index
    %c0_94 = arith.constant 0 : index
    %205 = vector.load %arg17[%204, %c0_94] : memref<160x128xf32, #tpu.memory_space<vmem>>, vector<8x128xf32>
    tpu.vector_store %arg17[%204, %c0_94], %188 {strides = array<i32>} : memref<160x128xf32, #tpu.memory_space<vmem>>, vector<8x128xf32>,
    %c5_i32 = arith.constant 5 : i32
    %c8_i32_95 = arith.constant 8 : i32
    %206 = arith.muli %c5_i32, %c8_i32_95 : i32
    %207 = tpu.assume_multiple %206, 8 : i32
    %cst_96 = arith.constant 0.000000e+00 : f32
    %208 = vector.broadcast %cst_96 : f32 to vector<8x128xf32>
    %209 = arith.subf %208, %194 : vector<8x128xf32>
    %210 = arith.addf %209, %200 : vector<8x128xf32>
    %cst_97 = arith.constant 1.000000e-01 : f32
    %211 = vector.broadcast %cst_97 : f32 to vector<8x128xf32>
    %212 = arith.mulf %211, %210 : vector<8x128xf32>
    %213 = arith.addf %194, %212 : vector<8x128xf32>
    %cst_98 = arith.constant 2.000000e-01 : f32
    %214 = vector.broadcast %cst_98 : f32 to vector<8x128xf32>
    %215 = arith.mulf %214, %200 : vector<8x128xf32>
    %216 = arith.subf %200, %215 : vector<8x128xf32>
    %cst_99 = arith.constant 1.000000e+00 : f32
    %217 = vector.broadcast %cst_99 : f32 to vector<8x128xf32>
    %218 = arith.subf %217, %203 : vector<8x128xf32>
    %cst_100 = arith.constant 1.42857141E-6 : f32
    %219 = vector.broadcast %cst_100 : f32 to vector<8x128xf32>
    %220 = arith.mulf %219, %218 : vector<8x128xf32>
    %221 = arith.addf %203, %220 : vector<8x128xf32>
    %222 = arith.subf %213, %221 : vector<8x128xf32>
    %cst_101 = arith.constant 0.000000e+00 : f32
    %223 = vector.broadcast %cst_101 : f32 to vector<8x128xf32>
    %224 = arith.cmpf ogt, %222, %223 : vector<8x128xf32>
    %225 = arith.extui %224 : vector<8x128xi1> to vector<8x128xi32>
    %226 = arith.sitofp %225 : vector<8x128xi32> to vector<8x128xf32>
    %cst_102 = arith.constant 1.000000e+00 : f32
    %227 = vector.broadcast %cst_102 : f32 to vector<8x128xf32>
    %228 = arith.subf %227, %226 : vector<8x128xf32>
    %229 = arith.mulf %228, %213 : vector<8x128xf32>
    %cst_103 = arith.constant 0.000000e+00 : f32
    %230 = vector.broadcast %cst_103 : f32 to vector<8x128xf32>
    %231 = arith.mulf %226, %230 : vector<8x128xf32>
    %232 = arith.addf %229, %231 : vector<8x128xf32>
    %233 = arith.index_cast %207 : i32 to index
    %c0_104 = arith.constant 0 : index
    %234 = vector.load %arg16[%233, %c0_104] : memref<160x128xf32, #tpu.memory_space<vmem>>, vector<8x128xf32>
    %235 = arith.addf %216, %234 : vector<8x128xf32>
    %c0_105 = arith.constant 0 : index
    %c0_106 = arith.constant 0 : index
    %236 = vector.load %arg13[%c0_105, %c0_106] : memref<128x128xf32, #tpu.memory_space<vmem>>, vector<128x128xf32>
    %cst_107 = arith.constant dense<0.000000e+00> : vector<8x128xf32>
    %237 = tpu.matmul %188, %236, %cst_107 {dimension_numbers = #tpu.dot_dimension_numbers<[1], [0], [0], [1], [0, 0, 1, 1], [], []>} : vector<8x128xf32>, vector<128x128xf32>, vector<8x128xf32> -> vector<8x128xf32>
    %238 = arith.addf %235, %237 : vector<8x128xf32>
    %cst_108 = arith.constant 0.00257142866 : f32
    %239 = vector.broadcast %cst_108 : f32 to vector<8x128xf32>
    %240 = arith.mulf %226, %239 : vector<8x128xf32>
    %241 = arith.addf %221, %240 : vector<8x128xf32>
    %242 = arith.index_cast %207 : i32 to index
    %c0_109 = arith.constant 0 : index
    %243 = vector.load %arg17[%242, %c0_109] : memref<160x128xf32, #tpu.memory_space<vmem>>, vector<8x128xf32>
    tpu.vector_store %arg17[%242, %c0_109], %226 {strides = array<i32>} : memref<160x128xf32, #tpu.memory_space<vmem>>, vector<8x128xf32>,
    %c6_i32 = arith.constant 6 : i32
    %c8_i32_110 = arith.constant 8 : i32
    %244 = arith.muli %c6_i32, %c8_i32_110 : i32
    %245 = tpu.assume_multiple %244, 8 : i32
    %cst_111 = arith.constant 0.000000e+00 : f32
    %246 = vector.broadcast %cst_111 : f32 to vector<8x128xf32>
    %247 = arith.subf %246, %232 : vector<8x128xf32>
    %248 = arith.addf %247, %238 : vector<8x128xf32>
    %cst_112 = arith.constant 1.000000e-01 : f32
    %249 = vector.broadcast %cst_112 : f32 to vector<8x128xf32>
    %250 = arith.mulf %249, %248 : vector<8x128xf32>
    %251 = arith.addf %232, %250 : vector<8x128xf32>
    %cst_113 = arith.constant 2.000000e-01 : f32
    %252 = vector.broadcast %cst_113 : f32 to vector<8x128xf32>
    %253 = arith.mulf %252, %238 : vector<8x128xf32>
    %254 = arith.subf %238, %253 : vector<8x128xf32>
    %cst_114 = arith.constant 1.000000e+00 : f32
    %255 = vector.broadcast %cst_114 : f32 to vector<8x128xf32>
    %256 = arith.subf %255, %241 : vector<8x128xf32>
    %cst_115 = arith.constant 1.42857141E-6 : f32
    %257 = vector.broadcast %cst_115 : f32 to vector<8x128xf32>
    %258 = arith.mulf %257, %256 : vector<8x128xf32>
    %259 = arith.addf %241, %258 : vector<8x128xf32>
    %260 = arith.subf %251, %259 : vector<8x128xf32>
    %cst_116 = arith.constant 0.000000e+00 : f32
    %261 = vector.broadcast %cst_116 : f32 to vector<8x128xf32>
    %262 = arith.cmpf ogt, %260, %261 : vector<8x128xf32>
    %263 = arith.extui %262 : vector<8x128xi1> to vector<8x128xi32>
    %264 = arith.sitofp %263 : vector<8x128xi32> to vector<8x128xf32>
    %cst_117 = arith.constant 1.000000e+00 : f32
    %265 = vector.broadcast %cst_117 : f32 to vector<8x128xf32>
    %266 = arith.subf %265, %264 : vector<8x128xf32>
    %267 = arith.mulf %266, %251 : vector<8x128xf32>
    %cst_118 = arith.constant 0.000000e+00 : f32
    %268 = vector.broadcast %cst_118 : f32 to vector<8x128xf32>
    %269 = arith.mulf %264, %268 : vector<8x128xf32>
    %270 = arith.addf %267, %269 : vector<8x128xf32>
    %271 = arith.index_cast %245 : i32 to index
    %c0_119 = arith.constant 0 : index
    %272 = vector.load %arg16[%271, %c0_119] : memref<160x128xf32, #tpu.memory_space<vmem>>, vector<8x128xf32>
    %273 = arith.addf %254, %272 : vector<8x128xf32>
    %c0_120 = arith.constant 0 : index
    %c0_121 = arith.constant 0 : index
    %274 = vector.load %arg13[%c0_120, %c0_121] : memref<128x128xf32, #tpu.memory_space<vmem>>, vector<128x128xf32>
    %cst_122 = arith.constant dense<0.000000e+00> : vector<8x128xf32>
    %275 = tpu.matmul %226, %274, %cst_122 {dimension_numbers = #tpu.dot_dimension_numbers<[1], [0], [0], [1], [0, 0, 1, 1], [], []>} : vector<8x128xf32>, vector<128x128xf32>, vector<8x128xf32> -> vector<8x128xf32>
    %276 = arith.addf %273, %275 : vector<8x128xf32>
    %cst_123 = arith.constant 0.00257142866 : f32
    %277 = vector.broadcast %cst_123 : f32 to vector<8x128xf32>
    %278 = arith.mulf %264, %277 : vector<8x128xf32>
    %279 = arith.addf %259, %278 : vector<8x128xf32>
    %280 = arith.index_cast %245 : i32 to index
    %c0_124 = arith.constant 0 : index
    %281 = vector.load %arg17[%280, %c0_124] : memref<160x128xf32, #tpu.memory_space<vmem>>, vector<8x128xf32>
    tpu.vector_store %arg17[%280, %c0_124], %264 {strides = array<i32>} : memref<160x128xf32, #tpu.memory_space<vmem>>, vector<8x128xf32>,
    %c7_i32 = arith.constant 7 : i32
    %c8_i32_125 = arith.constant 8 : i32
    %282 = arith.muli %c7_i32, %c8_i32_125 : i32
    %283 = tpu.assume_multiple %282, 8 : i32
    %cst_126 = arith.constant 0.000000e+00 : f32
    %284 = vector.broadcast %cst_126 : f32 to vector<8x128xf32>
    %285 = arith.subf %284, %270 : vector<8x128xf32>
    %286 = arith.addf %285, %276 : vector<8x128xf32>
    %cst_127 = arith.constant 1.000000e-01 : f32
    %287 = vector.broadcast %cst_127 : f32 to vector<8x128xf32>
    %288 = arith.mulf %287, %286 : vector<8x128xf32>
    %289 = arith.addf %270, %288 : vector<8x128xf32>
    %cst_128 = arith.constant 2.000000e-01 : f32
    %290 = vector.broadcast %cst_128 : f32 to vector<8x128xf32>
    %291 = arith.mulf %290, %276 : vector<8x128xf32>
    %292 = arith.subf %276, %291 : vector<8x128xf32>
    %cst_129 = arith.constant 1.000000e+00 : f32
    %293 = vector.broadcast %cst_129 : f32 to vector<8x128xf32>
    %294 = arith.subf %293, %279 : vector<8x128xf32>
    %cst_130 = arith.constant 1.42857141E-6 : f32
    %295 = vector.broadcast %cst_130 : f32 to vector<8x128xf32>
    %296 = arith.mulf %295, %294 : vector<8x128xf32>
    %297 = arith.addf %279, %296 : vector<8x128xf32>
    %298 = arith.subf %289, %297 : vector<8x128xf32>
    %cst_131 = arith.constant 0.000000e+00 : f32
    %299 = vector.broadcast %cst_131 : f32 to vector<8x128xf32>
    %300 = arith.cmpf ogt, %298, %299 : vector<8x128xf32>
    %301 = arith.extui %300 : vector<8x128xi1> to vector<8x128xi32>
    %302 = arith.sitofp %301 : vector<8x128xi32> to vector<8x128xf32>
    %cst_132 = arith.constant 1.000000e+00 : f32
    %303 = vector.broadcast %cst_132 : f32 to vector<8x128xf32>
    %304 = arith.subf %303, %302 : vector<8x128xf32>
    %305 = arith.mulf %304, %289 : vector<8x128xf32>
    %cst_133 = arith.constant 0.000000e+00 : f32
    %306 = vector.broadcast %cst_133 : f32 to vector<8x128xf32>
    %307 = arith.mulf %302, %306 : vector<8x128xf32>
    %308 = arith.addf %305, %307 : vector<8x128xf32>
    %309 = arith.index_cast %283 : i32 to index
    %c0_134 = arith.constant 0 : index
    %310 = vector.load %arg16[%309, %c0_134] : memref<160x128xf32, #tpu.memory_space<vmem>>, vector<8x128xf32>
    %311 = arith.addf %292, %310 : vector<8x128xf32>
    %c0_135 = arith.constant 0 : index
    %c0_136 = arith.constant 0 : index
    %312 = vector.load %arg13[%c0_135, %c0_136] : memref<128x128xf32, #tpu.memory_space<vmem>>, vector<128x128xf32>
    %cst_137 = arith.constant dense<0.000000e+00> : vector<8x128xf32>
    %313 = tpu.matmul %264, %312, %cst_137 {dimension_numbers = #tpu.dot_dimension_numbers<[1], [0], [0], [1], [0, 0, 1, 1], [], []>} : vector<8x128xf32>, vector<128x128xf32>, vector<8x128xf32> -> vector<8x128xf32>
    %314 = arith.addf %311, %313 : vector<8x128xf32>
    %cst_138 = arith.constant 0.00257142866 : f32
    %315 = vector.broadcast %cst_138 : f32 to vector<8x128xf32>
    %316 = arith.mulf %302, %315 : vector<8x128xf32>
    %317 = arith.addf %297, %316 : vector<8x128xf32>
    %318 = arith.index_cast %283 : i32 to index
    %c0_139 = arith.constant 0 : index
    %319 = vector.load %arg17[%318, %c0_139] : memref<160x128xf32, #tpu.memory_space<vmem>>, vector<8x128xf32>
    tpu.vector_store %arg17[%318, %c0_139], %302 {strides = array<i32>} : memref<160x128xf32, #tpu.memory_space<vmem>>, vector<8x128xf32>,
    %c8_i32_140 = arith.constant 8 : i32
    %c8_i32_141 = arith.constant 8 : i32
    %320 = arith.muli %c8_i32_140, %c8_i32_141 : i32
    %321 = tpu.assume_multiple %320, 8 : i32
    %cst_142 = arith.constant 0.000000e+00 : f32
    %322 = vector.broadcast %cst_142 : f32 to vector<8x128xf32>
    %323 = arith.subf %322, %308 : vector<8x128xf32>
    %324 = arith.addf %323, %314 : vector<8x128xf32>
    %cst_143 = arith.constant 1.000000e-01 : f32
    %325 = vector.broadcast %cst_143 : f32 to vector<8x128xf32>
    %326 = arith.mulf %325, %324 : vector<8x128xf32>
    %327 = arith.addf %308, %326 : vector<8x128xf32>
    %cst_144 = arith.constant 2.000000e-01 : f32
    %328 = vector.broadcast %cst_144 : f32 to vector<8x128xf32>
    %329 = arith.mulf %328, %314 : vector<8x128xf32>
    %330 = arith.subf %314, %329 : vector<8x128xf32>
    %cst_145 = arith.constant 1.000000e+00 : f32
    %331 = vector.broadcast %cst_145 : f32 to vector<8x128xf32>
    %332 = arith.subf %331, %317 : vector<8x128xf32>
    %cst_146 = arith.constant 1.42857141E-6 : f32
    %333 = vector.broadcast %cst_146 : f32 to vector<8x128xf32>
    %334 = arith.mulf %333, %332 : vector<8x128xf32>
    %335 = arith.addf %317, %334 : vector<8x128xf32>
    %336 = arith.subf %327, %335 : vector<8x128xf32>
    %cst_147 = arith.constant 0.000000e+00 : f32
    %337 = vector.broadcast %cst_147 : f32 to vector<8x128xf32>
    %338 = arith.cmpf ogt, %336, %337 : vector<8x128xf32>
    %339 = arith.extui %338 : vector<8x128xi1> to vector<8x128xi32>
    %340 = arith.sitofp %339 : vector<8x128xi32> to vector<8x128xf32>
    %cst_148 = arith.constant 1.000000e+00 : f32
    %341 = vector.broadcast %cst_148 : f32 to vector<8x128xf32>
    %342 = arith.subf %341, %340 : vector<8x128xf32>
    %343 = arith.mulf %342, %327 : vector<8x128xf32>
    %cst_149 = arith.constant 0.000000e+00 : f32
    %344 = vector.broadcast %cst_149 : f32 to vector<8x128xf32>
    %345 = arith.mulf %340, %344 : vector<8x128xf32>
    %346 = arith.addf %343, %345 : vector<8x128xf32>
    %347 = arith.index_cast %321 : i32 to index
    %c0_150 = arith.constant 0 : index
    %348 = vector.load %arg16[%347, %c0_150] : memref<160x128xf32, #tpu.memory_space<vmem>>, vector<8x128xf32>
    %349 = arith.addf %330, %348 : vector<8x128xf32>
    %c0_151 = arith.constant 0 : index
    %c0_152 = arith.constant 0 : index
    %350 = vector.load %arg13[%c0_151, %c0_152] : memref<128x128xf32, #tpu.memory_space<vmem>>, vector<128x128xf32>
    %cst_153 = arith.constant dense<0.000000e+00> : vector<8x128xf32>
    %351 = tpu.matmul %302, %350, %cst_153 {dimension_numbers = #tpu.dot_dimension_numbers<[1], [0], [0], [1], [0, 0, 1, 1], [], []>} : vector<8x128xf32>, vector<128x128xf32>, vector<8x128xf32> -> vector<8x128xf32>
    %352 = arith.addf %349, %351 : vector<8x128xf32>
    %cst_154 = arith.constant 0.00257142866 : f32
    %353 = vector.broadcast %cst_154 : f32 to vector<8x128xf32>
    %354 = arith.mulf %340, %353 : vector<8x128xf32>
    %355 = arith.addf %335, %354 : vector<8x128xf32>
    %356 = arith.index_cast %321 : i32 to index
    %c0_155 = arith.constant 0 : index
    %357 = vector.load %arg17[%356, %c0_155] : memref<160x128xf32, #tpu.memory_space<vmem>>, vector<8x128xf32>
    tpu.vector_store %arg17[%356, %c0_155], %340 {strides = array<i32>} : memref<160x128xf32, #tpu.memory_space<vmem>>, vector<8x128xf32>,
    %c9_i32 = arith.constant 9 : i32
    %c8_i32_156 = arith.constant 8 : i32
    %358 = arith.muli %c9_i32, %c8_i32_156 : i32
    %359 = tpu.assume_multiple %358, 8 : i32
    %cst_157 = arith.constant 0.000000e+00 : f32
    %360 = vector.broadcast %cst_157 : f32 to vector<8x128xf32>
    %361 = arith.subf %360, %346 : vector<8x128xf32>
    %362 = arith.addf %361, %352 : vector<8x128xf32>
    %cst_158 = arith.constant 1.000000e-01 : f32
    %363 = vector.broadcast %cst_158 : f32 to vector<8x128xf32>
    %364 = arith.mulf %363, %362 : vector<8x128xf32>
    %365 = arith.addf %346, %364 : vector<8x128xf32>
    %cst_159 = arith.constant 2.000000e-01 : f32
    %366 = vector.broadcast %cst_159 : f32 to vector<8x128xf32>
    %367 = arith.mulf %366, %352 : vector<8x128xf32>
    %368 = arith.subf %352, %367 : vector<8x128xf32>
    %cst_160 = arith.constant 1.000000e+00 : f32
    %369 = vector.broadcast %cst_160 : f32 to vector<8x128xf32>
    %370 = arith.subf %369, %355 : vector<8x128xf32>
    %cst_161 = arith.constant 1.42857141E-6 : f32
    %371 = vector.broadcast %cst_161 : f32 to vector<8x128xf32>
    %372 = arith.mulf %371, %370 : vector<8x128xf32>
    %373 = arith.addf %355, %372 : vector<8x128xf32>
    %374 = arith.subf %365, %373 : vector<8x128xf32>
    %cst_162 = arith.constant 0.000000e+00 : f32
    %375 = vector.broadcast %cst_162 : f32 to vector<8x128xf32>
    %376 = arith.cmpf ogt, %374, %375 : vector<8x128xf32>
    %377 = arith.extui %376 : vector<8x128xi1> to vector<8x128xi32>
    %378 = arith.sitofp %377 : vector<8x128xi32> to vector<8x128xf32>
    %cst_163 = arith.constant 1.000000e+00 : f32
    %379 = vector.broadcast %cst_163 : f32 to vector<8x128xf32>
    %380 = arith.subf %379, %378 : vector<8x128xf32>
    %381 = arith.mulf %380, %365 : vector<8x128xf32>
    %cst_164 = arith.constant 0.000000e+00 : f32
    %382 = vector.broadcast %cst_164 : f32 to vector<8x128xf32>
    %383 = arith.mulf %378, %382 : vector<8x128xf32>
    %384 = arith.addf %381, %383 : vector<8x128xf32>
    %385 = arith.index_cast %359 : i32 to index
    %c0_165 = arith.constant 0 : index
    %386 = vector.load %arg16[%385, %c0_165] : memref<160x128xf32, #tpu.memory_space<vmem>>, vector<8x128xf32>
    %387 = arith.addf %368, %386 : vector<8x128xf32>
    %c0_166 = arith.constant 0 : index
    %c0_167 = arith.constant 0 : index
    %388 = vector.load %arg13[%c0_166, %c0_167] : memref<128x128xf32, #tpu.memory_space<vmem>>, vector<128x128xf32>
    %cst_168 = arith.constant dense<0.000000e+00> : vector<8x128xf32>
    %389 = tpu.matmul %340, %388, %cst_168 {dimension_numbers = #tpu.dot_dimension_numbers<[1], [0], [0], [1], [0, 0, 1, 1], [], []>} : vector<8x128xf32>, vector<128x128xf32>, vector<8x128xf32> -> vector<8x128xf32>
    %390 = arith.addf %387, %389 : vector<8x128xf32>
    %cst_169 = arith.constant 0.00257142866 : f32
    %391 = vector.broadcast %cst_169 : f32 to vector<8x128xf32>
    %392 = arith.mulf %378, %391 : vector<8x128xf32>
    %393 = arith.addf %373, %392 : vector<8x128xf32>
    %394 = arith.index_cast %359 : i32 to index
    %c0_170 = arith.constant 0 : index
    %395 = vector.load %arg17[%394, %c0_170] : memref<160x128xf32, #tpu.memory_space<vmem>>, vector<8x128xf32>
    tpu.vector_store %arg17[%394, %c0_170], %378 {strides = array<i32>} : memref<160x128xf32, #tpu.memory_space<vmem>>, vector<8x128xf32>,
    %c10_i32 = arith.constant 10 : i32
    %c8_i32_171 = arith.constant 8 : i32
    %396 = arith.muli %c10_i32, %c8_i32_171 : i32
    %397 = tpu.assume_multiple %396, 8 : i32
    %cst_172 = arith.constant 0.000000e+00 : f32
    %398 = vector.broadcast %cst_172 : f32 to vector<8x128xf32>
    %399 = arith.subf %398, %384 : vector<8x128xf32>
    %400 = arith.addf %399, %390 : vector<8x128xf32>
    %cst_173 = arith.constant 1.000000e-01 : f32
    %401 = vector.broadcast %cst_173 : f32 to vector<8x128xf32>
    %402 = arith.mulf %401, %400 : vector<8x128xf32>
    %403 = arith.addf %384, %402 : vector<8x128xf32>
    %cst_174 = arith.constant 2.000000e-01 : f32
    %404 = vector.broadcast %cst_174 : f32 to vector<8x128xf32>
    %405 = arith.mulf %404, %390 : vector<8x128xf32>
    %406 = arith.subf %390, %405 : vector<8x128xf32>
    %cst_175 = arith.constant 1.000000e+00 : f32
    %407 = vector.broadcast %cst_175 : f32 to vector<8x128xf32>
    %408 = arith.subf %407, %393 : vector<8x128xf32>
    %cst_176 = arith.constant 1.42857141E-6 : f32
    %409 = vector.broadcast %cst_176 : f32 to vector<8x128xf32>
    %410 = arith.mulf %409, %408 : vector<8x128xf32>
    %411 = arith.addf %393, %410 : vector<8x128xf32>
    %412 = arith.subf %403, %411 : vector<8x128xf32>
    %cst_177 = arith.constant 0.000000e+00 : f32
    %413 = vector.broadcast %cst_177 : f32 to vector<8x128xf32>
    %414 = arith.cmpf ogt, %412, %413 : vector<8x128xf32>
    %415 = arith.extui %414 : vector<8x128xi1> to vector<8x128xi32>
    %416 = arith.sitofp %415 : vector<8x128xi32> to vector<8x128xf32>
    %cst_178 = arith.constant 1.000000e+00 : f32
    %417 = vector.broadcast %cst_178 : f32 to vector<8x128xf32>
    %418 = arith.subf %417, %416 : vector<8x128xf32>
    %419 = arith.mulf %418, %403 : vector<8x128xf32>
    %cst_179 = arith.constant 0.000000e+00 : f32
    %420 = vector.broadcast %cst_179 : f32 to vector<8x128xf32>
    %421 = arith.mulf %416, %420 : vector<8x128xf32>
    %422 = arith.addf %419, %421 : vector<8x128xf32>
    %423 = arith.index_cast %397 : i32 to index
    %c0_180 = arith.constant 0 : index
    %424 = vector.load %arg16[%423, %c0_180] : memref<160x128xf32, #tpu.memory_space<vmem>>, vector<8x128xf32>
    %425 = arith.addf %406, %424 : vector<8x128xf32>
    %c0_181 = arith.constant 0 : index
    %c0_182 = arith.constant 0 : index
    %426 = vector.load %arg13[%c0_181, %c0_182] : memref<128x128xf32, #tpu.memory_space<vmem>>, vector<128x128xf32>
    %cst_183 = arith.constant dense<0.000000e+00> : vector<8x128xf32>
    %427 = tpu.matmul %378, %426, %cst_183 {dimension_numbers = #tpu.dot_dimension_numbers<[1], [0], [0], [1], [0, 0, 1, 1], [], []>} : vector<8x128xf32>, vector<128x128xf32>, vector<8x128xf32> -> vector<8x128xf32>
    %428 = arith.addf %425, %427 : vector<8x128xf32>
    %cst_184 = arith.constant 0.00257142866 : f32
    %429 = vector.broadcast %cst_184 : f32 to vector<8x128xf32>
    %430 = arith.mulf %416, %429 : vector<8x128xf32>
    %431 = arith.addf %411, %430 : vector<8x128xf32>
    %432 = arith.index_cast %397 : i32 to index
    %c0_185 = arith.constant 0 : index
    %433 = vector.load %arg17[%432, %c0_185] : memref<160x128xf32, #tpu.memory_space<vmem>>, vector<8x128xf32>
    tpu.vector_store %arg17[%432, %c0_185], %416 {strides = array<i32>} : memref<160x128xf32, #tpu.memory_space<vmem>>, vector<8x128xf32>,
    %c11_i32 = arith.constant 11 : i32
    %c8_i32_186 = arith.constant 8 : i32
    %434 = arith.muli %c11_i32, %c8_i32_186 : i32
    %435 = tpu.assume_multiple %434, 8 : i32
    %cst_187 = arith.constant 0.000000e+00 : f32
    %436 = vector.broadcast %cst_187 : f32 to vector<8x128xf32>
    %437 = arith.subf %436, %422 : vector<8x128xf32>
    %438 = arith.addf %437, %428 : vector<8x128xf32>
    %cst_188 = arith.constant 1.000000e-01 : f32
    %439 = vector.broadcast %cst_188 : f32 to vector<8x128xf32>
    %440 = arith.mulf %439, %438 : vector<8x128xf32>
    %441 = arith.addf %422, %440 : vector<8x128xf32>
    %cst_189 = arith.constant 2.000000e-01 : f32
    %442 = vector.broadcast %cst_189 : f32 to vector<8x128xf32>
    %443 = arith.mulf %442, %428 : vector<8x128xf32>
    %444 = arith.subf %428, %443 : vector<8x128xf32>
    %cst_190 = arith.constant 1.000000e+00 : f32
    %445 = vector.broadcast %cst_190 : f32 to vector<8x128xf32>
    %446 = arith.subf %445, %431 : vector<8x128xf32>
    %cst_191 = arith.constant 1.42857141E-6 : f32
    %447 = vector.broadcast %cst_191 : f32 to vector<8x128xf32>
    %448 = arith.mulf %447, %446 : vector<8x128xf32>
    %449 = arith.addf %431, %448 : vector<8x128xf32>
    %450 = arith.subf %441, %449 : vector<8x128xf32>
    %cst_192 = arith.constant 0.000000e+00 : f32
    %451 = vector.broadcast %cst_192 : f32 to vector<8x128xf32>
    %452 = arith.cmpf ogt, %450, %451 : vector<8x128xf32>
    %453 = arith.extui %452 : vector<8x128xi1> to vector<8x128xi32>
    %454 = arith.sitofp %453 : vector<8x128xi32> to vector<8x128xf32>
    %cst_193 = arith.constant 1.000000e+00 : f32
    %455 = vector.broadcast %cst_193 : f32 to vector<8x128xf32>
    %456 = arith.subf %455, %454 : vector<8x128xf32>
    %457 = arith.mulf %456, %441 : vector<8x128xf32>
    %cst_194 = arith.constant 0.000000e+00 : f32
    %458 = vector.broadcast %cst_194 : f32 to vector<8x128xf32>
    %459 = arith.mulf %454, %458 : vector<8x128xf32>
    %460 = arith.addf %457, %459 : vector<8x128xf32>
    %461 = arith.index_cast %435 : i32 to index
    %c0_195 = arith.constant 0 : index
    %462 = vector.load %arg16[%461, %c0_195] : memref<160x128xf32, #tpu.memory_space<vmem>>, vector<8x128xf32>
    %463 = arith.addf %444, %462 : vector<8x128xf32>
    %c0_196 = arith.constant 0 : index
    %c0_197 = arith.constant 0 : index
    %464 = vector.load %arg13[%c0_196, %c0_197] : memref<128x128xf32, #tpu.memory_space<vmem>>, vector<128x128xf32>
    %cst_198 = arith.constant dense<0.000000e+00> : vector<8x128xf32>
    %465 = tpu.matmul %416, %464, %cst_198 {dimension_numbers = #tpu.dot_dimension_numbers<[1], [0], [0], [1], [0, 0, 1, 1], [], []>} : vector<8x128xf32>, vector<128x128xf32>, vector<8x128xf32> -> vector<8x128xf32>
    %466 = arith.addf %463, %465 : vector<8x128xf32>
    %cst_199 = arith.constant 0.00257142866 : f32
    %467 = vector.broadcast %cst_199 : f32 to vector<8x128xf32>
    %468 = arith.mulf %454, %467 : vector<8x128xf32>
    %469 = arith.addf %449, %468 : vector<8x128xf32>
    %470 = arith.index_cast %435 : i32 to index
    %c0_200 = arith.constant 0 : index
    %471 = vector.load %arg17[%470, %c0_200] : memref<160x128xf32, #tpu.memory_space<vmem>>, vector<8x128xf32>
    tpu.vector_store %arg17[%470, %c0_200], %454 {strides = array<i32>} : memref<160x128xf32, #tpu.memory_space<vmem>>, vector<8x128xf32>,
    %c12_i32 = arith.constant 12 : i32
    %c8_i32_201 = arith.constant 8 : i32
    %472 = arith.muli %c12_i32, %c8_i32_201 : i32
    %473 = tpu.assume_multiple %472, 8 : i32
    %cst_202 = arith.constant 0.000000e+00 : f32
    %474 = vector.broadcast %cst_202 : f32 to vector<8x128xf32>
    %475 = arith.subf %474, %460 : vector<8x128xf32>
    %476 = arith.addf %475, %466 : vector<8x128xf32>
    %cst_203 = arith.constant 1.000000e-01 : f32
    %477 = vector.broadcast %cst_203 : f32 to vector<8x128xf32>
    %478 = arith.mulf %477, %476 : vector<8x128xf32>
    %479 = arith.addf %460, %478 : vector<8x128xf32>
    %cst_204 = arith.constant 2.000000e-01 : f32
    %480 = vector.broadcast %cst_204 : f32 to vector<8x128xf32>
    %481 = arith.mulf %480, %466 : vector<8x128xf32>
    %482 = arith.subf %466, %481 : vector<8x128xf32>
    %cst_205 = arith.constant 1.000000e+00 : f32
    %483 = vector.broadcast %cst_205 : f32 to vector<8x128xf32>
    %484 = arith.subf %483, %469 : vector<8x128xf32>
    %cst_206 = arith.constant 1.42857141E-6 : f32
    %485 = vector.broadcast %cst_206 : f32 to vector<8x128xf32>
    %486 = arith.mulf %485, %484 : vector<8x128xf32>
    %487 = arith.addf %469, %486 : vector<8x128xf32>
    %488 = arith.subf %479, %487 : vector<8x128xf32>
    %cst_207 = arith.constant 0.000000e+00 : f32
    %489 = vector.broadcast %cst_207 : f32 to vector<8x128xf32>
    %490 = arith.cmpf ogt, %488, %489 : vector<8x128xf32>
    %491 = arith.extui %490 : vector<8x128xi1> to vector<8x128xi32>
    %492 = arith.sitofp %491 : vector<8x128xi32> to vector<8x128xf32>
    %cst_208 = arith.constant 1.000000e+00 : f32
    %493 = vector.broadcast %cst_208 : f32 to vector<8x128xf32>
    %494 = arith.subf %493, %492 : vector<8x128xf32>
    %495 = arith.mulf %494, %479 : vector<8x128xf32>
    %cst_209 = arith.constant 0.000000e+00 : f32
    %496 = vector.broadcast %cst_209 : f32 to vector<8x128xf32>
    %497 = arith.mulf %492, %496 : vector<8x128xf32>
    %498 = arith.addf %495, %497 : vector<8x128xf32>
    %499 = arith.index_cast %473 : i32 to index
    %c0_210 = arith.constant 0 : index
    %500 = vector.load %arg16[%499, %c0_210] : memref<160x128xf32, #tpu.memory_space<vmem>>, vector<8x128xf32>
    %501 = arith.addf %482, %500 : vector<8x128xf32>
    %c0_211 = arith.constant 0 : index
    %c0_212 = arith.constant 0 : index
    %502 = vector.load %arg13[%c0_211, %c0_212] : memref<128x128xf32, #tpu.memory_space<vmem>>, vector<128x128xf32>
    %cst_213 = arith.constant dense<0.000000e+00> : vector<8x128xf32>
    %503 = tpu.matmul %454, %502, %cst_213 {dimension_numbers = #tpu.dot_dimension_numbers<[1], [0], [0], [1], [0, 0, 1, 1], [], []>} : vector<8x128xf32>, vector<128x128xf32>, vector<8x128xf32> -> vector<8x128xf32>
    %504 = arith.addf %501, %503 : vector<8x128xf32>
    %cst_214 = arith.constant 0.00257142866 : f32
    %505 = vector.broadcast %cst_214 : f32 to vector<8x128xf32>
    %506 = arith.mulf %492, %505 : vector<8x128xf32>
    %507 = arith.addf %487, %506 : vector<8x128xf32>
    %508 = arith.index_cast %473 : i32 to index
    %c0_215 = arith.constant 0 : index
    %509 = vector.load %arg17[%508, %c0_215] : memref<160x128xf32, #tpu.memory_space<vmem>>, vector<8x128xf32>
    tpu.vector_store %arg17[%508, %c0_215], %492 {strides = array<i32>} : memref<160x128xf32, #tpu.memory_space<vmem>>, vector<8x128xf32>,
    %c13_i32 = arith.constant 13 : i32
    %c8_i32_216 = arith.constant 8 : i32
    %510 = arith.muli %c13_i32, %c8_i32_216 : i32
    %511 = tpu.assume_multiple %510, 8 : i32
    %cst_217 = arith.constant 0.000000e+00 : f32
    %512 = vector.broadcast %cst_217 : f32 to vector<8x128xf32>
    %513 = arith.subf %512, %498 : vector<8x128xf32>
    %514 = arith.addf %513, %504 : vector<8x128xf32>
    %cst_218 = arith.constant 1.000000e-01 : f32
    %515 = vector.broadcast %cst_218 : f32 to vector<8x128xf32>
    %516 = arith.mulf %515, %514 : vector<8x128xf32>
    %517 = arith.addf %498, %516 : vector<8x128xf32>
    %cst_219 = arith.constant 2.000000e-01 : f32
    %518 = vector.broadcast %cst_219 : f32 to vector<8x128xf32>
    %519 = arith.mulf %518, %504 : vector<8x128xf32>
    %520 = arith.subf %504, %519 : vector<8x128xf32>
    %cst_220 = arith.constant 1.000000e+00 : f32
    %521 = vector.broadcast %cst_220 : f32 to vector<8x128xf32>
    %522 = arith.subf %521, %507 : vector<8x128xf32>
    %cst_221 = arith.constant 1.42857141E-6 : f32
    %523 = vector.broadcast %cst_221 : f32 to vector<8x128xf32>
    %524 = arith.mulf %523, %522 : vector<8x128xf32>
    %525 = arith.addf %507, %524 : vector<8x128xf32>
    %526 = arith.subf %517, %525 : vector<8x128xf32>
    %cst_222 = arith.constant 0.000000e+00 : f32
    %527 = vector.broadcast %cst_222 : f32 to vector<8x128xf32>
    %528 = arith.cmpf ogt, %526, %527 : vector<8x128xf32>
    %529 = arith.extui %528 : vector<8x128xi1> to vector<8x128xi32>
    %530 = arith.sitofp %529 : vector<8x128xi32> to vector<8x128xf32>
    %cst_223 = arith.constant 1.000000e+00 : f32
    %531 = vector.broadcast %cst_223 : f32 to vector<8x128xf32>
    %532 = arith.subf %531, %530 : vector<8x128xf32>
    %533 = arith.mulf %532, %517 : vector<8x128xf32>
    %cst_224 = arith.constant 0.000000e+00 : f32
    %534 = vector.broadcast %cst_224 : f32 to vector<8x128xf32>
    %535 = arith.mulf %530, %534 : vector<8x128xf32>
    %536 = arith.addf %533, %535 : vector<8x128xf32>
    %537 = arith.index_cast %511 : i32 to index
    %c0_225 = arith.constant 0 : index
    %538 = vector.load %arg16[%537, %c0_225] : memref<160x128xf32, #tpu.memory_space<vmem>>, vector<8x128xf32>
    %539 = arith.addf %520, %538 : vector<8x128xf32>
    %c0_226 = arith.constant 0 : index
    %c0_227 = arith.constant 0 : index
    %540 = vector.load %arg13[%c0_226, %c0_227] : memref<128x128xf32, #tpu.memory_space<vmem>>, vector<128x128xf32>
    %cst_228 = arith.constant dense<0.000000e+00> : vector<8x128xf32>
    %541 = tpu.matmul %492, %540, %cst_228 {dimension_numbers = #tpu.dot_dimension_numbers<[1], [0], [0], [1], [0, 0, 1, 1], [], []>} : vector<8x128xf32>, vector<128x128xf32>, vector<8x128xf32> -> vector<8x128xf32>
    %542 = arith.addf %539, %541 : vector<8x128xf32>
    %cst_229 = arith.constant 0.00257142866 : f32
    %543 = vector.broadcast %cst_229 : f32 to vector<8x128xf32>
    %544 = arith.mulf %530, %543 : vector<8x128xf32>
    %545 = arith.addf %525, %544 : vector<8x128xf32>
    %546 = arith.index_cast %511 : i32 to index
    %c0_230 = arith.constant 0 : index
    %547 = vector.load %arg17[%546, %c0_230] : memref<160x128xf32, #tpu.memory_space<vmem>>, vector<8x128xf32>
    tpu.vector_store %arg17[%546, %c0_230], %530 {strides = array<i32>} : memref<160x128xf32, #tpu.memory_space<vmem>>, vector<8x128xf32>,
    %c14_i32 = arith.constant 14 : i32
    %c8_i32_231 = arith.constant 8 : i32
    %548 = arith.muli %c14_i32, %c8_i32_231 : i32
    %549 = tpu.assume_multiple %548, 8 : i32
    %cst_232 = arith.constant 0.000000e+00 : f32
    %550 = vector.broadcast %cst_232 : f32 to vector<8x128xf32>
    %551 = arith.subf %550, %536 : vector<8x128xf32>
    %552 = arith.addf %551, %542 : vector<8x128xf32>
    %cst_233 = arith.constant 1.000000e-01 : f32
    %553 = vector.broadcast %cst_233 : f32 to vector<8x128xf32>
    %554 = arith.mulf %553, %552 : vector<8x128xf32>
    %555 = arith.addf %536, %554 : vector<8x128xf32>
    %cst_234 = arith.constant 2.000000e-01 : f32
    %556 = vector.broadcast %cst_234 : f32 to vector<8x128xf32>
    %557 = arith.mulf %556, %542 : vector<8x128xf32>
    %558 = arith.subf %542, %557 : vector<8x128xf32>
    %cst_235 = arith.constant 1.000000e+00 : f32
    %559 = vector.broadcast %cst_235 : f32 to vector<8x128xf32>
    %560 = arith.subf %559, %545 : vector<8x128xf32>
    %cst_236 = arith.constant 1.42857141E-6 : f32
    %561 = vector.broadcast %cst_236 : f32 to vector<8x128xf32>
    %562 = arith.mulf %561, %560 : vector<8x128xf32>
    %563 = arith.addf %545, %562 : vector<8x128xf32>
    %564 = arith.subf %555, %563 : vector<8x128xf32>
    %cst_237 = arith.constant 0.000000e+00 : f32
    %565 = vector.broadcast %cst_237 : f32 to vector<8x128xf32>
    %566 = arith.cmpf ogt, %564, %565 : vector<8x128xf32>
    %567 = arith.extui %566 : vector<8x128xi1> to vector<8x128xi32>
    %568 = arith.sitofp %567 : vector<8x128xi32> to vector<8x128xf32>
    %cst_238 = arith.constant 1.000000e+00 : f32
    %569 = vector.broadcast %cst_238 : f32 to vector<8x128xf32>
    %570 = arith.subf %569, %568 : vector<8x128xf32>
    %571 = arith.mulf %570, %555 : vector<8x128xf32>
    %cst_239 = arith.constant 0.000000e+00 : f32
    %572 = vector.broadcast %cst_239 : f32 to vector<8x128xf32>
    %573 = arith.mulf %568, %572 : vector<8x128xf32>
    %574 = arith.addf %571, %573 : vector<8x128xf32>
    %575 = arith.index_cast %549 : i32 to index
    %c0_240 = arith.constant 0 : index
    %576 = vector.load %arg16[%575, %c0_240] : memref<160x128xf32, #tpu.memory_space<vmem>>, vector<8x128xf32>
    %577 = arith.addf %558, %576 : vector<8x128xf32>
    %c0_241 = arith.constant 0 : index
    %c0_242 = arith.constant 0 : index
    %578 = vector.load %arg13[%c0_241, %c0_242] : memref<128x128xf32, #tpu.memory_space<vmem>>, vector<128x128xf32>
    %cst_243 = arith.constant dense<0.000000e+00> : vector<8x128xf32>
    %579 = tpu.matmul %530, %578, %cst_243 {dimension_numbers = #tpu.dot_dimension_numbers<[1], [0], [0], [1], [0, 0, 1, 1], [], []>} : vector<8x128xf32>, vector<128x128xf32>, vector<8x128xf32> -> vector<8x128xf32>
    %580 = arith.addf %577, %579 : vector<8x128xf32>
    %cst_244 = arith.constant 0.00257142866 : f32
    %581 = vector.broadcast %cst_244 : f32 to vector<8x128xf32>
    %582 = arith.mulf %568, %581 : vector<8x128xf32>
    %583 = arith.addf %563, %582 : vector<8x128xf32>
    %584 = arith.index_cast %549 : i32 to index
    %c0_245 = arith.constant 0 : index
    %585 = vector.load %arg17[%584, %c0_245] : memref<160x128xf32, #tpu.memory_space<vmem>>, vector<8x128xf32>
    tpu.vector_store %arg17[%584, %c0_245], %568 {strides = array<i32>} : memref<160x128xf32, #tpu.memory_space<vmem>>, vector<8x128xf32>,
    %c15_i32 = arith.constant 15 : i32
    %c8_i32_246 = arith.constant 8 : i32
    %586 = arith.muli %c15_i32, %c8_i32_246 : i32
    %587 = tpu.assume_multiple %586, 8 : i32
    %cst_247 = arith.constant 0.000000e+00 : f32
    %588 = vector.broadcast %cst_247 : f32 to vector<8x128xf32>
    %589 = arith.subf %588, %574 : vector<8x128xf32>
    %590 = arith.addf %589, %580 : vector<8x128xf32>
    %cst_248 = arith.constant 1.000000e-01 : f32
    %591 = vector.broadcast %cst_248 : f32 to vector<8x128xf32>
    %592 = arith.mulf %591, %590 : vector<8x128xf32>
    %593 = arith.addf %574, %592 : vector<8x128xf32>
    %cst_249 = arith.constant 2.000000e-01 : f32
    %594 = vector.broadcast %cst_249 : f32 to vector<8x128xf32>
    %595 = arith.mulf %594, %580 : vector<8x128xf32>
    %596 = arith.subf %580, %595 : vector<8x128xf32>
    %cst_250 = arith.constant 1.000000e+00 : f32
    %597 = vector.broadcast %cst_250 : f32 to vector<8x128xf32>
    %598 = arith.subf %597, %583 : vector<8x128xf32>
    %cst_251 = arith.constant 1.42857141E-6 : f32
    %599 = vector.broadcast %cst_251 : f32 to vector<8x128xf32>
    %600 = arith.mulf %599, %598 : vector<8x128xf32>
    %601 = arith.addf %583, %600 : vector<8x128xf32>
    %602 = arith.subf %593, %601 : vector<8x128xf32>
    %cst_252 = arith.constant 0.000000e+00 : f32
    %603 = vector.broadcast %cst_252 : f32 to vector<8x128xf32>
    %604 = arith.cmpf ogt, %602, %603 : vector<8x128xf32>
    %605 = arith.extui %604 : vector<8x128xi1> to vector<8x128xi32>
    %606 = arith.sitofp %605 : vector<8x128xi32> to vector<8x128xf32>
    %cst_253 = arith.constant 1.000000e+00 : f32
    %607 = vector.broadcast %cst_253 : f32 to vector<8x128xf32>
    %608 = arith.subf %607, %606 : vector<8x128xf32>
    %609 = arith.mulf %608, %593 : vector<8x128xf32>
    %cst_254 = arith.constant 0.000000e+00 : f32
    %610 = vector.broadcast %cst_254 : f32 to vector<8x128xf32>
    %611 = arith.mulf %606, %610 : vector<8x128xf32>
    %612 = arith.addf %609, %611 : vector<8x128xf32>
    %613 = arith.index_cast %587 : i32 to index
    %c0_255 = arith.constant 0 : index
    %614 = vector.load %arg16[%613, %c0_255] : memref<160x128xf32, #tpu.memory_space<vmem>>, vector<8x128xf32>
    %615 = arith.addf %596, %614 : vector<8x128xf32>
    %c0_256 = arith.constant 0 : index
    %c0_257 = arith.constant 0 : index
    %616 = vector.load %arg13[%c0_256, %c0_257] : memref<128x128xf32, #tpu.memory_space<vmem>>, vector<128x128xf32>
    %cst_258 = arith.constant dense<0.000000e+00> : vector<8x128xf32>
    %617 = tpu.matmul %568, %616, %cst_258 {dimension_numbers = #tpu.dot_dimension_numbers<[1], [0], [0], [1], [0, 0, 1, 1], [], []>} : vector<8x128xf32>, vector<128x128xf32>, vector<8x128xf32> -> vector<8x128xf32>
    %618 = arith.addf %615, %617 : vector<8x128xf32>
    %cst_259 = arith.constant 0.00257142866 : f32
    %619 = vector.broadcast %cst_259 : f32 to vector<8x128xf32>
    %620 = arith.mulf %606, %619 : vector<8x128xf32>
    %621 = arith.addf %601, %620 : vector<8x128xf32>
    %622 = arith.index_cast %587 : i32 to index
    %c0_260 = arith.constant 0 : index
    %623 = vector.load %arg17[%622, %c0_260] : memref<160x128xf32, #tpu.memory_space<vmem>>, vector<8x128xf32>
    tpu.vector_store %arg17[%622, %c0_260], %606 {strides = array<i32>} : memref<160x128xf32, #tpu.memory_space<vmem>>, vector<8x128xf32>,
    %c16_i32 = arith.constant 16 : i32
    %c8_i32_261 = arith.constant 8 : i32
    %624 = arith.muli %c16_i32, %c8_i32_261 : i32
    %625 = tpu.assume_multiple %624, 8 : i32
    %cst_262 = arith.constant 0.000000e+00 : f32
    %626 = vector.broadcast %cst_262 : f32 to vector<8x128xf32>
    %627 = arith.subf %626, %612 : vector<8x128xf32>
    %628 = arith.addf %627, %618 : vector<8x128xf32>
    %cst_263 = arith.constant 1.000000e-01 : f32
    %629 = vector.broadcast %cst_263 : f32 to vector<8x128xf32>
    %630 = arith.mulf %629, %628 : vector<8x128xf32>
    %631 = arith.addf %612, %630 : vector<8x128xf32>
    %cst_264 = arith.constant 2.000000e-01 : f32
    %632 = vector.broadcast %cst_264 : f32 to vector<8x128xf32>
    %633 = arith.mulf %632, %618 : vector<8x128xf32>
    %634 = arith.subf %618, %633 : vector<8x128xf32>
    %cst_265 = arith.constant 1.000000e+00 : f32
    %635 = vector.broadcast %cst_265 : f32 to vector<8x128xf32>
    %636 = arith.subf %635, %621 : vector<8x128xf32>
    %cst_266 = arith.constant 1.42857141E-6 : f32
    %637 = vector.broadcast %cst_266 : f32 to vector<8x128xf32>
    %638 = arith.mulf %637, %636 : vector<8x128xf32>
    %639 = arith.addf %621, %638 : vector<8x128xf32>
    %640 = arith.subf %631, %639 : vector<8x128xf32>
    %cst_267 = arith.constant 0.000000e+00 : f32
    %641 = vector.broadcast %cst_267 : f32 to vector<8x128xf32>
    %642 = arith.cmpf ogt, %640, %641 : vector<8x128xf32>
    %643 = arith.extui %642 : vector<8x128xi1> to vector<8x128xi32>
    %644 = arith.sitofp %643 : vector<8x128xi32> to vector<8x128xf32>
    %cst_268 = arith.constant 1.000000e+00 : f32
    %645 = vector.broadcast %cst_268 : f32 to vector<8x128xf32>
    %646 = arith.subf %645, %644 : vector<8x128xf32>
    %647 = arith.mulf %646, %631 : vector<8x128xf32>
    %cst_269 = arith.constant 0.000000e+00 : f32
    %648 = vector.broadcast %cst_269 : f32 to vector<8x128xf32>
    %649 = arith.mulf %644, %648 : vector<8x128xf32>
    %650 = arith.addf %647, %649 : vector<8x128xf32>
    %651 = arith.index_cast %625 : i32 to index
    %c0_270 = arith.constant 0 : index
    %652 = vector.load %arg16[%651, %c0_270] : memref<160x128xf32, #tpu.memory_space<vmem>>, vector<8x128xf32>
    %653 = arith.addf %634, %652 : vector<8x128xf32>
    %c0_271 = arith.constant 0 : index
    %c0_272 = arith.constant 0 : index
    %654 = vector.load %arg13[%c0_271, %c0_272] : memref<128x128xf32, #tpu.memory_space<vmem>>, vector<128x128xf32>
    %cst_273 = arith.constant dense<0.000000e+00> : vector<8x128xf32>
    %655 = tpu.matmul %606, %654, %cst_273 {dimension_numbers = #tpu.dot_dimension_numbers<[1], [0], [0], [1], [0, 0, 1, 1], [], []>} : vector<8x128xf32>, vector<128x128xf32>, vector<8x128xf32> -> vector<8x128xf32>
    %656 = arith.addf %653, %655 : vector<8x128xf32>
    %cst_274 = arith.constant 0.00257142866 : f32
    %657 = vector.broadcast %cst_274 : f32 to vector<8x128xf32>
    %658 = arith.mulf %644, %657 : vector<8x128xf32>
    %659 = arith.addf %639, %658 : vector<8x128xf32>
    %660 = arith.index_cast %625 : i32 to index
    %c0_275 = arith.constant 0 : index
    %661 = vector.load %arg17[%660, %c0_275] : memref<160x128xf32, #tpu.memory_space<vmem>>, vector<8x128xf32>
    tpu.vector_store %arg17[%660, %c0_275], %644 {strides = array<i32>} : memref<160x128xf32, #tpu.memory_space<vmem>>, vector<8x128xf32>,
    %c17_i32 = arith.constant 17 : i32
    %c8_i32_276 = arith.constant 8 : i32
    %662 = arith.muli %c17_i32, %c8_i32_276 : i32
    %663 = tpu.assume_multiple %662, 8 : i32
    %cst_277 = arith.constant 0.000000e+00 : f32
    %664 = vector.broadcast %cst_277 : f32 to vector<8x128xf32>
    %665 = arith.subf %664, %650 : vector<8x128xf32>
    %666 = arith.addf %665, %656 : vector<8x128xf32>
    %cst_278 = arith.constant 1.000000e-01 : f32
    %667 = vector.broadcast %cst_278 : f32 to vector<8x128xf32>
    %668 = arith.mulf %667, %666 : vector<8x128xf32>
    %669 = arith.addf %650, %668 : vector<8x128xf32>
    %cst_279 = arith.constant 2.000000e-01 : f32
    %670 = vector.broadcast %cst_279 : f32 to vector<8x128xf32>
    %671 = arith.mulf %670, %656 : vector<8x128xf32>
    %672 = arith.subf %656, %671 : vector<8x128xf32>
    %cst_280 = arith.constant 1.000000e+00 : f32
    %673 = vector.broadcast %cst_280 : f32 to vector<8x128xf32>
    %674 = arith.subf %673, %659 : vector<8x128xf32>
    %cst_281 = arith.constant 1.42857141E-6 : f32
    %675 = vector.broadcast %cst_281 : f32 to vector<8x128xf32>
    %676 = arith.mulf %675, %674 : vector<8x128xf32>
    %677 = arith.addf %659, %676 : vector<8x128xf32>
    %678 = arith.subf %669, %677 : vector<8x128xf32>
    %cst_282 = arith.constant 0.000000e+00 : f32
    %679 = vector.broadcast %cst_282 : f32 to vector<8x128xf32>
    %680 = arith.cmpf ogt, %678, %679 : vector<8x128xf32>
    %681 = arith.extui %680 : vector<8x128xi1> to vector<8x128xi32>
    %682 = arith.sitofp %681 : vector<8x128xi32> to vector<8x128xf32>
    %cst_283 = arith.constant 1.000000e+00 : f32
    %683 = vector.broadcast %cst_283 : f32 to vector<8x128xf32>
    %684 = arith.subf %683, %682 : vector<8x128xf32>
    %685 = arith.mulf %684, %669 : vector<8x128xf32>
    %cst_284 = arith.constant 0.000000e+00 : f32
    %686 = vector.broadcast %cst_284 : f32 to vector<8x128xf32>
    %687 = arith.mulf %682, %686 : vector<8x128xf32>
    %688 = arith.addf %685, %687 : vector<8x128xf32>
    %689 = arith.index_cast %663 : i32 to index
    %c0_285 = arith.constant 0 : index
    %690 = vector.load %arg16[%689, %c0_285] : memref<160x128xf32, #tpu.memory_space<vmem>>, vector<8x128xf32>
    %691 = arith.addf %672, %690 : vector<8x128xf32>
    %c0_286 = arith.constant 0 : index
    %c0_287 = arith.constant 0 : index
    %692 = vector.load %arg13[%c0_286, %c0_287] : memref<128x128xf32, #tpu.memory_space<vmem>>, vector<128x128xf32>
    %cst_288 = arith.constant dense<0.000000e+00> : vector<8x128xf32>
    %693 = tpu.matmul %644, %692, %cst_288 {dimension_numbers = #tpu.dot_dimension_numbers<[1], [0], [0], [1], [0, 0, 1, 1], [], []>} : vector<8x128xf32>, vector<128x128xf32>, vector<8x128xf32> -> vector<8x128xf32>
    %694 = arith.addf %691, %693 : vector<8x128xf32>
    %cst_289 = arith.constant 0.00257142866 : f32
    %695 = vector.broadcast %cst_289 : f32 to vector<8x128xf32>
    %696 = arith.mulf %682, %695 : vector<8x128xf32>
    %697 = arith.addf %677, %696 : vector<8x128xf32>
    %698 = arith.index_cast %663 : i32 to index
    %c0_290 = arith.constant 0 : index
    %699 = vector.load %arg17[%698, %c0_290] : memref<160x128xf32, #tpu.memory_space<vmem>>, vector<8x128xf32>
    tpu.vector_store %arg17[%698, %c0_290], %682 {strides = array<i32>} : memref<160x128xf32, #tpu.memory_space<vmem>>, vector<8x128xf32>,
    %c18_i32 = arith.constant 18 : i32
    %c8_i32_291 = arith.constant 8 : i32
    %700 = arith.muli %c18_i32, %c8_i32_291 : i32
    %701 = tpu.assume_multiple %700, 8 : i32
    %cst_292 = arith.constant 0.000000e+00 : f32
    %702 = vector.broadcast %cst_292 : f32 to vector<8x128xf32>
    %703 = arith.subf %702, %688 : vector<8x128xf32>
    %704 = arith.addf %703, %694 : vector<8x128xf32>
    %cst_293 = arith.constant 1.000000e-01 : f32
    %705 = vector.broadcast %cst_293 : f32 to vector<8x128xf32>
    %706 = arith.mulf %705, %704 : vector<8x128xf32>
    %707 = arith.addf %688, %706 : vector<8x128xf32>
    %cst_294 = arith.constant 2.000000e-01 : f32
    %708 = vector.broadcast %cst_294 : f32 to vector<8x128xf32>
    %709 = arith.mulf %708, %694 : vector<8x128xf32>
    %710 = arith.subf %694, %709 : vector<8x128xf32>
    %cst_295 = arith.constant 1.000000e+00 : f32
    %711 = vector.broadcast %cst_295 : f32 to vector<8x128xf32>
    %712 = arith.subf %711, %697 : vector<8x128xf32>
    %cst_296 = arith.constant 1.42857141E-6 : f32
    %713 = vector.broadcast %cst_296 : f32 to vector<8x128xf32>
    %714 = arith.mulf %713, %712 : vector<8x128xf32>
    %715 = arith.addf %697, %714 : vector<8x128xf32>
    %716 = arith.subf %707, %715 : vector<8x128xf32>
    %cst_297 = arith.constant 0.000000e+00 : f32
    %717 = vector.broadcast %cst_297 : f32 to vector<8x128xf32>
    %718 = arith.cmpf ogt, %716, %717 : vector<8x128xf32>
    %719 = arith.extui %718 : vector<8x128xi1> to vector<8x128xi32>
    %720 = arith.sitofp %719 : vector<8x128xi32> to vector<8x128xf32>
    %cst_298 = arith.constant 1.000000e+00 : f32
    %721 = vector.broadcast %cst_298 : f32 to vector<8x128xf32>
    %722 = arith.subf %721, %720 : vector<8x128xf32>
    %723 = arith.mulf %722, %707 : vector<8x128xf32>
    %cst_299 = arith.constant 0.000000e+00 : f32
    %724 = vector.broadcast %cst_299 : f32 to vector<8x128xf32>
    %725 = arith.mulf %720, %724 : vector<8x128xf32>
    %726 = arith.addf %723, %725 : vector<8x128xf32>
    %727 = arith.index_cast %701 : i32 to index
    %c0_300 = arith.constant 0 : index
    %728 = vector.load %arg16[%727, %c0_300] : memref<160x128xf32, #tpu.memory_space<vmem>>, vector<8x128xf32>
    %729 = arith.addf %710, %728 : vector<8x128xf32>
    %c0_301 = arith.constant 0 : index
    %c0_302 = arith.constant 0 : index
    %730 = vector.load %arg13[%c0_301, %c0_302] : memref<128x128xf32, #tpu.memory_space<vmem>>, vector<128x128xf32>
    %cst_303 = arith.constant dense<0.000000e+00> : vector<8x128xf32>
    %731 = tpu.matmul %682, %730, %cst_303 {dimension_numbers = #tpu.dot_dimension_numbers<[1], [0], [0], [1], [0, 0, 1, 1], [], []>} : vector<8x128xf32>, vector<128x128xf32>, vector<8x128xf32> -> vector<8x128xf32>
    %732 = arith.addf %729, %731 : vector<8x128xf32>
    %cst_304 = arith.constant 0.00257142866 : f32
    %733 = vector.broadcast %cst_304 : f32 to vector<8x128xf32>
    %734 = arith.mulf %720, %733 : vector<8x128xf32>
    %735 = arith.addf %715, %734 : vector<8x128xf32>
    %736 = arith.index_cast %701 : i32 to index
    %c0_305 = arith.constant 0 : index
    %737 = vector.load %arg17[%736, %c0_305] : memref<160x128xf32, #tpu.memory_space<vmem>>, vector<8x128xf32>
    tpu.vector_store %arg17[%736, %c0_305], %720 {strides = array<i32>} : memref<160x128xf32, #tpu.memory_space<vmem>>, vector<8x128xf32>,
    %c19_i32 = arith.constant 19 : i32
    %c8_i32_306 = arith.constant 8 : i32
    %738 = arith.muli %c19_i32, %c8_i32_306 : i32
    %739 = tpu.assume_multiple %738, 8 : i32
    %cst_307 = arith.constant 0.000000e+00 : f32
    %740 = vector.broadcast %cst_307 : f32 to vector<8x128xf32>
    %741 = arith.subf %740, %726 : vector<8x128xf32>
    %742 = arith.addf %741, %732 : vector<8x128xf32>
    %cst_308 = arith.constant 1.000000e-01 : f32
    %743 = vector.broadcast %cst_308 : f32 to vector<8x128xf32>
    %744 = arith.mulf %743, %742 : vector<8x128xf32>
    %745 = arith.addf %726, %744 : vector<8x128xf32>
    %cst_309 = arith.constant 2.000000e-01 : f32
    %746 = vector.broadcast %cst_309 : f32 to vector<8x128xf32>
    %747 = arith.mulf %746, %732 : vector<8x128xf32>
    %748 = arith.subf %732, %747 : vector<8x128xf32>
    %cst_310 = arith.constant 1.000000e+00 : f32
    %749 = vector.broadcast %cst_310 : f32 to vector<8x128xf32>
    %750 = arith.subf %749, %735 : vector<8x128xf32>
    %cst_311 = arith.constant 1.42857141E-6 : f32
    %751 = vector.broadcast %cst_311 : f32 to vector<8x128xf32>
    %752 = arith.mulf %751, %750 : vector<8x128xf32>
    %753 = arith.addf %735, %752 : vector<8x128xf32>
    %754 = arith.subf %745, %753 : vector<8x128xf32>
    %cst_312 = arith.constant 0.000000e+00 : f32
    %755 = vector.broadcast %cst_312 : f32 to vector<8x128xf32>
    %756 = arith.cmpf ogt, %754, %755 : vector<8x128xf32>
    %757 = arith.extui %756 : vector<8x128xi1> to vector<8x128xi32>
    %758 = arith.sitofp %757 : vector<8x128xi32> to vector<8x128xf32>
    %cst_313 = arith.constant 1.000000e+00 : f32
    %759 = vector.broadcast %cst_313 : f32 to vector<8x128xf32>
    %760 = arith.subf %759, %758 : vector<8x128xf32>
    %761 = arith.mulf %760, %745 : vector<8x128xf32>
    %cst_314 = arith.constant 0.000000e+00 : f32
    %762 = vector.broadcast %cst_314 : f32 to vector<8x128xf32>
    %763 = arith.mulf %758, %762 : vector<8x128xf32>
    %764 = arith.addf %761, %763 : vector<8x128xf32>
    %765 = arith.index_cast %739 : i32 to index
    %c0_315 = arith.constant 0 : index
    %766 = vector.load %arg16[%765, %c0_315] : memref<160x128xf32, #tpu.memory_space<vmem>>, vector<8x128xf32>
    %767 = arith.addf %748, %766 : vector<8x128xf32>
    %c0_316 = arith.constant 0 : index
    %c0_317 = arith.constant 0 : index
    %768 = vector.load %arg13[%c0_316, %c0_317] : memref<128x128xf32, #tpu.memory_space<vmem>>, vector<128x128xf32>
    %cst_318 = arith.constant dense<0.000000e+00> : vector<8x128xf32>
    %769 = tpu.matmul %720, %768, %cst_318 {dimension_numbers = #tpu.dot_dimension_numbers<[1], [0], [0], [1], [0, 0, 1, 1], [], []>} : vector<8x128xf32>, vector<128x128xf32>, vector<8x128xf32> -> vector<8x128xf32>
    %770 = arith.addf %767, %769 : vector<8x128xf32>
    %cst_319 = arith.constant 0.00257142866 : f32
    %771 = vector.broadcast %cst_319 : f32 to vector<8x128xf32>
    %772 = arith.mulf %758, %771 : vector<8x128xf32>
    %773 = arith.addf %753, %772 : vector<8x128xf32>
    %774 = arith.index_cast %739 : i32 to index
    %c0_320 = arith.constant 0 : index
    %775 = vector.load %arg17[%774, %c0_320] : memref<160x128xf32, #tpu.memory_space<vmem>>, vector<8x128xf32>
    tpu.vector_store %arg17[%774, %c0_320], %758 {strides = array<i32>} : memref<160x128xf32, #tpu.memory_space<vmem>>, vector<8x128xf32>,
    %c20_i32 = arith.constant 20 : i32
    %c0_321 = arith.constant 0 : index
    %c0_322 = arith.constant 0 : index
    %c0_323 = arith.constant 0 : index
    %776 = vector.load %arg8[%c0_321, %c0_322, %c0_323] : memref<1x8x128xf32, #tpu.memory_space<vmem>>, vector<1x8x128xf32>
    %777 = vector.shape_cast %776 : vector<1x8x128xf32> to vector<8x128xf32>
    %778 = vector.shape_cast %758 : vector<8x128xf32> to vector<1x8x128xf32>
    tpu.vector_store %arg8[%c0_321, %c0_322, %c0_323], %778 {strides = array<i32>} : memref<1x8x128xf32, #tpu.memory_space<vmem>>, vector<1x8x128xf32>,
    %c0_324 = arith.constant 0 : index
    %c0_325 = arith.constant 0 : index
    %c0_326 = arith.constant 0 : index
    %779 = vector.load %arg9[%c0_324, %c0_325, %c0_326] : memref<1x8x128xf32, #tpu.memory_space<vmem>>, vector<1x8x128xf32>
    %780 = vector.shape_cast %779 : vector<1x8x128xf32> to vector<8x128xf32>
    %781 = vector.shape_cast %764 : vector<8x128xf32> to vector<1x8x128xf32>
    tpu.vector_store %arg9[%c0_324, %c0_325, %c0_326], %781 {strides = array<i32>} : memref<1x8x128xf32, #tpu.memory_space<vmem>>, vector<1x8x128xf32>,
    %c0_327 = arith.constant 0 : index
    %c0_328 = arith.constant 0 : index
    %c0_329 = arith.constant 0 : index
    %782 = vector.load %arg10[%c0_327, %c0_328, %c0_329] : memref<1x8x128xf32, #tpu.memory_space<vmem>>, vector<1x8x128xf32>
    %783 = vector.shape_cast %782 : vector<1x8x128xf32> to vector<8x128xf32>
    %784 = vector.shape_cast %770 : vector<8x128xf32> to vector<1x8x128xf32>
    tpu.vector_store %arg10[%c0_327, %c0_328, %c0_329], %784 {strides = array<i32>} : memref<1x8x128xf32, #tpu.memory_space<vmem>>, vector<1x8x128xf32>,
    %c0_330 = arith.constant 0 : index
    %c0_331 = arith.constant 0 : index
    %c0_332 = arith.constant 0 : index
    %785 = vector.load %arg11[%c0_330, %c0_331, %c0_332] : memref<1x8x128xf32, #tpu.memory_space<vmem>>, vector<1x8x128xf32>
    %786 = vector.shape_cast %785 : vector<1x8x128xf32> to vector<8x128xf32>
    %787 = vector.shape_cast %773 : vector<8x128xf32> to vector<1x8x128xf32>
    tpu.vector_store %arg11[%c0_330, %c0_331, %c0_332], %787 {strides = array<i32>} : memref<1x8x128xf32, #tpu.memory_space<vmem>>, vector<1x8x128xf32>,
    %c0_333 = arith.constant 0 : index
    %c0_334 = arith.constant 0 : index
    %788 = vector.load %arg17[%c0_333, %c0_334] : memref<160x128xf32, #tpu.memory_space<vmem>>, vector<160x128xf32>
    %c0_335 = arith.constant 0 : index
    %c0_336 = arith.constant 0 : index
    %789 = vector.load %arg14[%c0_335, %c0_336] : memref<128x128xf32, #tpu.memory_space<vmem>>, vector<128x128xf32>
    %cst_337 = arith.constant dense<0.000000e+00> : vector<160x128xf32>
    %790 = tpu.matmul %788, %789, %cst_337 {dimension_numbers = #tpu.dot_dimension_numbers<[1], [0], [0], [1], [0, 0, 1, 1], [], []>} : vector<160x128xf32>, vector<128x128xf32>, vector<160x128xf32> -> vector<160x128xf32>
    %c0_338 = arith.constant 0 : index
    %c0_339 = arith.constant 0 : index
    %791 = vector.load %arg15[%c0_338, %c0_339] : memref<1x128xf32, #tpu.memory_space<vmem>>, vector<1x128xf32>
    %792 = vector.broadcast %791 : vector<1x128xf32> to vector<160x128xf32>
    %793 = arith.addf %790, %792 : vector<160x128xf32>
    %c0_340 = arith.constant 0 : index
    %c0_341 = arith.constant 0 : index
    %794 = vector.load %arg18[%c0_340, %c0_341] : memref<160x128xf32, #tpu.memory_space<vmem>>, vector<160x128xf32>
    tpu.vector_store %arg18[%c0_340, %c0_341], %793 {strides = array<i32>} : memref<160x128xf32, #tpu.memory_space<vmem>>, vector<160x128xf32>,
    %c0_342 = arith.constant 0 : index
    %c0_343 = arith.constant 0 : index
    %795 = vector.load %arg19[%c0_342, %c0_343] : memref<8x128xf32, #tpu.memory_space<vmem>>, vector<8x128xf32>
    %c0_i32_344 = arith.constant 0 : i32
    %c8_i32_345 = arith.constant 8 : i32
    %796 = arith.muli %c0_i32_344, %c8_i32_345 : i32
    %797 = tpu.assume_multiple %796, 8 : i32
    %798 = arith.index_cast %797 : i32 to index
    %c0_346 = arith.constant 0 : index
    %799 = vector.load %arg18[%798, %c0_346] : memref<160x128xf32, #tpu.memory_space<vmem>>, vector<8x128xf32>
    %800 = arith.subf %799, %795 : vector<8x128xf32>
    %cst_347 = arith.constant 0.223143548 : f32
    %801 = vector.broadcast %cst_347 : f32 to vector<8x128xf32>
    %802 = arith.mulf %801, %800 : vector<8x128xf32>
    %803 = arith.addf %795, %802 : vector<8x128xf32>
    %c0_348 = arith.constant 0 : index
    %804 = arith.index_cast %c0_i32_344 : i32 to index
    %c0_349 = arith.constant 0 : index
    %c0_350 = arith.constant 0 : index
    %805 = vector.load %arg7[%c0_348, %804, %c0_349, %c0_350] : memref<1x20x8x128xf32, #tpu.memory_space<vmem>>, vector<1x1x8x128xf32>
    %806 = vector.shape_cast %805 : vector<1x1x8x128xf32> to vector<8x128xf32>
    %807 = vector.shape_cast %803 : vector<8x128xf32> to vector<1x1x8x128xf32>
    tpu.vector_store %arg7[%c0_348, %804, %c0_349, %c0_350], %807 {strides = array<i32>} : memref<1x20x8x128xf32, #tpu.memory_space<vmem>>, vector<1x1x8x128xf32>,
    %c1_i32_351 = arith.constant 1 : i32
    %c8_i32_352 = arith.constant 8 : i32
    %808 = arith.muli %c1_i32_351, %c8_i32_352 : i32
    %809 = tpu.assume_multiple %808, 8 : i32
    %810 = arith.index_cast %809 : i32 to index
    %c0_353 = arith.constant 0 : index
    %811 = vector.load %arg18[%810, %c0_353] : memref<160x128xf32, #tpu.memory_space<vmem>>, vector<8x128xf32>
    %812 = arith.subf %811, %803 : vector<8x128xf32>
    %cst_354 = arith.constant 0.223143548 : f32
    %813 = vector.broadcast %cst_354 : f32 to vector<8x128xf32>
    %814 = arith.mulf %813, %812 : vector<8x128xf32>
    %815 = arith.addf %803, %814 : vector<8x128xf32>
    %c0_355 = arith.constant 0 : index
    %816 = arith.index_cast %c1_i32_351 : i32 to index
    %c0_356 = arith.constant 0 : index
    %c0_357 = arith.constant 0 : index
    %817 = vector.load %arg7[%c0_355, %816, %c0_356, %c0_357] : memref<1x20x8x128xf32, #tpu.memory_space<vmem>>, vector<1x1x8x128xf32>
    %818 = vector.shape_cast %817 : vector<1x1x8x128xf32> to vector<8x128xf32>
    %819 = vector.shape_cast %815 : vector<8x128xf32> to vector<1x1x8x128xf32>
    tpu.vector_store %arg7[%c0_355, %816, %c0_356, %c0_357], %819 {strides = array<i32>} : memref<1x20x8x128xf32, #tpu.memory_space<vmem>>, vector<1x1x8x128xf32>,
    %c2_i32_358 = arith.constant 2 : i32
    %c8_i32_359 = arith.constant 8 : i32
    %820 = arith.muli %c2_i32_358, %c8_i32_359 : i32
    %821 = tpu.assume_multiple %820, 8 : i32
    %822 = arith.index_cast %821 : i32 to index
    %c0_360 = arith.constant 0 : index
    %823 = vector.load %arg18[%822, %c0_360] : memref<160x128xf32, #tpu.memory_space<vmem>>, vector<8x128xf32>
    %824 = arith.subf %823, %815 : vector<8x128xf32>
    %cst_361 = arith.constant 0.223143548 : f32
    %825 = vector.broadcast %cst_361 : f32 to vector<8x128xf32>
    %826 = arith.mulf %825, %824 : vector<8x128xf32>
    %827 = arith.addf %815, %826 : vector<8x128xf32>
    %c0_362 = arith.constant 0 : index
    %828 = arith.index_cast %c2_i32_358 : i32 to index
    %c0_363 = arith.constant 0 : index
    %c0_364 = arith.constant 0 : index
    %829 = vector.load %arg7[%c0_362, %828, %c0_363, %c0_364] : memref<1x20x8x128xf32, #tpu.memory_space<vmem>>, vector<1x1x8x128xf32>
    %830 = vector.shape_cast %829 : vector<1x1x8x128xf32> to vector<8x128xf32>
    %831 = vector.shape_cast %827 : vector<8x128xf32> to vector<1x1x8x128xf32>
    tpu.vector_store %arg7[%c0_362, %828, %c0_363, %c0_364], %831 {strides = array<i32>} : memref<1x20x8x128xf32, #tpu.memory_space<vmem>>, vector<1x1x8x128xf32>,
    %c3_i32_365 = arith.constant 3 : i32
    %c8_i32_366 = arith.constant 8 : i32
    %832 = arith.muli %c3_i32_365, %c8_i32_366 : i32
    %833 = tpu.assume_multiple %832, 8 : i32
    %834 = arith.index_cast %833 : i32 to index
    %c0_367 = arith.constant 0 : index
    %835 = vector.load %arg18[%834, %c0_367] : memref<160x128xf32, #tpu.memory_space<vmem>>, vector<8x128xf32>
    %836 = arith.subf %835, %827 : vector<8x128xf32>
    %cst_368 = arith.constant 0.223143548 : f32
    %837 = vector.broadcast %cst_368 : f32 to vector<8x128xf32>
    %838 = arith.mulf %837, %836 : vector<8x128xf32>
    %839 = arith.addf %827, %838 : vector<8x128xf32>
    %c0_369 = arith.constant 0 : index
    %840 = arith.index_cast %c3_i32_365 : i32 to index
    %c0_370 = arith.constant 0 : index
    %c0_371 = arith.constant 0 : index
    %841 = vector.load %arg7[%c0_369, %840, %c0_370, %c0_371] : memref<1x20x8x128xf32, #tpu.memory_space<vmem>>, vector<1x1x8x128xf32>
    %842 = vector.shape_cast %841 : vector<1x1x8x128xf32> to vector<8x128xf32>
    %843 = vector.shape_cast %839 : vector<8x128xf32> to vector<1x1x8x128xf32>
    tpu.vector_store %arg7[%c0_369, %840, %c0_370, %c0_371], %843 {strides = array<i32>} : memref<1x20x8x128xf32, #tpu.memory_space<vmem>>, vector<1x1x8x128xf32>,
    %c4_i32_372 = arith.constant 4 : i32
    %c8_i32_373 = arith.constant 8 : i32
    %844 = arith.muli %c4_i32_372, %c8_i32_373 : i32
    %845 = tpu.assume_multiple %844, 8 : i32
    %846 = arith.index_cast %845 : i32 to index
    %c0_374 = arith.constant 0 : index
    %847 = vector.load %arg18[%846, %c0_374] : memref<160x128xf32, #tpu.memory_space<vmem>>, vector<8x128xf32>
    %848 = arith.subf %847, %839 : vector<8x128xf32>
    %cst_375 = arith.constant 0.223143548 : f32
    %849 = vector.broadcast %cst_375 : f32 to vector<8x128xf32>
    %850 = arith.mulf %849, %848 : vector<8x128xf32>
    %851 = arith.addf %839, %850 : vector<8x128xf32>
    %c0_376 = arith.constant 0 : index
    %852 = arith.index_cast %c4_i32_372 : i32 to index
    %c0_377 = arith.constant 0 : index
    %c0_378 = arith.constant 0 : index
    %853 = vector.load %arg7[%c0_376, %852, %c0_377, %c0_378] : memref<1x20x8x128xf32, #tpu.memory_space<vmem>>, vector<1x1x8x128xf32>
    %854 = vector.shape_cast %853 : vector<1x1x8x128xf32> to vector<8x128xf32>
    %855 = vector.shape_cast %851 : vector<8x128xf32> to vector<1x1x8x128xf32>
    tpu.vector_store %arg7[%c0_376, %852, %c0_377, %c0_378], %855 {strides = array<i32>} : memref<1x20x8x128xf32, #tpu.memory_space<vmem>>, vector<1x1x8x128xf32>,
    %c5_i32_379 = arith.constant 5 : i32
    %c8_i32_380 = arith.constant 8 : i32
    %856 = arith.muli %c5_i32_379, %c8_i32_380 : i32
    %857 = tpu.assume_multiple %856, 8 : i32
    %858 = arith.index_cast %857 : i32 to index
    %c0_381 = arith.constant 0 : index
    %859 = vector.load %arg18[%858, %c0_381] : memref<160x128xf32, #tpu.memory_space<vmem>>, vector<8x128xf32>
    %860 = arith.subf %859, %851 : vector<8x128xf32>
    %cst_382 = arith.constant 0.223143548 : f32
    %861 = vector.broadcast %cst_382 : f32 to vector<8x128xf32>
    %862 = arith.mulf %861, %860 : vector<8x128xf32>
    %863 = arith.addf %851, %862 : vector<8x128xf32>
    %c0_383 = arith.constant 0 : index
    %864 = arith.index_cast %c5_i32_379 : i32 to index
    %c0_384 = arith.constant 0 : index
    %c0_385 = arith.constant 0 : index
    %865 = vector.load %arg7[%c0_383, %864, %c0_384, %c0_385] : memref<1x20x8x128xf32, #tpu.memory_space<vmem>>, vector<1x1x8x128xf32>
    %866 = vector.shape_cast %865 : vector<1x1x8x128xf32> to vector<8x128xf32>
    %867 = vector.shape_cast %863 : vector<8x128xf32> to vector<1x1x8x128xf32>
    tpu.vector_store %arg7[%c0_383, %864, %c0_384, %c0_385], %867 {strides = array<i32>} : memref<1x20x8x128xf32, #tpu.memory_space<vmem>>, vector<1x1x8x128xf32>,
    %c6_i32_386 = arith.constant 6 : i32
    %c8_i32_387 = arith.constant 8 : i32
    %868 = arith.muli %c6_i32_386, %c8_i32_387 : i32
    %869 = tpu.assume_multiple %868, 8 : i32
    %870 = arith.index_cast %869 : i32 to index
    %c0_388 = arith.constant 0 : index
    %871 = vector.load %arg18[%870, %c0_388] : memref<160x128xf32, #tpu.memory_space<vmem>>, vector<8x128xf32>
    %872 = arith.subf %871, %863 : vector<8x128xf32>
    %cst_389 = arith.constant 0.223143548 : f32
    %873 = vector.broadcast %cst_389 : f32 to vector<8x128xf32>
    %874 = arith.mulf %873, %872 : vector<8x128xf32>
    %875 = arith.addf %863, %874 : vector<8x128xf32>
    %c0_390 = arith.constant 0 : index
    %876 = arith.index_cast %c6_i32_386 : i32 to index
    %c0_391 = arith.constant 0 : index
    %c0_392 = arith.constant 0 : index
    %877 = vector.load %arg7[%c0_390, %876, %c0_391, %c0_392] : memref<1x20x8x128xf32, #tpu.memory_space<vmem>>, vector<1x1x8x128xf32>
    %878 = vector.shape_cast %877 : vector<1x1x8x128xf32> to vector<8x128xf32>
    %879 = vector.shape_cast %875 : vector<8x128xf32> to vector<1x1x8x128xf32>
    tpu.vector_store %arg7[%c0_390, %876, %c0_391, %c0_392], %879 {strides = array<i32>} : memref<1x20x8x128xf32, #tpu.memory_space<vmem>>, vector<1x1x8x128xf32>,
    %c7_i32_393 = arith.constant 7 : i32
    %c8_i32_394 = arith.constant 8 : i32
    %880 = arith.muli %c7_i32_393, %c8_i32_394 : i32
    %881 = tpu.assume_multiple %880, 8 : i32
    %882 = arith.index_cast %881 : i32 to index
    %c0_395 = arith.constant 0 : index
    %883 = vector.load %arg18[%882, %c0_395] : memref<160x128xf32, #tpu.memory_space<vmem>>, vector<8x128xf32>
    %884 = arith.subf %883, %875 : vector<8x128xf32>
    %cst_396 = arith.constant 0.223143548 : f32
    %885 = vector.broadcast %cst_396 : f32 to vector<8x128xf32>
    %886 = arith.mulf %885, %884 : vector<8x128xf32>
    %887 = arith.addf %875, %886 : vector<8x128xf32>
    %c0_397 = arith.constant 0 : index
    %888 = arith.index_cast %c7_i32_393 : i32 to index
    %c0_398 = arith.constant 0 : index
    %c0_399 = arith.constant 0 : index
    %889 = vector.load %arg7[%c0_397, %888, %c0_398, %c0_399] : memref<1x20x8x128xf32, #tpu.memory_space<vmem>>, vector<1x1x8x128xf32>
    %890 = vector.shape_cast %889 : vector<1x1x8x128xf32> to vector<8x128xf32>
    %891 = vector.shape_cast %887 : vector<8x128xf32> to vector<1x1x8x128xf32>
    tpu.vector_store %arg7[%c0_397, %888, %c0_398, %c0_399], %891 {strides = array<i32>} : memref<1x20x8x128xf32, #tpu.memory_space<vmem>>, vector<1x1x8x128xf32>,
    %c8_i32_400 = arith.constant 8 : i32
    %c8_i32_401 = arith.constant 8 : i32
    %892 = arith.muli %c8_i32_400, %c8_i32_401 : i32
    %893 = tpu.assume_multiple %892, 8 : i32
    %894 = arith.index_cast %893 : i32 to index
    %c0_402 = arith.constant 0 : index
    %895 = vector.load %arg18[%894, %c0_402] : memref<160x128xf32, #tpu.memory_space<vmem>>, vector<8x128xf32>
    %896 = arith.subf %895, %887 : vector<8x128xf32>
    %cst_403 = arith.constant 0.223143548 : f32
    %897 = vector.broadcast %cst_403 : f32 to vector<8x128xf32>
    %898 = arith.mulf %897, %896 : vector<8x128xf32>
    %899 = arith.addf %887, %898 : vector<8x128xf32>
    %c0_404 = arith.constant 0 : index
    %900 = arith.index_cast %c8_i32_400 : i32 to index
    %c0_405 = arith.constant 0 : index
    %c0_406 = arith.constant 0 : index
    %901 = vector.load %arg7[%c0_404, %900, %c0_405, %c0_406] : memref<1x20x8x128xf32, #tpu.memory_space<vmem>>, vector<1x1x8x128xf32>
    %902 = vector.shape_cast %901 : vector<1x1x8x128xf32> to vector<8x128xf32>
    %903 = vector.shape_cast %899 : vector<8x128xf32> to vector<1x1x8x128xf32>
    tpu.vector_store %arg7[%c0_404, %900, %c0_405, %c0_406], %903 {strides = array<i32>} : memref<1x20x8x128xf32, #tpu.memory_space<vmem>>, vector<1x1x8x128xf32>,
    %c9_i32_407 = arith.constant 9 : i32
    %c8_i32_408 = arith.constant 8 : i32
    %904 = arith.muli %c9_i32_407, %c8_i32_408 : i32
    %905 = tpu.assume_multiple %904, 8 : i32
    %906 = arith.index_cast %905 : i32 to index
    %c0_409 = arith.constant 0 : index
    %907 = vector.load %arg18[%906, %c0_409] : memref<160x128xf32, #tpu.memory_space<vmem>>, vector<8x128xf32>
    %908 = arith.subf %907, %899 : vector<8x128xf32>
    %cst_410 = arith.constant 0.223143548 : f32
    %909 = vector.broadcast %cst_410 : f32 to vector<8x128xf32>
    %910 = arith.mulf %909, %908 : vector<8x128xf32>
    %911 = arith.addf %899, %910 : vector<8x128xf32>
    %c0_411 = arith.constant 0 : index
    %912 = arith.index_cast %c9_i32_407 : i32 to index
    %c0_412 = arith.constant 0 : index
    %c0_413 = arith.constant 0 : index
    %913 = vector.load %arg7[%c0_411, %912, %c0_412, %c0_413] : memref<1x20x8x128xf32, #tpu.memory_space<vmem>>, vector<1x1x8x128xf32>
    %914 = vector.shape_cast %913 : vector<1x1x8x128xf32> to vector<8x128xf32>
    %915 = vector.shape_cast %911 : vector<8x128xf32> to vector<1x1x8x128xf32>
    tpu.vector_store %arg7[%c0_411, %912, %c0_412, %c0_413], %915 {strides = array<i32>} : memref<1x20x8x128xf32, #tpu.memory_space<vmem>>, vector<1x1x8x128xf32>,
    %c10_i32_414 = arith.constant 10 : i32
    %c8_i32_415 = arith.constant 8 : i32
    %916 = arith.muli %c10_i32_414, %c8_i32_415 : i32
    %917 = tpu.assume_multiple %916, 8 : i32
    %918 = arith.index_cast %917 : i32 to index
    %c0_416 = arith.constant 0 : index
    %919 = vector.load %arg18[%918, %c0_416] : memref<160x128xf32, #tpu.memory_space<vmem>>, vector<8x128xf32>
    %920 = arith.subf %919, %911 : vector<8x128xf32>
    %cst_417 = arith.constant 0.223143548 : f32
    %921 = vector.broadcast %cst_417 : f32 to vector<8x128xf32>
    %922 = arith.mulf %921, %920 : vector<8x128xf32>
    %923 = arith.addf %911, %922 : vector<8x128xf32>
    %c0_418 = arith.constant 0 : index
    %924 = arith.index_cast %c10_i32_414 : i32 to index
    %c0_419 = arith.constant 0 : index
    %c0_420 = arith.constant 0 : index
    %925 = vector.load %arg7[%c0_418, %924, %c0_419, %c0_420] : memref<1x20x8x128xf32, #tpu.memory_space<vmem>>, vector<1x1x8x128xf32>
    %926 = vector.shape_cast %925 : vector<1x1x8x128xf32> to vector<8x128xf32>
    %927 = vector.shape_cast %923 : vector<8x128xf32> to vector<1x1x8x128xf32>
    tpu.vector_store %arg7[%c0_418, %924, %c0_419, %c0_420], %927 {strides = array<i32>} : memref<1x20x8x128xf32, #tpu.memory_space<vmem>>, vector<1x1x8x128xf32>,
    %c11_i32_421 = arith.constant 11 : i32
    %c8_i32_422 = arith.constant 8 : i32
    %928 = arith.muli %c11_i32_421, %c8_i32_422 : i32
    %929 = tpu.assume_multiple %928, 8 : i32
    %930 = arith.index_cast %929 : i32 to index
    %c0_423 = arith.constant 0 : index
    %931 = vector.load %arg18[%930, %c0_423] : memref<160x128xf32, #tpu.memory_space<vmem>>, vector<8x128xf32>
    %932 = arith.subf %931, %923 : vector<8x128xf32>
    %cst_424 = arith.constant 0.223143548 : f32
    %933 = vector.broadcast %cst_424 : f32 to vector<8x128xf32>
    %934 = arith.mulf %933, %932 : vector<8x128xf32>
    %935 = arith.addf %923, %934 : vector<8x128xf32>
    %c0_425 = arith.constant 0 : index
    %936 = arith.index_cast %c11_i32_421 : i32 to index
    %c0_426 = arith.constant 0 : index
    %c0_427 = arith.constant 0 : index
    %937 = vector.load %arg7[%c0_425, %936, %c0_426, %c0_427] : memref<1x20x8x128xf32, #tpu.memory_space<vmem>>, vector<1x1x8x128xf32>
    %938 = vector.shape_cast %937 : vector<1x1x8x128xf32> to vector<8x128xf32>
    %939 = vector.shape_cast %935 : vector<8x128xf32> to vector<1x1x8x128xf32>
    tpu.vector_store %arg7[%c0_425, %936, %c0_426, %c0_427], %939 {strides = array<i32>} : memref<1x20x8x128xf32, #tpu.memory_space<vmem>>, vector<1x1x8x128xf32>,
    %c12_i32_428 = arith.constant 12 : i32
    %c8_i32_429 = arith.constant 8 : i32
    %940 = arith.muli %c12_i32_428, %c8_i32_429 : i32
    %941 = tpu.assume_multiple %940, 8 : i32
    %942 = arith.index_cast %941 : i32 to index
    %c0_430 = arith.constant 0 : index
    %943 = vector.load %arg18[%942, %c0_430] : memref<160x128xf32, #tpu.memory_space<vmem>>, vector<8x128xf32>
    %944 = arith.subf %943, %935 : vector<8x128xf32>
    %cst_431 = arith.constant 0.223143548 : f32
    %945 = vector.broadcast %cst_431 : f32 to vector<8x128xf32>
    %946 = arith.mulf %945, %944 : vector<8x128xf32>
    %947 = arith.addf %935, %946 : vector<8x128xf32>
    %c0_432 = arith.constant 0 : index
    %948 = arith.index_cast %c12_i32_428 : i32 to index
    %c0_433 = arith.constant 0 : index
    %c0_434 = arith.constant 0 : index
    %949 = vector.load %arg7[%c0_432, %948, %c0_433, %c0_434] : memref<1x20x8x128xf32, #tpu.memory_space<vmem>>, vector<1x1x8x128xf32>
    %950 = vector.shape_cast %949 : vector<1x1x8x128xf32> to vector<8x128xf32>
    %951 = vector.shape_cast %947 : vector<8x128xf32> to vector<1x1x8x128xf32>
    tpu.vector_store %arg7[%c0_432, %948, %c0_433, %c0_434], %951 {strides = array<i32>} : memref<1x20x8x128xf32, #tpu.memory_space<vmem>>, vector<1x1x8x128xf32>,
    %c13_i32_435 = arith.constant 13 : i32
    %c8_i32_436 = arith.constant 8 : i32
    %952 = arith.muli %c13_i32_435, %c8_i32_436 : i32
    %953 = tpu.assume_multiple %952, 8 : i32
    %954 = arith.index_cast %953 : i32 to index
    %c0_437 = arith.constant 0 : index
    %955 = vector.load %arg18[%954, %c0_437] : memref<160x128xf32, #tpu.memory_space<vmem>>, vector<8x128xf32>
    %956 = arith.subf %955, %947 : vector<8x128xf32>
    %cst_438 = arith.constant 0.223143548 : f32
    %957 = vector.broadcast %cst_438 : f32 to vector<8x128xf32>
    %958 = arith.mulf %957, %956 : vector<8x128xf32>
    %959 = arith.addf %947, %958 : vector<8x128xf32>
    %c0_439 = arith.constant 0 : index
    %960 = arith.index_cast %c13_i32_435 : i32 to index
    %c0_440 = arith.constant 0 : index
    %c0_441 = arith.constant 0 : index
    %961 = vector.load %arg7[%c0_439, %960, %c0_440, %c0_441] : memref<1x20x8x128xf32, #tpu.memory_space<vmem>>, vector<1x1x8x128xf32>
    %962 = vector.shape_cast %961 : vector<1x1x8x128xf32> to vector<8x128xf32>
    %963 = vector.shape_cast %959 : vector<8x128xf32> to vector<1x1x8x128xf32>
    tpu.vector_store %arg7[%c0_439, %960, %c0_440, %c0_441], %963 {strides = array<i32>} : memref<1x20x8x128xf32, #tpu.memory_space<vmem>>, vector<1x1x8x128xf32>,
    %c14_i32_442 = arith.constant 14 : i32
    %c8_i32_443 = arith.constant 8 : i32
    %964 = arith.muli %c14_i32_442, %c8_i32_443 : i32
    %965 = tpu.assume_multiple %964, 8 : i32
    %966 = arith.index_cast %965 : i32 to index
    %c0_444 = arith.constant 0 : index
    %967 = vector.load %arg18[%966, %c0_444] : memref<160x128xf32, #tpu.memory_space<vmem>>, vector<8x128xf32>
    %968 = arith.subf %967, %959 : vector<8x128xf32>
    %cst_445 = arith.constant 0.223143548 : f32
    %969 = vector.broadcast %cst_445 : f32 to vector<8x128xf32>
    %970 = arith.mulf %969, %968 : vector<8x128xf32>
    %971 = arith.addf %959, %970 : vector<8x128xf32>
    %c0_446 = arith.constant 0 : index
    %972 = arith.index_cast %c14_i32_442 : i32 to index
    %c0_447 = arith.constant 0 : index
    %c0_448 = arith.constant 0 : index
    %973 = vector.load %arg7[%c0_446, %972, %c0_447, %c0_448] : memref<1x20x8x128xf32, #tpu.memory_space<vmem>>, vector<1x1x8x128xf32>
    %974 = vector.shape_cast %973 : vector<1x1x8x128xf32> to vector<8x128xf32>
    %975 = vector.shape_cast %971 : vector<8x128xf32> to vector<1x1x8x128xf32>
    tpu.vector_store %arg7[%c0_446, %972, %c0_447, %c0_448], %975 {strides = array<i32>} : memref<1x20x8x128xf32, #tpu.memory_space<vmem>>, vector<1x1x8x128xf32>,
    %c15_i32_449 = arith.constant 15 : i32
    %c8_i32_450 = arith.constant 8 : i32
    %976 = arith.muli %c15_i32_449, %c8_i32_450 : i32
    %977 = tpu.assume_multiple %976, 8 : i32
    %978 = arith.index_cast %977 : i32 to index
    %c0_451 = arith.constant 0 : index
    %979 = vector.load %arg18[%978, %c0_451] : memref<160x128xf32, #tpu.memory_space<vmem>>, vector<8x128xf32>
    %980 = arith.subf %979, %971 : vector<8x128xf32>
    %cst_452 = arith.constant 0.223143548 : f32
    %981 = vector.broadcast %cst_452 : f32 to vector<8x128xf32>
    %982 = arith.mulf %981, %980 : vector<8x128xf32>
    %983 = arith.addf %971, %982 : vector<8x128xf32>
    %c0_453 = arith.constant 0 : index
    %984 = arith.index_cast %c15_i32_449 : i32 to index
    %c0_454 = arith.constant 0 : index
    %c0_455 = arith.constant 0 : index
    %985 = vector.load %arg7[%c0_453, %984, %c0_454, %c0_455] : memref<1x20x8x128xf32, #tpu.memory_space<vmem>>, vector<1x1x8x128xf32>
    %986 = vector.shape_cast %985 : vector<1x1x8x128xf32> to vector<8x128xf32>
    %987 = vector.shape_cast %983 : vector<8x128xf32> to vector<1x1x8x128xf32>
    tpu.vector_store %arg7[%c0_453, %984, %c0_454, %c0_455], %987 {strides = array<i32>} : memref<1x20x8x128xf32, #tpu.memory_space<vmem>>, vector<1x1x8x128xf32>,
    %c16_i32_456 = arith.constant 16 : i32
    %c8_i32_457 = arith.constant 8 : i32
    %988 = arith.muli %c16_i32_456, %c8_i32_457 : i32
    %989 = tpu.assume_multiple %988, 8 : i32
    %990 = arith.index_cast %989 : i32 to index
    %c0_458 = arith.constant 0 : index
    %991 = vector.load %arg18[%990, %c0_458] : memref<160x128xf32, #tpu.memory_space<vmem>>, vector<8x128xf32>
    %992 = arith.subf %991, %983 : vector<8x128xf32>
    %cst_459 = arith.constant 0.223143548 : f32
    %993 = vector.broadcast %cst_459 : f32 to vector<8x128xf32>
    %994 = arith.mulf %993, %992 : vector<8x128xf32>
    %995 = arith.addf %983, %994 : vector<8x128xf32>
    %c0_460 = arith.constant 0 : index
    %996 = arith.index_cast %c16_i32_456 : i32 to index
    %c0_461 = arith.constant 0 : index
    %c0_462 = arith.constant 0 : index
    %997 = vector.load %arg7[%c0_460, %996, %c0_461, %c0_462] : memref<1x20x8x128xf32, #tpu.memory_space<vmem>>, vector<1x1x8x128xf32>
    %998 = vector.shape_cast %997 : vector<1x1x8x128xf32> to vector<8x128xf32>
    %999 = vector.shape_cast %995 : vector<8x128xf32> to vector<1x1x8x128xf32>
    tpu.vector_store %arg7[%c0_460, %996, %c0_461, %c0_462], %999 {strides = array<i32>} : memref<1x20x8x128xf32, #tpu.memory_space<vmem>>, vector<1x1x8x128xf32>,
    %c17_i32_463 = arith.constant 17 : i32
    %c8_i32_464 = arith.constant 8 : i32
    %1000 = arith.muli %c17_i32_463, %c8_i32_464 : i32
    %1001 = tpu.assume_multiple %1000, 8 : i32
    %1002 = arith.index_cast %1001 : i32 to index
    %c0_465 = arith.constant 0 : index
    %1003 = vector.load %arg18[%1002, %c0_465] : memref<160x128xf32, #tpu.memory_space<vmem>>, vector<8x128xf32>
    %1004 = arith.subf %1003, %995 : vector<8x128xf32>
    %cst_466 = arith.constant 0.223143548 : f32
    %1005 = vector.broadcast %cst_466 : f32 to vector<8x128xf32>
    %1006 = arith.mulf %1005, %1004 : vector<8x128xf32>
    %1007 = arith.addf %995, %1006 : vector<8x128xf32>
    %c0_467 = arith.constant 0 : index
    %1008 = arith.index_cast %c17_i32_463 : i32 to index
    %c0_468 = arith.constant 0 : index
    %c0_469 = arith.constant 0 : index
    %1009 = vector.load %arg7[%c0_467, %1008, %c0_468, %c0_469] : memref<1x20x8x128xf32, #tpu.memory_space<vmem>>, vector<1x1x8x128xf32>
    %1010 = vector.shape_cast %1009 : vector<1x1x8x128xf32> to vector<8x128xf32>
    %1011 = vector.shape_cast %1007 : vector<8x128xf32> to vector<1x1x8x128xf32>
    tpu.vector_store %arg7[%c0_467, %1008, %c0_468, %c0_469], %1011 {strides = array<i32>} : memref<1x20x8x128xf32, #tpu.memory_space<vmem>>, vector<1x1x8x128xf32>,
    %c18_i32_470 = arith.constant 18 : i32
    %c8_i32_471 = arith.constant 8 : i32
    %1012 = arith.muli %c18_i32_470, %c8_i32_471 : i32
    %1013 = tpu.assume_multiple %1012, 8 : i32
    %1014 = arith.index_cast %1013 : i32 to index
    %c0_472 = arith.constant 0 : index
    %1015 = vector.load %arg18[%1014, %c0_472] : memref<160x128xf32, #tpu.memory_space<vmem>>, vector<8x128xf32>
    %1016 = arith.subf %1015, %1007 : vector<8x128xf32>
    %cst_473 = arith.constant 0.223143548 : f32
    %1017 = vector.broadcast %cst_473 : f32 to vector<8x128xf32>
    %1018 = arith.mulf %1017, %1016 : vector<8x128xf32>
    %1019 = arith.addf %1007, %1018 : vector<8x128xf32>
    %c0_474 = arith.constant 0 : index
    %1020 = arith.index_cast %c18_i32_470 : i32 to index
    %c0_475 = arith.constant 0 : index
    %c0_476 = arith.constant 0 : index
    %1021 = vector.load %arg7[%c0_474, %1020, %c0_475, %c0_476] : memref<1x20x8x128xf32, #tpu.memory_space<vmem>>, vector<1x1x8x128xf32>
    %1022 = vector.shape_cast %1021 : vector<1x1x8x128xf32> to vector<8x128xf32>
    %1023 = vector.shape_cast %1019 : vector<8x128xf32> to vector<1x1x8x128xf32>
    tpu.vector_store %arg7[%c0_474, %1020, %c0_475, %c0_476], %1023 {strides = array<i32>} : memref<1x20x8x128xf32, #tpu.memory_space<vmem>>, vector<1x1x8x128xf32>,
    %c19_i32_477 = arith.constant 19 : i32
    %c8_i32_478 = arith.constant 8 : i32
    %1024 = arith.muli %c19_i32_477, %c8_i32_478 : i32
    %1025 = tpu.assume_multiple %1024, 8 : i32
    %1026 = arith.index_cast %1025 : i32 to index
    %c0_479 = arith.constant 0 : index
    %1027 = vector.load %arg18[%1026, %c0_479] : memref<160x128xf32, #tpu.memory_space<vmem>>, vector<8x128xf32>
    %1028 = arith.subf %1027, %1019 : vector<8x128xf32>
    %cst_480 = arith.constant 0.223143548 : f32
    %1029 = vector.broadcast %cst_480 : f32 to vector<8x128xf32>
    %1030 = arith.mulf %1029, %1028 : vector<8x128xf32>
    %1031 = arith.addf %1019, %1030 : vector<8x128xf32>
    %c0_481 = arith.constant 0 : index
    %1032 = arith.index_cast %c19_i32_477 : i32 to index
    %c0_482 = arith.constant 0 : index
    %c0_483 = arith.constant 0 : index
    %1033 = vector.load %arg7[%c0_481, %1032, %c0_482, %c0_483] : memref<1x20x8x128xf32, #tpu.memory_space<vmem>>, vector<1x1x8x128xf32>
    %1034 = vector.shape_cast %1033 : vector<1x1x8x128xf32> to vector<8x128xf32>
    %1035 = vector.shape_cast %1031 : vector<8x128xf32> to vector<1x1x8x128xf32>
    tpu.vector_store %arg7[%c0_481, %1032, %c0_482, %c0_483], %1035 {strides = array<i32>} : memref<1x20x8x128xf32, #tpu.memory_space<vmem>>, vector<1x1x8x128xf32>,
    %c20_i32_484 = arith.constant 20 : i32
    %c0_485 = arith.constant 0 : index
    %c0_486 = arith.constant 0 : index
    %1036 = vector.load %arg19[%c0_485, %c0_486] : memref<8x128xf32, #tpu.memory_space<vmem>>, vector<8x128xf32>
    tpu.vector_store %arg19[%c0_485, %c0_486], %1031 {strides = array<i32>} : memref<8x128xf32, #tpu.memory_space<vmem>>, vector<8x128xf32>,
    return
  }
  func.func @transform_0(%arg0: i32, %arg1: i32) -> (i32, i32, i32, i32) {
    %c0_i32 = arith.constant 0 : i32
    %c0_i32_0 = arith.constant 0 : i32
    %c0_i32_1 = arith.constant 0 : i32
    return %arg0, %arg1, %c0_i32, %c0_i32_0 : i32, i32, i32, i32
  }
  func.func @transform_5(%arg0: i32, %arg1: i32) -> (i32, i32, i32, i32) {
    %c0_i32 = arith.constant 0 : i32
    %c0_i32_0 = arith.constant 0 : i32
    %c0_i32_1 = arith.constant 0 : i32
    return %arg0, %arg1, %c0_i32, %c0_i32_0 : i32, i32, i32, i32
  }
  func.func @transform_6(%arg0: i32, %arg1: i32) -> (i32, i32, i32) {
    %c0_i32 = arith.constant 0 : i32
    %c0_i32_0 = arith.constant 0 : i32
    %c0_i32_1 = arith.constant 0 : i32
    return %arg0, %c0_i32, %c0_i32_0 : i32, i32, i32
  }
  func.func @transform_7(%arg0: i32, %arg1: i32) -> (i32, i32, i32) {
    %c0_i32 = arith.constant 0 : i32
    %c0_i32_0 = arith.constant 0 : i32
    %c0_i32_1 = arith.constant 0 : i32
    return %arg0, %c0_i32, %c0_i32_0 : i32, i32, i32
  }
  func.func @transform_8(%arg0: i32, %arg1: i32) -> (i32, i32, i32) {
    %c0_i32 = arith.constant 0 : i32
    %c0_i32_0 = arith.constant 0 : i32
    %c0_i32_1 = arith.constant 0 : i32
    return %arg0, %c0_i32, %c0_i32_0 : i32, i32, i32
  }
  func.func @transform_9(%arg0: i32, %arg1: i32) -> (i32, i32, i32) {
    %c0_i32 = arith.constant 0 : i32
    %c0_i32_0 = arith.constant 0 : i32
    %c0_i32_1 = arith.constant 0 : i32
    return %arg0, %c0_i32, %c0_i32_0 : i32, i32, i32
  }
}

</mosaic_0001>

<bundles_post_ra>
// kernel: tpu_custom_call.1
= control target key start
LH: loop header
LB: loop body
LE: loop exit
PB: predicated region body
PF: predicated region fallthrough
CT: control target
= control target key end

     0   :  { %15 = vsyncpa [#allocation12], 0  ;;  %s3104_s0 = inlined_call_operand.vmem [shape: f32[1,1,160,16], index: 0, kind: input, shape index: {}]   ;;  %s3105_s1 = inlined_call_operand.vmem [shape: f32[16,128], index: 1, kind: input, shape index: {}]   ;;  %s3106_s2 = inlined_call_operand.vmem [shape: f32[128,128], index: 2, kind: input, shape index: {}]   ;;  %s3107_s3 = inlined_call_operand.hbm [shape: f32[128,128], index: 3, kind: input, shape index: {}]   ;;  %s3108_s4 = inlined_call_operand.vmem [shape: f32[1,128], index: 4, kind: input, shape index: {}]   ;;  %s3109_s5 = inlined_call_operand.hbm [shape: f32[1,20,8,128], index: 5, kind: output, shape index: {0}]   ;;  %s3110_s6 = inlined_call_operand.hbm [shape: f32[1,8,128], index: 6, kind: output, shape index: {1}]   ;;  %s3111_s7 = inlined_call_operand.hbm [shape: f32[1,8,128], index: 7, kind: output, shape index: {2}]   ;;  %s3112_s8 = inlined_call_operand.hbm [shape: f32[1,8,128], index: 8, kind: output, shape index: {3}]   ;;  %s3113_s9 = inlined_call_operand.hbm [shape: f32[1,8,128], index: 9, kind: output, shape index: {4}]  }
   0x1   :  { %16 = vsyncpa [#allocation14], 0 }
   0x2   :  { %17 = vsyncpa [#allocation17], 0  ;;  %v34_v0 = vld [vmem:[%s3105_s1] sm:$0xff]  ;;  %v36_v1 = vld [vmem:[%s3105_s1 + $0x8] sm:$0xff] }
   0x3   :  { %43 = vsyncadd [#allocation10], 256  ;;  %v2281_v2 = vld [vmem:[%s3106_s2] sm:$0xff]  ;;  %v2286_v3 = vld [vmem:[%s3106_s2 + $0x8] sm:$0xff] }
   0x4   :  { %v2291_v4 = vld [vmem:[%s3106_s2 + $0x10] sm:$0xff]  ;;  %v2296_v5 = vld [vmem:[%s3106_s2 + $0x18] sm:$0xff]  ;;  %v2301_v6 = vld [vmem:[%s3106_s2 + $0x20] sm:$0xff] }
   0x5   :  { %v2306_v7 = vld [vmem:[%s3106_s2 + $0x28] sm:$0xff]  ;;  %v2311_v8 = vld [vmem:[%s3106_s2 + $0x30] sm:$0xff]  ;;  %v2316_v9 = vld [vmem:[%s3106_s2 + $0x38] sm:$0xff] }
   0x6   :  { %v2321_v10 = vld [vmem:[%s3106_s2 + $0x40] sm:$0xff]  ;;  %v2326_v11 = vld [vmem:[%s3106_s2 + $0x48] sm:$0xff]  ;;  %v2331_v12 = vld [vmem:[%s3106_s2 + $0x50] sm:$0xff] }
   0x7   :  { %v2336_v13 = vld [vmem:[%s3106_s2 + $0x58] sm:$0xff]  ;;  %v2341_v14 = vld [vmem:[%s3106_s2 + $0x60] sm:$0xff]  ;;  %v2346_v15 = vld [vmem:[%s3106_s2 + $0x68] sm:$0xff] }
   0x8   :  { %v2351_v16 = vld [vmem:[%s3106_s2 + $0x70] sm:$0xff]  ;;  %v2356_v17 = vld [vmem:[%s3106_s2 + $0x78] sm:$0xff] }
   0x9   :  { %92 = vsyncadd [#allocation10 + $0x1], 2048  ;;  %s101_s24 = sshll.u32 %s3107_s3, 4  ;;  %v122_v18 = vld [vmem:[%s3108_s4] sm:$0x1]  ;;  %s2212_s27 = smov [#allocation4]   ;;  %s102_s24 = int_to_ptr.hbm [resolvable:$true] %s101_s24 }
   0xa   :  { %s103_s28 = sshll.u32 %s2212_s27, 4  ;;  %123 = vst [vmem:[#allocation5] sm:$0x1] %v122_v18  ;;  %s104_s28 = int_to_ptr.vmem [resolvable:$true] %s103_s28 }
   0xb   :  { %106 = dma.hbm_to_vmem [thread:$0]  %s102_s24, 2048, %s104_s28, [#allocation10 + $0x2] }
   0xc   :  { %141 = vsyncadd [#allocation10 + $0x3], 16  ;;  %v2213_v19 = vmov 0.0   ;;  %v2214_v20 = vmov 1.0  }
   0xd   :  { %142 = vst [vmem:[#allocation13] sm:$0xff] %v2213_v19 }
   0xe   :  { %143 = vst [vmem:[#allocation15] sm:$0xff] %v2213_v19 }
   0xf   :  { %144 = vst [vmem:[#allocation16] sm:$0xff] %v2213_v19 }
  0x10   :  { %145 = vst [vmem:[#allocation18] sm:$0xff] %v2214_v20 }
  0x11   :  { %2198 = dma.done.wait [#allocation10], 256 }
  0x12   :  { %2199 = vsyncadd [#allocation10], 4294967040 }
  0x13   :  { %2200 = dma.done.wait [#allocation10 + $0x1], 2048 }
  0x14   :  { %2201 = vsyncadd [#allocation10 + $0x1], 4294965248 }
  0x15   :  { %2202 = dma.done.wait [#allocation10 + $0x2], 2048 }
  0x16   :  { %2203 = vsyncadd [#allocation10 + $0x2], 4294965248  ;;  %377 = vmatpush.msra.mxu2 %v2356_v17 }
  0x17   :  { %2204 = dma.done.wait [#allocation10 + $0x3], 16 }
  0x18   :  { %2205 = vsyncadd [#allocation10 + $0x3], 4294967280  ;;  %255 = vmatpush.msra.mxu0 %v36_v1  ;;  %498 = vmatpush.msra.mxu3 %v2356_v17  ;;  %vm180_vm0 = vcmask 130048   ;;  %v158_v21 = vld [vmem:[%s3104_s0] sm:$0xff]  ;;  %v159_v22 = vld [vmem:[%s3104_s0 + $0x8] sm:$0xff]  ;;  %s1861_s22 = sshll.u32 %s3110_s6, 4  ;;  %s1862_s22 = int_to_ptr.hbm [resolvable:$true] %s1861_s22 }
  0x19   :  { %1108 = vmatpush.msra.mxu1 %v2356_v17  ;;  %378 = vmatpush.msra.mxu2 %v2351_v16  ;;  %v338_v23 = vld [vmem:[#allocation13] sm:$0xff]  ;;  %v160_v24 = vld [vmem:[%s3104_s0 + $0x10] sm:$0xff]  ;;  %v341_v28 = vld [vmem:[#allocation18] sm:$0xff]  ;;  %s2216_s23 = smov [#allocation15]   ;;  %s1872_s27 = sshll.u32 %s3111_s7, 4  ;;  %s1873_s27 = int_to_ptr.hbm [resolvable:$true] %s1872_s27 }
  0x1a   :  { %256 = vmatpush.msra.mxu0 %v34_v0  ;;  %499 = vmatpush.msra.mxu3 %v2351_v16  ;;  %v339_v25 = vld [vmem:[#allocation15] sm:$0xff]  ;;  %v2456_v27 = vld [vmem:[#allocation16] sm:$0xff]  ;;  %v348_v30 = vsub.f32 1.0, %v341_v28  ;;  %v162_v60 = vld [vmem:[%s3104_s0 + $0x20] sm:$0xff]  ;;  %s1870_s24 = sshll.u32 %s2216_s23, 4  ;;  %s2217_s28 = smov [#allocation16]   ;;  %s1871_s24 = int_to_ptr.vmem [resolvable:$true] %s1870_s24 }
  0x1b   :  { %379 = vmatpush.msra.mxu2 %v2346_v15  ;;  %1109 = vmatpush.msra.mxu1 %v2351_v16  ;;  %v342_v26 = vsub.f32 0.0, %v339_v25  ;;  %v161_v38 = vld [vmem:[%s3104_s0 + $0x18] sm:$0xff]  ;;  %v346_v41 = vmul.f32 0.2, %v2456_v27  ;;  %s1881_s2 = sshll.u32 %s2217_s28, 4  ;;  %s1883_s6 = sshll.u32 %s3112_s8, 4  ;;  %s1882_s2 = int_to_ptr.vmem [resolvable:$true] %s1881_s2  ;;  %s1884_s6 = int_to_ptr.hbm [resolvable:$true] %s1883_s6 }
  0x1c   :  { %742 = vmatpush.msrb.mxu0 %v2356_v17  ;;  %500 = vmatpush.msra.mxu3 %v2346_v15  ;;  %v349_v32 = vmul.f32 1.4285714e-06, %v348_v30  ;;  %s2218_s29 = smov [#allocation18]   ;;  %s1894_s12 = sshll.u32 %s3113_s9, 4  ;;  %s1895_s12 = int_to_ptr.hbm [resolvable:$true] %s1894_s12 }
  0x1d   :  { %380 = vmatpush.msra.mxu2 %v2341_v14  ;;  %1110 = vmatpush.msra.mxu1 %v2346_v15  ;;  %v343_v29 = vadd.f32 %v342_v26, %v2456_v27  ;;  %v347_v44 = vsub.f32 %v2456_v27, %v346_v41  ;;  %s1892_s30 = sshll.u32 %s2218_s29, 4  ;;  %s2219_s7 = smov [#allocation11]   ;;  %s1893_s30 = int_to_ptr.vmem [resolvable:$true] %s1892_s30 }
  0x1e   :  { %743 = vmatpush.msrb.mxu0 %v2351_v16  ;;  %501 = vmatpush.msra.mxu3 %v2341_v14  ;;  %v2484_v34 = vadd.f32 %v349_v32, %v341_v28  ;;  %s1845_s8 = sshll.u32 %s2219_s7, 4  ;;  %s1847_s14 = sshll.u32 %s3109_s5, 4  ;;  %s1846_s8 = int_to_ptr.vmem [resolvable:$true] %s1845_s8  ;;  %s1848_s14 = int_to_ptr.hbm [resolvable:$true] %s1847_s14 }
  0x1f   :  { %381 = vmatpush.msra.mxu2 %v2336_v13  ;;  %1960 = vmatmul.msk.f32.vlgmr.msra.gmra.mxu0 %vm180_vm0, %v158_v21  ;;  %v344_v31 = vmul.f32 0.1, %v343_v29  ;;  %s2220_s15 = smov 128   ;;  %s2221_s16 = smov 8  }
  0x20   :  { %744 = vmatpush.msrb.mxu0 %v2346_v15  ;;  %502 = vmatpush.msra.mxu3 %v2336_v13 }
  0x21   :  { %382 = vmatpush.msra.mxu2 %v2331_v12  ;;  %1111 = vmatpush.msra.mxu1 %v2341_v14  ;;  %v2482_v33 = vadd.f32 %v344_v31, %v339_v25 }
  0x22   :  { %745 = vmatpush.msrb.mxu0 %v2341_v14  ;;  %503 = vmatpush.msra.mxu3 %v2331_v12 }
  0x23   :  { %383 = vmatpush.msra.mxu2 %v2326_v11  ;;  %1112 = vmatpush.msra.mxu1 %v2336_v13  ;;  %v351_v35 = vsub.f32 %v2482_v33, %v2484_v34 }
  0x24   :  { %746 = vmatpush.msrb.mxu0 %v2336_v13  ;;  %504 = vmatpush.msra.mxu3 %v2326_v11 }
  0x25   :  { %384 = vmatpush.msra.mxu2 %v2321_v10  ;;  %1113 = vmatpush.msra.mxu1 %v2331_v12  ;;  %vm2504_vm1 = vcmp.gt.f32.partialorder %v351_v35, 0.0 }
  0x26   :  { %747 = vmatpush.msrb.mxu0 %v2331_v12  ;;  %505 = vmatpush.msra.mxu3 %v2321_v10  ;;  %v1980_v37 = vsel %vm2504_vm1, 1.0, %v2213_v19 }
  0x27   :  { %385 = vmatpush.msra.mxu2 %v2316_v9  ;;  %1961 = vmatmul.msk.f32.gmra.mxu0 %vm180_vm0, %v159_v22  ;;  %v355_v39 = vsub.f32 1.0, %v1980_v37  ;;  %v398_v40 = vmul.f32 0.0025714287, %v1980_v37  ;;  %v357_v43 = vmul.f32 0.0, %v1980_v37 }
  0x28   :  { %748 = vmatpush.msrb.mxu0 %v2326_v11  ;;  %506 = vmatpush.msra.mxu3 %v2316_v9 }
  0x29   :  { %386 = vmatpush.msra.mxu2 %v2311_v8  ;;  %1114 = vmatpush.msra.mxu1 %v2326_v11  ;;  %v356_v42 = vmul.f32 %v355_v39, %v2482_v33  ;;  %v399_v45 = vadd.f32 %v398_v40, %v2484_v34 }
  0x2a   :  { %749 = vmatpush.msrb.mxu0 %v2321_v10  ;;  %507 = vmatpush.msra.mxu3 %v2311_v8 }
  0x2b   :  { %387 = vmatpush.msra.mxu2 %v2306_v7  ;;  %1115 = vmatpush.msra.mxu1 %v2321_v10  ;;  %v358_v47 = vadd.f32 %v357_v43, %v356_v42  ;;  %v407_v49 = vsub.f32 1.0, %v399_v45 }
  0x2c   :  { %750 = vmatpush.msrb.mxu0 %v2316_v9  ;;  %508 = vmatpush.msra.mxu3 %v2306_v7 }
  0x2d   :  { %388 = vmatpush.msra.mxu2 %v2301_v6  ;;  %1116 = vmatpush.msra.mxu1 %v2316_v9  ;;  %v401_v50 = vsub.f32 0.0, %v358_v47  ;;  %v408_v53 = vmul.f32 1.4285714e-06, %v407_v49 }
  0x2e   :  { %751 = vmatpush.msrb.mxu0 %v2311_v8  ;;  %509 = vmatpush.msra.mxu3 %v2301_v6 }
  0x2f   :  { %389 = vmatpush.msra.mxu2 %v2296_v5  ;;  %1117 = vmatpush.msra.mxu1 %v2311_v8  ;;  %v409_v56 = vadd.f32 %v408_v53, %v399_v45 }
  0x30   :  { %752 = vmatpush.msrb.mxu0 %v2306_v7  ;;  %510 = vmatpush.msra.mxu3 %v2296_v5 }
  0x31   :  { %390 = vmatpush.msra.mxu2 %v2291_v4  ;;  %1118 = vmatpush.msra.mxu1 %v2306_v7 }
  0x32   :  { %753 = vmatpush.msrb.mxu0 %v2301_v6  ;;  %511 = vmatpush.msra.mxu3 %v2291_v4 }
  0x33   :  { %391 = vmatpush.msra.mxu2 %v2286_v3  ;;  %1119 = vmatpush.msra.mxu1 %v2301_v6 }
  0x34   :  { %754 = vmatpush.msrb.mxu0 %v2296_v5  ;;  %512 = vmatpush.msra.mxu3 %v2286_v3 }
  0x35   :  { %392 = vmatpush.msra.mxu2 %v2281_v2  ;;  %1120 = vmatpush.msra.mxu1 %v2296_v5 }
  0x36   :  { %755 = vmatpush.msrb.mxu0 %v2291_v4  ;;  %393 = vmatmul.f32.vlgmr.msra.gmra.mxu2 %v338_v23 }
  0x37   :  { %513 = vmatpush.msra.mxu3 %v2281_v2  ;;  %437 = vmatpush.msrb.mxu2 %v2356_v17 }
  0x38   :  { %1962 = vmatmul.msk.f32.gmra.mxu0 %vm180_vm0, %v160_v24  ;;  %1121 = vmatpush.msra.mxu1 %v2291_v4 }
  0x39   :  { %559 = vmatpush.msrb.mxu3 %v2356_v17  ;;  %756 = vmatpush.msrb.mxu0 %v2286_v3 }
  0x3a   :  { %438 = vmatpush.msrb.mxu2 %v2351_v16  ;;  %1122 = vmatpush.msra.mxu1 %v2286_v3 }
  0x3b   :  { %560 = vmatpush.msrb.mxu3 %v2351_v16  ;;  %757 = vmatpush.msrb.mxu0 %v2281_v2 }
  0x3c   :  { %439 = vmatpush.msrb.mxu2 %v2346_v15  ;;  %1123 = vmatpush.msra.mxu1 %v2281_v2 }
  0x3d   :  { %561 = vmatpush.msrb.mxu3 %v2346_v15  ;;  %1291 = vmatpush.msra.mxu0 %v2356_v17 }
  0x3e   :  { %440 = vmatpush.msrb.mxu2 %v2341_v14  ;;  %1352 = vmatpush.msrb.mxu1 %v2356_v17 }
  0x3f   :  { %562 = vmatpush.msrb.mxu3 %v2341_v14  ;;  %1292 = vmatpush.msra.mxu0 %v2351_v16 }
  0x40   :  { %441 = vmatpush.msrb.mxu2 %v2336_v13  ;;  %1353 = vmatpush.msrb.mxu1 %v2351_v16 }
  0x41   :  { %563 = vmatpush.msrb.mxu3 %v2336_v13  ;;  %1293 = vmatpush.msra.mxu0 %v2346_v15 }
  0x42   :  { %442 = vmatpush.msrb.mxu2 %v2331_v12  ;;  %1354 = vmatpush.msrb.mxu1 %v2346_v15 }
  0x43   :  { %564 = vmatpush.msrb.mxu3 %v2331_v12  ;;  %1294 = vmatpush.msra.mxu0 %v2341_v14 }
  0x44   :  { %443 = vmatpush.msrb.mxu2 %v2326_v11  ;;  %1355 = vmatpush.msrb.mxu1 %v2341_v14 }
  0x45   :  { %565 = vmatpush.msrb.mxu3 %v2326_v11  ;;  %1295 = vmatpush.msra.mxu0 %v2336_v13 }
  0x46   :  { %444 = vmatpush.msrb.mxu2 %v2321_v10  ;;  %1356 = vmatpush.msrb.mxu1 %v2336_v13 }
  0x47   :  { %566 = vmatpush.msrb.mxu3 %v2321_v10  ;;  %1296 = vmatpush.msra.mxu0 %v2331_v12 }
  0x48   :  { %445 = vmatpush.msrb.mxu2 %v2316_v9  ;;  %1357 = vmatpush.msrb.mxu1 %v2331_v12 }
  0x49   :  { %567 = vmatpush.msrb.mxu3 %v2316_v9  ;;  %1297 = vmatpush.msra.mxu0 %v2326_v11 }
  0x4a   :  { %446 = vmatpush.msrb.mxu2 %v2311_v8  ;;  %1358 = vmatpush.msrb.mxu1 %v2326_v11 }
  0x4b   :  { %568 = vmatpush.msrb.mxu3 %v2311_v8  ;;  %1298 = vmatpush.msra.mxu0 %v2321_v10 }
  0x4c   :  { %447 = vmatpush.msrb.mxu2 %v2306_v7  ;;  %1359 = vmatpush.msrb.mxu1 %v2321_v10 }
  0x4d   :  { %569 = vmatpush.msrb.mxu3 %v2306_v7  ;;  %1299 = vmatpush.msra.mxu0 %v2316_v9 }
  0x4e   :  { %448 = vmatpush.msrb.mxu2 %v2301_v6  ;;  %1360 = vmatpush.msrb.mxu1 %v2316_v9 }
  0x4f   :  { %570 = vmatpush.msrb.mxu3 %v2301_v6  ;;  %1300 = vmatpush.msra.mxu0 %v2311_v8 }
  0x50   :  { %449 = vmatpush.msrb.mxu2 %v2296_v5  ;;  %1361 = vmatpush.msrb.mxu1 %v2311_v8 }
  0x51   :  { %571 = vmatpush.msrb.mxu3 %v2296_v5  ;;  %1301 = vmatpush.msra.mxu0 %v2306_v7 }
  0x52   :  { %450 = vmatpush.msrb.mxu2 %v2291_v4  ;;  %1362 = vmatpush.msrb.mxu1 %v2306_v7 }
  0x53   :  { %572 = vmatpush.msrb.mxu3 %v2291_v4  ;;  %1302 = vmatpush.msra.mxu0 %v2301_v6 }
  0x54   :  { %451 = vmatpush.msrb.mxu2 %v2286_v3  ;;  %1363 = vmatpush.msrb.mxu1 %v2301_v6 }
  0x55   :  { %573 = vmatpush.msrb.mxu3 %v2286_v3  ;;  %1303 = vmatpush.msra.mxu0 %v2296_v5 }
  0x56   :  { %452 = vmatpush.msrb.mxu2 %v2281_v2  ;;  %1364 = vmatpush.msrb.mxu1 %v2296_v5 }
  0x57   :  { %1982 = vmatmul.msk.f32.vlgmr.msrb.gmra.mxu2 %vm2504_vm1, %v2214_v20  ;;  %574 = vmatpush.msrb.mxu3 %v2281_v2 }
  0x58   :  { %620 = vmatpush.msra.mxu2 %v2356_v17  ;;  %1304 = vmatpush.msra.mxu0 %v2291_v4 }
  0x59   :  { %1365 = vmatpush.msrb.mxu1 %v2291_v4  ;;  %1963 = vmatmul.msk.f32.gmra.mxu0 %vm180_vm0, %v161_v38  ;;  %v163_v38 = vld [vmem:[%s3104_s0 + $0x28] sm:$0xff] }
  0x5a   :  { %621 = vmatpush.msra.mxu2 %v2351_v16  ;;  %1305 = vmatpush.msra.mxu0 %v2286_v3 }
  0x5b   :  { %1366 = vmatpush.msrb.mxu1 %v2286_v3 }
  0x5c   :  { %622 = vmatpush.msra.mxu2 %v2346_v15  ;;  %1306 = vmatpush.msra.mxu0 %v2281_v2 }
  0x5d   :  { %1367 = vmatpush.msrb.mxu1 %v2281_v2 }
  0x5e   :  { %623 = vmatpush.msra.mxu2 %v2341_v14 }
  0x60   :  { %624 = vmatpush.msra.mxu2 %v2336_v13 }
  0x61   :  { %1964 = vmatmul.msk.f32.gmra.mxu0 %vm180_vm0, %v162_v60  ;;  %v164_v60 = vld [vmem:[%s3104_s0 + $0x30] sm:$0xff] }
  0x62   :  { %625 = vmatpush.msra.mxu2 %v2331_v12 }
  0x64   :  { %626 = vmatpush.msra.mxu2 %v2326_v11 }
  0x66   :  { %627 = vmatpush.msra.mxu2 %v2321_v10 }
  0x68   :  { %628 = vmatpush.msra.mxu2 %v2316_v9 }
  0x69   :  { %1965 = vmatmul.msk.f32.gmra.mxu0 %vm180_vm0, %v163_v38 }
  0x6a   :  { %629 = vmatpush.msra.mxu2 %v2311_v8 }
  0x6c   :  { %630 = vmatpush.msra.mxu2 %v2306_v7 }
  0x6e   :  { %631 = vmatpush.msra.mxu2 %v2301_v6 }
  0x70   :  { %632 = vmatpush.msra.mxu2 %v2296_v5 }
  0x71   :  { %1966 = vmatmul.msk.f32.gmra.mxu0 %vm180_vm0, %v164_v60 }
  0x72   :  { %633 = vmatpush.msra.mxu2 %v2291_v4 }
  0x74   :  { %634 = vmatpush.msra.mxu2 %v2286_v3 }
  0x76   :  { %635 = vmatpush.msra.mxu2 %v2281_v2 }
  0x78   :  { %803 = vmatpush.msrb.mxu2 %v2356_v17 }
  0x7a   :  { %804 = vmatpush.msrb.mxu2 %v2351_v16 }
  0x7c   :  { %805 = vmatpush.msrb.mxu2 %v2346_v15 }
  0x7e   :  { %806 = vmatpush.msrb.mxu2 %v2341_v14 }
  0x80   :  { %807 = vmatpush.msrb.mxu2 %v2336_v13 }
  0x82   :  { %808 = vmatpush.msrb.mxu2 %v2331_v12 }
  0x84   :  { %809 = vmatpush.msrb.mxu2 %v2326_v11 }
  0x86   :  { %810 = vmatpush.msrb.mxu2 %v2321_v10 }
  0x88   :  { %811 = vmatpush.msrb.mxu2 %v2316_v9 }
  0x8a   :  { %812 = vmatpush.msrb.mxu2 %v2311_v8 }
  0x8c   :  { %813 = vmatpush.msrb.mxu2 %v2306_v7 }
  0x8e   :  { %814 = vmatpush.msrb.mxu2 %v2301_v6 }
  0x90   :  { %815 = vmatpush.msrb.mxu2 %v2296_v5 }
  0x92   :  { %816 = vmatpush.msrb.mxu2 %v2291_v4 }
  0x94   :  { %817 = vmatpush.msrb.mxu2 %v2286_v3 }
  0x96   :  { %818 = vmatpush.msrb.mxu2 %v2281_v2 }
  0x9c   :  { %v258_v46 = vpop.f32.mrf.mxu0 }
  0x9d   :  { %v360_v48 = vadd.f32 %v347_v44, %v258_v46 }
  0xa4   :  { %v261_v23 = vpop.f32.mrf.mxu0 }
  0xb9   :  { %v394_v51 = vpop.f32.mrf.mxu2 }
  0xba   :  { %v397_v52 = vadd.f32 %v394_v51, %v360_v48 }
  0xbc   :  { %v402_v54 = vadd.f32 %v401_v50, %v397_v52  ;;  %v405_v63 = vmul.f32 0.2, %v397_v52 }
  0xbe   :  { %v403_v55 = vmul.f32 0.1, %v402_v54  ;;  %v406_v18 = vsub.f32 %v397_v52, %v405_v63  ;;  %v165_v63 = vld [vmem:[%s3104_s0 + $0x38] sm:$0xff] }
  0xbf   :  { %1967 = vmatmul.msk.f32.gmra.mxu0 %vm180_vm0, %v165_v63 }
  0xc0   :  { %v404_v57 = vadd.f32 %v403_v55, %v358_v47  ;;  %v420_v25 = vadd.f32 %v406_v18, %v261_v23  ;;  %v264_v47 = vpop.f32.mrf.mxu0  ;;  %v166_v18 = vld [vmem:[%s3104_s0 + $0x40] sm:$0xff] }
  0xc2   :  { %v410_v58 = vsub.f32 %v404_v57, %v409_v56 }
  0xc4   :  { %vm2567_vm2 = vcmp.gt.f32.partialorder %v410_v58, 0.0 }
  0xc5   :  { %1984 = vmatmul.msk.f32.vlgmr.msra.gmra.mxu3 %vm2567_vm2, %v2214_v20  ;;  %v1981_v61 = vsel %vm2567_vm2, 1.0, %v2213_v19 }
  0xc6   :  { %681 = vmatpush.msra.mxu3 %v2356_v17  ;;  %v414_v62 = vsub.f32 1.0, %v1981_v61  ;;  %v458_v0 = vmul.f32 0.0025714287, %v1981_v61  ;;  %v416_v21 = vmul.f32 0.0, %v1981_v61 }
  0xc7   :  { %1968 = vmatmul.msk.f32.gmra.mxu0 %vm180_vm0, %v166_v18 }
  0xc8   :  { %682 = vmatpush.msra.mxu3 %v2351_v16  ;;  %v415_v1 = vmul.f32 %v414_v62, %v404_v57  ;;  %v459_v22 = vadd.f32 %v458_v0, %v409_v56 }
  0xca   :  { %683 = vmatpush.msra.mxu3 %v2346_v15  ;;  %v417_v24 = vadd.f32 %v416_v21, %v415_v1  ;;  %v468_v26 = vsub.f32 1.0, %v459_v22 }
  0xcc   :  { %684 = vmatpush.msra.mxu3 %v2341_v14  ;;  %v462_v29 = vsub.f32 0.0, %v417_v24  ;;  %v469_v31 = vmul.f32 1.4285714e-06, %v468_v26 }
  0xce   :  { %685 = vmatpush.msra.mxu3 %v2336_v13  ;;  %v470_v34 = vadd.f32 %v469_v31, %v459_v22 }
  0xd0   :  { %686 = vmatpush.msra.mxu3 %v2331_v12 }
  0xd2   :  { %687 = vmatpush.msra.mxu3 %v2326_v11 }
  0xd4   :  { %688 = vmatpush.msra.mxu3 %v2321_v10 }
  0xd6   :  { %689 = vmatpush.msra.mxu3 %v2316_v9 }
  0xd8   :  { %690 = vmatpush.msra.mxu3 %v2311_v8 }
  0xda   :  { %v454_v27 = vpop.f32.mrf.mxu2  ;;  %691 = vmatpush.msra.mxu3 %v2306_v7 }
  0xdb   :  { %v457_v28 = vadd.f32 %v454_v27, %v420_v25  ;;  %v267_v27 = vpop.f32.mrf.mxu0 }
  0xdc   :  { %692 = vmatpush.msra.mxu3 %v2301_v6 }
  0xdd   :  { %v463_v30 = vadd.f32 %v462_v29, %v457_v28  ;;  %v466_v41 = vmul.f32 0.2, %v457_v28  ;;  %v167_v29 = vld [vmem:[%s3104_s0 + $0x48] sm:$0xff] }
  0xde   :  { %693 = vmatpush.msra.mxu3 %v2296_v5  ;;  %1969 = vmatmul.msk.f32.gmra.mxu0 %vm180_vm0, %v167_v29 }
  0xdf   :  { %v464_v32 = vmul.f32 0.1, %v463_v30  ;;  %v467_v44 = vsub.f32 %v457_v28, %v466_v41 }
  0xe0   :  { %694 = vmatpush.msra.mxu3 %v2291_v4 }
  0xe1   :  { %v465_v33 = vadd.f32 %v464_v32, %v417_v24  ;;  %v481_v49 = vadd.f32 %v467_v44, %v264_v47  ;;  %v171_v47 = vld [vmem:[%s3104_s0 + $0x68] sm:$0xff] }
  0xe2   :  { %695 = vmatpush.msra.mxu3 %v2286_v3 }
  0xe3   :  { %v471_v35 = vsub.f32 %v465_v33, %v470_v34 }
  0xe4   :  { %696 = vmatpush.msra.mxu3 %v2281_v2 }
  0xe5   :  { %vm2596_vm3 = vcmp.gt.f32.partialorder %v471_v35, 0.0 }
  0xe6   :  { %1986 = vmatmul.msk.f32.vlgmr.msrb.gmra.mxu3 %vm2596_vm3, %v2214_v20  ;;  %v1983_v39 = vsel %vm2596_vm3, 1.0, %v2213_v19 }
  0xe7   :  { %864 = vmatpush.msrb.mxu3 %v2356_v17  ;;  %v475_v40 = vsub.f32 1.0, %v1983_v39  ;;  %v519_v42 = vmul.f32 0.0025714287, %v1983_v39  ;;  %v477_v45 = vmul.f32 0.0, %v1983_v39 }
  0xe9   :  { %865 = vmatpush.msrb.mxu3 %v2351_v16  ;;  %v476_v43 = vmul.f32 %v475_v40, %v465_v33  ;;  %v520_v46 = vadd.f32 %v519_v42, %v470_v34  ;;  %v168_v40 = vld [vmem:[%s3104_s0 + $0x50] sm:$0xff] }
  0xea   :  { %1970 = vmatmul.msk.f32.gmra.mxu0 %vm180_vm0, %v168_v40 }
  0xeb   :  { %866 = vmatpush.msrb.mxu3 %v2346_v15  ;;  %v478_v48 = vadd.f32 %v477_v45, %v476_v43  ;;  %v529_v50 = vsub.f32 1.0, %v520_v46  ;;  %v169_v45 = vld [vmem:[%s3104_s0 + $0x58] sm:$0xff] }
  0xed   :  { %867 = vmatpush.msrb.mxu3 %v2341_v14  ;;  %v523_v53 = vsub.f32 0.0, %v478_v48  ;;  %v530_v55 = vmul.f32 1.4285714e-06, %v529_v50  ;;  %v174_v50 = vld [vmem:[%s3104_s0 + $0x80] sm:$0xff] }
  0xef   :  { %868 = vmatpush.msrb.mxu3 %v2336_v13  ;;  %v531_v58 = vadd.f32 %v530_v55, %v520_v46  ;;  %v170_v46 = vld [vmem:[%s3104_s0 + $0x60] sm:$0xff] }
  0xf1   :  { %869 = vmatpush.msrb.mxu3 %v2331_v12 }
  0xf2   :  { %1971 = vmatmul.msk.f32.gmra.mxu0 %vm180_vm0, %v169_v45 }
  0xf3   :  { %870 = vmatpush.msrb.mxu3 %v2326_v11 }
  0xf5   :  { %871 = vmatpush.msrb.mxu3 %v2321_v10 }
  0xf7   :  { %872 = vmatpush.msrb.mxu3 %v2316_v9 }
  0xf9   :  { %873 = vmatpush.msrb.mxu3 %v2311_v8 }
  0xfa   :  { %1972 = vmatmul.msk.f32.gmra.mxu0 %vm180_vm0, %v170_v46 }
  0xfb   :  { %874 = vmatpush.msrb.mxu3 %v2306_v7 }
  0xfd   :  { %875 = vmatpush.msrb.mxu3 %v2301_v6 }
  0xff   :  { %876 = vmatpush.msrb.mxu3 %v2296_v5 }
 0x101   :  { %877 = vmatpush.msrb.mxu3 %v2291_v4 }
 0x102   :  { %1973 = vmatmul.msk.f32.gmra.mxu0 %vm180_vm0, %v171_v47 }
 0x103   :  { %878 = vmatpush.msrb.mxu3 %v2286_v3 }
 0x105   :  { %879 = vmatpush.msrb.mxu3 %v2281_v2 }
 0x148   :  { %v515_v51 = vpop.f32.mrf.mxu3 }
 0x149   :  { %v518_v52 = vadd.f32 %v515_v51, %v481_v49  ;;  %v173_v49 = vld [vmem:[%s3104_s0 + $0x78] sm:$0xff]  ;;  %v175_v51 = vld [vmem:[%s3104_s0 + $0x88] sm:$0xff] }
 0x14b   :  { %v524_v54 = vadd.f32 %v523_v53, %v518_v52  ;;  %v527_v21 = vmul.f32 0.2, %v518_v52  ;;  %v177_v53 = vld [vmem:[%s3104_s0 + $0x98] sm:$0xff] }
 0x14d   :  { %v525_v56 = vmul.f32 0.1, %v524_v54  ;;  %v528_v24 = vsub.f32 %v518_v52, %v527_v21  ;;  %v176_v52 = vld [vmem:[%s3104_s0 + $0x90] sm:$0xff]  ;;  %v270_v54 = vpop.f32.mrf.mxu0 }
 0x14f   :  { %v526_v57 = vadd.f32 %v525_v56, %v478_v48  ;;  %v542_v30 = vadd.f32 %v528_v24, %v267_v27  ;;  %v172_v48 = vld [vmem:[%s3104_s0 + $0x70] sm:$0xff]  ;;  %s2215_s0 = smov [#allocation13]  }
 0x150   :  { %1974 = vmatmul.msk.f32.gmra.mxu0 %vm180_vm0, %v172_v48  ;;  %s1859_s20 = sshll.u32 %s2215_s0, 4  ;;  %s1860_s20 = int_to_ptr.vmem [resolvable:$true] %s1859_s20 }
 0x151   :  { %v532_v61 = vsub.f32 %v526_v57, %v531_v58 }
 0x153   :  { %vm2631_vm4 = vcmp.gt.f32.partialorder %v532_v61, 0.0 }
 0x154   :  { %1988 = vmatmul.msk.f32.vlgmr.msra.gmra.mxu2 %vm2631_vm4, %v2214_v20  ;;  %v1985_v0 = vsel %vm2631_vm4, 1.0, %v2213_v19 }
 0x155   :  { %925 = vmatpush.msra.mxu2 %v2356_v17  ;;  %v536_v1 = vsub.f32 1.0, %v1985_v0  ;;  %v580_v22 = vmul.f32 0.0025714287, %v1985_v0  ;;  %v538_v25 = vmul.f32 0.0, %v1985_v0 }
 0x157   :  { %926 = vmatpush.msra.mxu2 %v2351_v16  ;;  %v537_v23 = vmul.f32 %v536_v1, %v526_v57  ;;  %v581_v26 = vadd.f32 %v580_v22, %v531_v58  ;;  %v273_v57 = vpop.f32.mrf.mxu0 }
 0x158   :  { %1975 = vmatmul.msk.f32.gmra.mxu0 %vm180_vm0, %v173_v49 }
 0x159   :  { %927 = vmatpush.msra.mxu2 %v2346_v15  ;;  %v539_v28 = vadd.f32 %v538_v25, %v537_v23  ;;  %v590_v31 = vsub.f32 1.0, %v581_v26 }
 0x15b   :  { %928 = vmatpush.msra.mxu2 %v2341_v14  ;;  %v584_v34 = vsub.f32 0.0, %v539_v28  ;;  %v591_v38 = vmul.f32 1.4285714e-06, %v590_v31 }
 0x15d   :  { %929 = vmatpush.msra.mxu2 %v2336_v13  ;;  %v592_v42 = vadd.f32 %v591_v38, %v581_v26 }
 0x15f   :  { %930 = vmatpush.msra.mxu2 %v2331_v12  ;;  %v276_v21 = vpop.f32.mrf.mxu0 }
 0x160   :  { %1976 = vmatmul.msk.f32.gmra.mxu0 %vm180_vm0, %v174_v50 }
 0x161   :  { %931 = vmatpush.msra.mxu2 %v2326_v11 }
 0x163   :  { %932 = vmatpush.msra.mxu2 %v2321_v10 }
 0x165   :  { %933 = vmatpush.msra.mxu2 %v2316_v9 }
 0x167   :  { %934 = vmatpush.msra.mxu2 %v2311_v8 }
 0x168   :  { %1977 = vmatmul.msk.f32.gmra.mxu0 %vm180_vm0, %v175_v51 }
 0x169   :  { %v576_v32 = vpop.f32.mrf.mxu3  ;;  %935 = vmatpush.msra.mxu2 %v2306_v7 }
 0x16a   :  { %v2663_v33 = vadd.f32 %v576_v32, %v542_v30  ;;  %v2740_v32 = vpop.f32.mrf.mxu0 }
 0x16b   :  { %936 = vmatpush.msra.mxu2 %v2301_v6 }
 0x16c   :  { %v585_v35 = vadd.f32 %v584_v34, %v2663_v33  ;;  %v588_v58 = vmul.f32 0.2, %v2663_v33 }
 0x16d   :  { %937 = vmatpush.msra.mxu2 %v2296_v5 }
 0x16e   :  { %v586_v39 = vmul.f32 0.1, %v585_v35  ;;  %v589_v63 = vsub.f32 %v2663_v33, %v588_v58 }
 0x16f   :  { %938 = vmatpush.msra.mxu2 %v2291_v4 }
 0x170   :  { %v587_v41 = vadd.f32 %v586_v39, %v539_v28  ;;  %1978 = vmatmul.msk.f32.gmra.mxu0 %vm180_vm0, %v176_v52  ;;  %v603_v22 = vadd.f32 %v589_v63, %v270_v54 }
 0x171   :  { %939 = vmatpush.msra.mxu2 %v2286_v3 }
 0x172   :  { %v593_v43 = vsub.f32 %v587_v41, %v592_v42  ;;  %v2751_v33 = vpop.f32.mrf.mxu0 }
 0x173   :  { %940 = vmatpush.msra.mxu2 %v2281_v2 }
 0x174   :  { %vm2675_vm5 = vcmp.gt.f32.partialorder %v593_v43, 0.0 }
 0x175   :  { %1990 = vmatmul.msk.f32.vlgmr.msra.gmra.mxu3 %vm2675_vm5, %v2214_v20  ;;  %v1987_v55 = vsel %vm2675_vm5, 1.0, %v2213_v19 }
 0x176   :  { %1047 = vmatpush.msra.mxu3 %v2356_v17  ;;  %v597_v56 = vsub.f32 1.0, %v1987_v55  ;;  %v641_v60 = vmul.f32 0.0025714287, %v1987_v55  ;;  %v599_v0 = vmul.f32 0.0, %v1987_v55 }
 0x178   :  { %1048 = vmatpush.msra.mxu3 %v2351_v16  ;;  %1979 = vmatmul.msk.f32.gmra.mxu0 %vm180_vm0, %v177_v53  ;;  %v598_v61 = vmul.f32 %v597_v56, %v587_v41  ;;  %v642_v1 = vadd.f32 %v641_v60, %v592_v42 }
 0x17a   :  { %1049 = vmatpush.msra.mxu3 %v2346_v15  ;;  %v600_v18 = vadd.f32 %v599_v0, %v598_v61  ;;  %v651_v23 = vsub.f32 1.0, %v642_v1  ;;  %v2761_v47 = vpop.f32.mrf.mxu0 }
 0x17c   :  { %1050 = vmatpush.msra.mxu3 %v2341_v14  ;;  %v645_v26 = vsub.f32 0.0, %v600_v18  ;;  %v652_v28 = vmul.f32 1.4285714e-06, %v651_v23 }
 0x17e   :  { %1051 = vmatpush.msra.mxu3 %v2336_v13  ;;  %v653_v31 = vadd.f32 %v652_v28, %v642_v1 }
 0x180   :  { %1052 = vmatpush.msra.mxu3 %v2331_v12 }
 0x182   :  { %1053 = vmatpush.msra.mxu3 %v2326_v11  ;;  %v2768_v60 = vpop.f32.mrf.mxu0 }
 0x184   :  { %1054 = vmatpush.msra.mxu3 %v2321_v10 }
 0x186   :  { %1055 = vmatpush.msra.mxu3 %v2316_v9 }
 0x188   :  { %1056 = vmatpush.msra.mxu3 %v2311_v8 }
 0x18a   :  { %1057 = vmatpush.msra.mxu3 %v2306_v7 }
 0x18c   :  { %1058 = vmatpush.msra.mxu3 %v2301_v6 }
 0x18e   :  { %1059 = vmatpush.msra.mxu3 %v2296_v5 }
 0x190   :  { %1060 = vmatpush.msra.mxu3 %v2291_v4 }
 0x192   :  { %1061 = vmatpush.msra.mxu3 %v2286_v3 }
 0x194   :  { %1062 = vmatpush.msra.mxu3 %v2281_v2 }
 0x1d7   :  { %v637_v24 = vpop.f32.mrf.mxu2 }
 0x1d8   :  { %v640_v25 = vadd.f32 %v637_v24, %v603_v22  ;;  %v2782_v22 = vpop.f32.mrf.mxu0 }
 0x1da   :  { %v646_v27 = vadd.f32 %v645_v26, %v640_v25  ;;  %v649_v40 = vmul.f32 0.2, %v640_v25 }
 0x1dc   :  { %v647_v29 = vmul.f32 0.1, %v646_v27  ;;  %v650_v43 = vsub.f32 %v640_v25, %v649_v40 }
 0x1de   :  { %v648_v30 = vadd.f32 %v647_v29, %v600_v18  ;;  %v664_v49 = vadd.f32 %v650_v43, %v273_v57 }
 0x1e0   :  { %v654_v34 = vsub.f32 %v648_v30, %v653_v31 }
 0x1e2   :  { %vm2742_vm6 = vcmp.gt.f32.partialorder %v654_v34, 0.0 }
 0x1e3   :  { %1992 = vmatmul.msk.f32.vlgmr.msrb.gmra.mxu0 %vm2742_vm6, %v2214_v20  ;;  %v1989_v38 = vsel %vm2742_vm6, 1.0, %v2213_v19 }
 0x1e4   :  { %1535 = vmatpush.msrb.mxu0 %v2356_v17  ;;  %v658_v39 = vsub.f32 1.0, %v1989_v38  ;;  %v702_v41 = vmul.f32 0.0025714287, %v1989_v38  ;;  %v660_v45 = vmul.f32 0.0, %v1989_v38 }
 0x1e6   :  { %1536 = vmatpush.msrb.mxu0 %v2351_v16  ;;  %v659_v42 = vmul.f32 %v658_v39, %v648_v30  ;;  %v703_v46 = vadd.f32 %v702_v41, %v653_v31 }
 0x1e8   :  { %1537 = vmatpush.msrb.mxu0 %v2346_v15  ;;  %v661_v48 = vadd.f32 %v660_v45, %v659_v42  ;;  %v712_v50 = vsub.f32 1.0, %v703_v46 }
 0x1ea   :  { %1538 = vmatpush.msrb.mxu0 %v2341_v14  ;;  %v706_v53 = vsub.f32 0.0, %v661_v48  ;;  %v713_v56 = vmul.f32 1.4285714e-06, %v712_v50 }
 0x1ec   :  { %1539 = vmatpush.msrb.mxu0 %v2336_v13  ;;  %v714_v63 = vadd.f32 %v713_v56, %v703_v46 }
 0x1ee   :  { %1540 = vmatpush.msrb.mxu0 %v2331_v12 }
 0x1f0   :  { %1541 = vmatpush.msrb.mxu0 %v2326_v11 }
 0x1f2   :  { %1542 = vmatpush.msrb.mxu0 %v2321_v10 }
 0x1f4   :  { %1543 = vmatpush.msrb.mxu0 %v2316_v9 }
 0x1f6   :  { %1544 = vmatpush.msrb.mxu0 %v2311_v8 }
 0x1f8   :  { %v698_v51 = vpop.f32.mrf.mxu3  ;;  %1545 = vmatpush.msrb.mxu0 %v2306_v7 }
 0x1f9   :  { %v701_v52 = vadd.f32 %v698_v51, %v664_v49 }
 0x1fa   :  { %1546 = vmatpush.msrb.mxu0 %v2301_v6 }
 0x1fb   :  { %v707_v54 = vadd.f32 %v706_v53, %v701_v52  ;;  %v710_v55 = vmul.f32 0.2, %v701_v52 }
 0x1fc   :  { %1547 = vmatpush.msrb.mxu0 %v2296_v5 }
 0x1fd   :  { %v708_v58 = vmul.f32 0.1, %v707_v54  ;;  %v711_v61 = vsub.f32 %v701_v52, %v710_v55 }
 0x1fe   :  { %1548 = vmatpush.msrb.mxu0 %v2291_v4 }
 0x1ff   :  { %v709_v57 = vadd.f32 %v708_v58, %v661_v48  ;;  %v725_v0 = vadd.f32 %v711_v61, %v276_v21  ;;  %v2789_v21 = vpop.f32.mrf.mxu0 }
 0x200   :  { %1549 = vmatpush.msrb.mxu0 %v2286_v3 }
 0x201   :  { %v715_v1 = vsub.f32 %v709_v57, %v714_v63 }
 0x202   :  { %1550 = vmatpush.msrb.mxu0 %v2281_v2 }
 0x203   :  { %vm2773_vm7 = vcmp.gt.f32.partialorder %v715_v1, 0.0 }
 0x204   :  { %1994 = vmatmul.msk.f32.vlgmr.msrb.gmra.mxu2 %vm2773_vm7, %v2214_v20  ;;  %v1991_v29 = vsel %vm2773_vm7, 1.0, %v2213_v19 }
 0x205   :  { %986 = vmatpush.msrb.mxu2 %v2356_v17  ;;  %v719_v30 = vsub.f32 1.0, %v1991_v29  ;;  %v763_v34 = vmul.f32 0.0025714287, %v1991_v29  ;;  %v721_v39 = vmul.f32 0.0, %v1991_v29 }
 0x207   :  { %987 = vmatpush.msrb.mxu2 %v2351_v16  ;;  %v2796_v23 = vpop.f32.mrf.mxu0  ;;  %v720_v38 = vmul.f32 %v719_v30, %v709_v57  ;;  %v764_v40 = vadd.f32 %v763_v34, %v714_v63 }
 0x209   :  { %988 = vmatpush.msrb.mxu2 %v2346_v15  ;;  %v722_v41 = vadd.f32 %v721_v39, %v720_v38  ;;  %v773_v42 = vsub.f32 1.0, %v764_v40 }
 0x20b   :  { %989 = vmatpush.msrb.mxu2 %v2341_v14  ;;  %v767_v46 = vsub.f32 0.0, %v722_v41  ;;  %v774_v49 = vmul.f32 1.4285714e-06, %v773_v42 }
 0x20d   :  { %990 = vmatpush.msrb.mxu2 %v2336_v13  ;;  %v775_v52 = vadd.f32 %v774_v49, %v764_v40 }
 0x20f   :  { %991 = vmatpush.msrb.mxu2 %v2331_v12  ;;  %v2803_v24 = vpop.f32.mrf.mxu0 }
 0x211   :  { %992 = vmatpush.msrb.mxu2 %v2326_v11 }
 0x213   :  { %993 = vmatpush.msrb.mxu2 %v2321_v10 }
 0x215   :  { %994 = vmatpush.msrb.mxu2 %v2316_v9 }
 0x217   :  { %995 = vmatpush.msrb.mxu2 %v2311_v8  ;;  %v2805_v25 = vpop.f32.mrf.mxu0 }
 0x219   :  { %996 = vmatpush.msrb.mxu2 %v2306_v7 }
 0x21b   :  { %997 = vmatpush.msrb.mxu2 %v2301_v6 }
 0x21d   :  { %998 = vmatpush.msrb.mxu2 %v2296_v5 }
 0x21f   :  { %999 = vmatpush.msrb.mxu2 %v2291_v4  ;;  %v2807_v26 = vpop.f32.mrf.mxu0 }
 0x221   :  { %1000 = vmatpush.msrb.mxu2 %v2286_v3 }
 0x223   :  { %1001 = vmatpush.msrb.mxu2 %v2281_v2 }
 0x227   :  { %v2809_v27 = vpop.f32.mrf.mxu0 }
 0x22f   :  { %v2811_v28 = vpop.f32.mrf.mxu0 }
 0x237   :  { %v2816_v31 = vpop.f32.mrf.mxu0 }
 0x260   :  { %v759_v43 = vpop.f32.mrf.mxu0 }
 0x261   :  { %v762_v45 = vadd.f32 %v759_v43, %v725_v0 }
 0x263   :  { %v768_v48 = vadd.f32 %v767_v46, %v762_v45  ;;  %v771_v58 = vmul.f32 0.2, %v762_v45 }
 0x265   :  { %v769_v50 = vmul.f32 0.1, %v768_v48  ;;  %v772_v0 = vsub.f32 %v762_v45, %v771_v58 }
 0x267   :  { %v770_v51 = vadd.f32 %v769_v50, %v722_v41  ;;  %v786_v30 = vadd.f32 %v772_v0, %v2740_v32 }
 0x269   :  { %v776_v53 = vsub.f32 %v770_v51, %v775_v52 }
 0x26b   :  { %vm2818_vm8 = vcmp.gt.f32.partialorder %v776_v53, 0.0 }
 0x26c   :  { %1996 = vmatmul.msk.f32.vlgmr.msrb.gmra.mxu3 %vm2818_vm8, %v2214_v20  ;;  %v1993_v55 = vsel %vm2818_vm8, 1.0, %v2213_v19 }
 0x26d   :  { %1230 = vmatpush.msrb.mxu3 %v2356_v17  ;;  %v780_v56 = vsub.f32 1.0, %v1993_v55  ;;  %v824_v61 = vmul.f32 0.0025714287, %v1993_v55  ;;  %v782_v63 = vmul.f32 0.0, %v1993_v55 }
 0x26f   :  { %1231 = vmatpush.msrb.mxu3 %v2351_v16  ;;  %v781_v57 = vmul.f32 %v780_v56, %v770_v51  ;;  %v825_v1 = vadd.f32 %v824_v61, %v775_v52 }
 0x271   :  { %1232 = vmatpush.msrb.mxu3 %v2346_v15  ;;  %v783_v29 = vadd.f32 %v782_v63, %v781_v57  ;;  %v834_v34 = vsub.f32 1.0, %v825_v1 }
 0x273   :  { %1233 = vmatpush.msrb.mxu3 %v2341_v14  ;;  %v828_v40 = vsub.f32 0.0, %v783_v29  ;;  %v835_v42 = vmul.f32 1.4285714e-06, %v834_v34 }
 0x275   :  { %1234 = vmatpush.msrb.mxu3 %v2336_v13  ;;  %v836_v46 = vadd.f32 %v835_v42, %v825_v1 }
 0x277   :  { %1235 = vmatpush.msrb.mxu3 %v2331_v12 }
 0x279   :  { %1236 = vmatpush.msrb.mxu3 %v2326_v11 }
 0x27b   :  { %1237 = vmatpush.msrb.mxu3 %v2321_v10 }
 0x27d   :  { %1238 = vmatpush.msrb.mxu3 %v2316_v9 }
 0x27f   :  { %1239 = vmatpush.msrb.mxu3 %v2311_v8 }
 0x281   :  { %1240 = vmatpush.msrb.mxu3 %v2306_v7 }
 0x283   :  { %1241 = vmatpush.msrb.mxu3 %v2301_v6 }
 0x285   :  { %1242 = vmatpush.msrb.mxu3 %v2296_v5 }
 0x287   :  { %v820_v38 = vpop.f32.mrf.mxu2  ;;  %1243 = vmatpush.msrb.mxu3 %v2291_v4 }
 0x288   :  { %v823_v39 = vadd.f32 %v820_v38, %v786_v30 }
 0x289   :  { %1244 = vmatpush.msrb.mxu3 %v2286_v3 }
 0x28a   :  { %v829_v41 = vadd.f32 %v828_v40, %v823_v39  ;;  %v832_v51 = vmul.f32 0.2, %v823_v39 }
 0x28b   :  { %1245 = vmatpush.msrb.mxu3 %v2281_v2 }
 0x28c   :  { %v830_v43 = vmul.f32 0.1, %v829_v41  ;;  %v833_v56 = vsub.f32 %v823_v39, %v832_v51 }
 0x28e   :  { %v831_v45 = vadd.f32 %v830_v43, %v783_v29  ;;  %v847_v57 = vadd.f32 %v833_v56, %v2751_v33 }
 0x290   :  { %v837_v48 = vsub.f32 %v831_v45, %v836_v46 }
 0x292   :  { %vm2845_vm9 = vcmp.gt.f32.partialorder %v837_v48, 0.0 }
 0x293   :  { %1998 = vmatmul.msk.f32.vlgmr.msra.gmra.mxu2 %vm2845_vm9, %v2214_v20  ;;  %v1995_v49 = vsel %vm2845_vm9, 1.0, %v2213_v19 }
 0x294   :  { %1169 = vmatpush.msra.mxu2 %v2356_v17  ;;  %v841_v50 = vsub.f32 1.0, %v1995_v49  ;;  %v885_v52 = vmul.f32 0.0025714287, %v1995_v49  ;;  %v843_v55 = vmul.f32 0.0, %v1995_v49 }
 0x296   :  { %1170 = vmatpush.msra.mxu2 %v2351_v16  ;;  %v842_v53 = vmul.f32 %v841_v50, %v831_v45  ;;  %v886_v58 = vadd.f32 %v885_v52, %v836_v46 }
 0x298   :  { %1171 = vmatpush.msra.mxu2 %v2346_v15  ;;  %v844_v61 = vadd.f32 %v843_v55, %v842_v53  ;;  %v895_v63 = vsub.f32 1.0, %v886_v58 }
 0x29a   :  { %1172 = vmatpush.msra.mxu2 %v2341_v14  ;;  %v889_v29 = vsub.f32 0.0, %v844_v61  ;;  %v896_v34 = vmul.f32 1.4285714e-06, %v895_v63 }
 0x29c   :  { %1173 = vmatpush.msra.mxu2 %v2336_v13  ;;  %v897_v41 = vadd.f32 %v896_v34, %v886_v58 }
 0x29e   :  { %1174 = vmatpush.msra.mxu2 %v2331_v12 }
 0x2a0   :  { %1175 = vmatpush.msra.mxu2 %v2326_v11 }
 0x2a2   :  { %1176 = vmatpush.msra.mxu2 %v2321_v10 }
 0x2a4   :  { %1177 = vmatpush.msra.mxu2 %v2316_v9 }
 0x2a6   :  { %1178 = vmatpush.msra.mxu2 %v2311_v8 }
 0x2a8   :  { %1179 = vmatpush.msra.mxu2 %v2306_v7 }
 0x2aa   :  { %1180 = vmatpush.msra.mxu2 %v2301_v6 }
 0x2ac   :  { %1181 = vmatpush.msra.mxu2 %v2296_v5 }
 0x2ae   :  { %1182 = vmatpush.msra.mxu2 %v2291_v4 }
 0x2b0   :  { %1183 = vmatpush.msra.mxu2 %v2286_v3 }
 0x2b2   :  { %1184 = vmatpush.msra.mxu2 %v2281_v2 }
 0x2ef   :  { %v881_v0 = vpop.f32.mrf.mxu3 }
 0x2f0   :  { %v884_v1 = vadd.f32 %v881_v0, %v847_v57 }
 0x2f2   :  { %v890_v30 = vadd.f32 %v889_v29, %v884_v1  ;;  %v893_v45 = vmul.f32 0.2, %v884_v1 }
 0x2f4   :  { %v891_v38 = vmul.f32 0.1, %v890_v30  ;;  %v894_v50 = vsub.f32 %v884_v1, %v893_v45 }
 0x2f6   :  { %v892_v40 = vadd.f32 %v891_v38, %v844_v61  ;;  %v908_v53 = vadd.f32 %v894_v50, %v2761_v47 }
 0x2f8   :  { %v898_v42 = vsub.f32 %v892_v40, %v897_v41 }
 0x2fa   :  { %vm2872_vm10 = vcmp.gt.f32.partialorder %v898_v42, 0.0 }
 0x2fb   :  { %2000 = vmatmul.msk.f32.vlgmr.msrb.gmra.mxu2 %vm2872_vm10, %v2214_v20  ;;  %v1997_v33 = vsel %vm2872_vm10, 1.0, %v2213_v19 }
 0x2fc   :  { %1413 = vmatpush.msrb.mxu2 %v2356_v17  ;;  %v902_v39 = vsub.f32 1.0, %v1997_v33  ;;  %v946_v46 = vmul.f32 0.0025714287, %v1997_v33  ;;  %v904_v49 = vmul.f32 0.0, %v1997_v33 }
 0x2fe   :  { %1414 = vmatpush.msrb.mxu2 %v2351_v16  ;;  %v903_v48 = vmul.f32 %v902_v39, %v892_v40  ;;  %v947_v51 = vadd.f32 %v946_v46, %v897_v41 }
 0x300   :  { %1415 = vmatpush.msrb.mxu2 %v2346_v15  ;;  %v905_v52 = vadd.f32 %v904_v49, %v903_v48  ;;  %v956_v55 = vsub.f32 1.0, %v947_v51 }
 0x302   :  { %1416 = vmatpush.msrb.mxu2 %v2341_v14  ;;  %v950_v61 = vsub.f32 0.0, %v905_v52  ;;  %v957_v63 = vmul.f32 1.4285714e-06, %v956_v55 }
 0x304   :  { %1417 = vmatpush.msrb.mxu2 %v2336_v13  ;;  %v958_v29 = vadd.f32 %v957_v63, %v947_v51 }
 0x306   :  { %1418 = vmatpush.msrb.mxu2 %v2331_v12 }
 0x308   :  { %1419 = vmatpush.msrb.mxu2 %v2326_v11 }
 0x30a   :  { %1420 = vmatpush.msrb.mxu2 %v2321_v10 }
 0x30c   :  { %1421 = vmatpush.msrb.mxu2 %v2316_v9 }
 0x30e   :  { %1422 = vmatpush.msrb.mxu2 %v2311_v8 }
 0x310   :  { %1423 = vmatpush.msrb.mxu2 %v2306_v7 }
 0x312   :  { %1424 = vmatpush.msrb.mxu2 %v2301_v6 }
 0x314   :  { %1425 = vmatpush.msrb.mxu2 %v2296_v5 }
 0x316   :  { %v942_v56 = vpop.f32.mrf.mxu2  ;;  %1426 = vmatpush.msrb.mxu2 %v2291_v4 }
 0x317   :  { %v945_v58 = vadd.f32 %v942_v56, %v908_v53 }
 0x318   :  { %1427 = vmatpush.msrb.mxu2 %v2286_v3 }
 0x319   :  { %v951_v57 = vadd.f32 %v950_v61, %v945_v58 }
 0x31a   :  { %1428 = vmatpush.msrb.mxu2 %v2281_v2 }
 0x31b   :  { %v952_v0 = vmul.f32 0.1, %v951_v57 }
 0x31d   :  { %v953_v1 = vadd.f32 %v952_v0, %v905_v52 }
 0x31f   :  { %v959_v30 = vsub.f32 %v953_v1, %v958_v29 }
 0x321   :  { %vm2899_vm11 = vcmp.gt.f32.partialorder %v959_v30, 0.0 }
 0x322   :  { %2002 = vmatmul.msk.f32.vlgmr.msra.gmra.mxu3 %vm2899_vm11, %v2214_v20 }
 0x323   :  { %1474 = vmatpush.msra.mxu3 %v2356_v17 }
 0x325   :  { %1475 = vmatpush.msra.mxu3 %v2351_v16 }
 0x327   :  { %1476 = vmatpush.msra.mxu3 %v2346_v15 }
 0x329   :  { %1477 = vmatpush.msra.mxu3 %v2341_v14 }
 0x32b   :  { %1478 = vmatpush.msra.mxu3 %v2336_v13 }
 0x32d   :  { %1479 = vmatpush.msra.mxu3 %v2331_v12 }
 0x32f   :  { %1480 = vmatpush.msra.mxu3 %v2326_v11 }
 0x331   :  { %1481 = vmatpush.msra.mxu3 %v2321_v10  ;;  %v1999_v10 = vsel %vm2899_vm11, 1.0, %v2213_v19 }
 0x332   :  { %v963_v11 = vsub.f32 1.0, %v1999_v10  ;;  %v1007_v12 = vmul.f32 0.0025714287, %v1999_v10  ;;  %v965_v13 = vmul.f32 0.0, %v1999_v10 }
 0x333   :  { %1482 = vmatpush.msra.mxu3 %v2316_v9  ;;  %v954_v9 = vmul.f32 0.2, %v945_v58 }
 0x334   :  { %v1008_v14 = vadd.f32 %v1007_v12, %v958_v29 }
 0x335   :  { %1483 = vmatpush.msra.mxu3 %v2311_v8  ;;  %v964_v8 = vmul.f32 %v963_v11, %v953_v1 }
 0x336   :  { %v1017_v15 = vsub.f32 1.0, %v1008_v14 }
 0x337   :  { %1484 = vmatpush.msra.mxu3 %v2306_v7  ;;  %v955_v7 = vsub.f32 %v945_v58, %v954_v9 }
 0x339   :  { %1485 = vmatpush.msra.mxu3 %v2301_v6  ;;  %v966_v6 = vadd.f32 %v965_v13, %v964_v8 }
 0x33b   :  { %1486 = vmatpush.msra.mxu3 %v2296_v5  ;;  %v969_v5 = vadd.f32 %v955_v7, %v2768_v60 }
 0x33d   :  { %1487 = vmatpush.msra.mxu3 %v2291_v4 }
 0x33f   :  { %1488 = vmatpush.msra.mxu3 %v2286_v3  ;;  %v1011_v3 = vsub.f32 0.0, %v966_v6 }
 0x341   :  { %1489 = vmatpush.msra.mxu3 %v2281_v2  ;;  %v1018_v2 = vmul.f32 1.4285714e-06, %v1017_v15 }
 0x343   :  { %v1019_v40 = vadd.f32 %v1018_v2, %v1008_v14 }
 0x37e   :  { %v1003_v4 = vpop.f32.mrf.mxu2 }
 0x37f   :  { %v1006_v16 = vadd.f32 %v1003_v4, %v969_v5 }
 0x381   :  { %v1012_v17 = vadd.f32 %v1011_v3, %v1006_v16  ;;  %v1015_v39 = vmul.f32 0.2, %v1006_v16 }
 0x383   :  { %v1013_v34 = vmul.f32 0.1, %v1012_v17  ;;  %v1016_v50 = vsub.f32 %v1006_v16, %v1015_v39 }
 0x385   :  { %v1014_v38 = vadd.f32 %v1013_v34, %v966_v6  ;;  %v1030_v53 = vadd.f32 %v1016_v50, %v2782_v22 }
 0x387   :  { %v1020_v41 = vsub.f32 %v1014_v38, %v1019_v40 }
 0x389   :  { %vm2926_vm12 = vcmp.gt.f32.partialorder %v1020_v41, 0.0 }
 0x38a   :  { %2004 = vmatmul.msk.f32.vlgmr.msra.gmra.mxu1 %vm2926_vm12, %v2214_v20  ;;  %v2001_v60 = vsel %vm2926_vm12, 1.0, %v2213_v19 }
 0x38b   :  { %v1024_v33 = vsub.f32 1.0, %v2001_v60  ;;  %v1068_v45 = vmul.f32 0.0025714287, %v2001_v60  ;;  %v1026_v48 = vmul.f32 0.0, %v2001_v60  ;;  %v1599_v60 = vld [vmem:[#allocation4 + $0x78] sm:$0xff] }
 0x38c   :  { %1604 = vmatpush.msra.mxu1 %v1599_v60 }
 0x38d   :  { %v1025_v46 = vmul.f32 %v1024_v33, %v1014_v38  ;;  %v1069_v49 = vadd.f32 %v1068_v45, %v1019_v40  ;;  %v1597_v33 = vld [vmem:[#allocation4 + $0x68] sm:$0xff]  ;;  %v1596_v45 = vld [vmem:[#allocation4 + $0x60] sm:$0xff] }
 0x38f   :  { %v1027_v51 = vadd.f32 %v1026_v48, %v1025_v46  ;;  %v1078_v52 = vsub.f32 1.0, %v1069_v49  ;;  %v1595_v48 = vld [vmem:[#allocation4 + $0x58] sm:$0xff] }
 0x391   :  { %v1072_v58 = vsub.f32 0.0, %v1027_v51  ;;  %v1079_v57 = vmul.f32 1.4285714e-06, %v1078_v52 }
 0x393   :  { %v1080_v1 = vadd.f32 %v1079_v57, %v1069_v49 }
 0x3a5   :  { %v1064_v55 = vpop.f32.mrf.mxu3 }
 0x3a6   :  { %v1067_v56 = vadd.f32 %v1064_v55, %v1030_v53 }
 0x3a8   :  { %v1073_v61 = vadd.f32 %v1072_v58, %v1067_v56  ;;  %v1076_v11 = vmul.f32 0.2, %v1067_v56 }
 0x3aa   :  { %v1074_v63 = vmul.f32 0.1, %v1073_v61  ;;  %v1077_v13 = vsub.f32 %v1067_v56, %v1076_v11 }
 0x3ac   :  { %v1075_v0 = vadd.f32 %v1074_v63, %v1027_v51  ;;  %v1091_v6 = vadd.f32 %v1077_v13, %v2789_v21  ;;  %v1598_v21 = vld [vmem:[#allocation4 + $0x70] sm:$0xff]  ;;  %v1593_v13 = vld [vmem:[#allocation4 + $0x48] sm:$0xff] }
 0x3ad   :  { %1605 = vmatpush.msra.mxu1 %v1598_v21  ;;  %v1594_v51 = vld [vmem:[#allocation4 + $0x50] sm:$0xff] }
 0x3ae   :  { %v1081_v29 = vsub.f32 %v1075_v0, %v1080_v1 }
 0x3af   :  { %1606 = vmatpush.msra.mxu1 %v1597_v33 }
 0x3b0   :  { %vm2937_vm13 = vcmp.gt.f32.partialorder %v1081_v29, 0.0 }
 0x3b1   :  { %2006 = vmatmul.msk.f32.vlgmr.msra.gmra.mxu2 %vm2937_vm13, %v2214_v20  ;;  %v2003_v22 = vsel %vm2937_vm13, 1.0, %v2213_v19  ;;  %1607 = vmatpush.msra.mxu1 %v1596_v45 }
 0x3b2   :  { %v1085_v10 = vsub.f32 1.0, %v2003_v22  ;;  %v1129_v9 = vmul.f32 0.0025714287, %v2003_v22  ;;  %v1087_v8 = vmul.f32 0.0, %v2003_v22 }
 0x3b3   :  { %1608 = vmatpush.msra.mxu1 %v1595_v48 }
 0x3b4   :  { %v1086_v12 = vmul.f32 %v1085_v10, %v1075_v0  ;;  %v1130_v7 = vadd.f32 %v1129_v9, %v1080_v1 }
 0x3b5   :  { %1609 = vmatpush.msra.mxu1 %v1594_v51 }
 0x3b6   :  { %v1088_v14 = vadd.f32 %v1087_v8, %v1086_v12  ;;  %v1139_v5 = vsub.f32 1.0, %v1130_v7 }
 0x3b7   :  { %1610 = vmatpush.msra.mxu1 %v1593_v13 }
 0x3b8   :  { %v1133_v16 = vsub.f32 0.0, %v1088_v14  ;;  %v1140_v17 = vmul.f32 1.4285714e-06, %v1139_v5  ;;  %v1588_v5 = vld [vmem:[#allocation4 + $0x20] sm:$0xff] }
 0x3ba   :  { %v1141_v38 = vadd.f32 %v1140_v17, %v1130_v7  ;;  %v1591_v7 = vld [vmem:[#allocation4 + $0x38] sm:$0xff] }
 0x407   :  { %v1125_v15 = vpop.f32.mrf.mxu1 }
 0x408   :  { %v1128_v4 = vadd.f32 %v1125_v15, %v1091_v6  ;;  %v1589_v6 = vld [vmem:[#allocation4 + $0x28] sm:$0xff]  ;;  %v1587_v15 = vld [vmem:[#allocation4 + $0x18] sm:$0xff] }
 0x40a   :  { %v1134_v3 = vadd.f32 %v1133_v16, %v1128_v4  ;;  %v1137_v49 = vmul.f32 0.2, %v1128_v4  ;;  %v1585_v16 = vld [vmem:[#allocation4 + $0x8] sm:$0xff] }
 0x40c   :  { %v1135_v2 = vmul.f32 0.1, %v1134_v3  ;;  %v1138_v55 = vsub.f32 %v1128_v4, %v1137_v49  ;;  %v1586_v4 = vld [vmem:[#allocation4 + $0x10] sm:$0xff]  ;;  %v1584_v3 = vld [vmem:[#allocation4] sm:$0xff] }
 0x40e   :  { %v1136_v34 = vadd.f32 %v1135_v2, %v1088_v14  ;;  %v1152_v61 = vadd.f32 %v1138_v55, %v2796_v23  ;;  %v1592_v23 = vld [vmem:[#allocation4 + $0x40] sm:$0xff]  ;;  %v1590_v14 = vld [vmem:[#allocation4 + $0x30] sm:$0xff] }
 0x40f   :  { %1611 = vmatpush.msra.mxu1 %v1592_v23 }
 0x410   :  { %v1142_v40 = vsub.f32 %v1136_v34, %v1141_v38 }
 0x411   :  { %1612 = vmatpush.msra.mxu1 %v1591_v7 }
 0x412   :  { %vm2948_vm14 = vcmp.gt.f32.partialorder %v1142_v40, 0.0 }
 0x413   :  { %2008 = vmatmul.msk.f32.vlgmr.msrb.gmra.mxu3 %vm2948_vm14, %v2214_v20  ;;  %v2005_v39 = vsel %vm2948_vm14, 1.0, %v2213_v19  ;;  %1613 = vmatpush.msra.mxu1 %v1590_v14 }
 0x414   :  { %v1146_v46 = vsub.f32 1.0, %v2005_v39  ;;  %v1190_v50 = vmul.f32 0.0025714287, %v2005_v39  ;;  %v1148_v53 = vmul.f32 0.0, %v2005_v39 }
 0x415   :  { %1614 = vmatpush.msra.mxu1 %v1589_v6 }
 0x416   :  { %v1147_v52 = vmul.f32 %v1146_v46, %v1136_v34  ;;  %v1191_v56 = vadd.f32 %v1190_v50, %v1141_v38 }
 0x417   :  { %1615 = vmatpush.msra.mxu1 %v1588_v5 }
 0x418   :  { %v1149_v58 = vadd.f32 %v1148_v53, %v1147_v52  ;;  %v1200_v57 = vsub.f32 1.0, %v1191_v56 }
 0x419   :  { %1616 = vmatpush.msra.mxu1 %v1587_v15 }
 0x41a   :  { %v1194_v1 = vsub.f32 0.0, %v1149_v58  ;;  %v1201_v22 = vmul.f32 1.4285714e-06, %v1200_v57 }
 0x41b   :  { %1617 = vmatpush.msra.mxu1 %v1586_v4 }
 0x41c   :  { %v1202_v9 = vadd.f32 %v1201_v22, %v1191_v56 }
 0x41d   :  { %1618 = vmatpush.msra.mxu1 %v1585_v16 }
 0x41f   :  { %1619 = vmatpush.msra.mxu1 %v1584_v3 }
 0x434   :  { %v1186_v63 = vpop.f32.mrf.mxu2 }
 0x435   :  { %v1189_v0 = vadd.f32 %v1186_v63, %v1152_v61 }
 0x437   :  { %v1195_v29 = vadd.f32 %v1194_v1, %v1189_v0  ;;  %v1198_v34 = vmul.f32 0.2, %v1189_v0 }
 0x439   :  { %v1196_v10 = vmul.f32 0.1, %v1195_v29  ;;  %v1199_v21 = vsub.f32 %v1189_v0, %v1198_v34  ;;  %v3040_v34 = vld [vmem:[#allocation5] ss:$0 sm:$0xff] }
 0x43b   :  { %v1197_v11 = vadd.f32 %v1196_v10, %v1149_v58  ;;  %v1213_v45 = vadd.f32 %v1199_v21, %v2803_v24 }
 0x43d   :  { %v1203_v12 = vsub.f32 %v1197_v11, %v1202_v9 }
 0x43f   :  { %vm2959_vm15 = vcmp.gt.f32.partialorder %v1203_v12, 0.0 }
 0x440   :  { %2010 = vmatmul.msk.f32.vlgmr.msra.gmra.mxu0 %vm2959_vm15, %v2214_v20  ;;  %v2007_v17 = vsel %vm2959_vm15, 1.0, %v2213_v19 }
 0x441   :  { %v1207_v2 = vsub.f32 1.0, %v2007_v17  ;;  %v1251_v38 = vmul.f32 0.0025714287, %v2007_v17  ;;  %v1209_v60 = vmul.f32 0.0, %v2007_v17 }
 0x443   :  { %v1208_v40 = vmul.f32 %v1207_v2, %v1197_v11  ;;  %v1252_v33 = vadd.f32 %v1251_v38, %v1202_v9 }
 0x445   :  { %v1210_v39 = vadd.f32 %v1209_v60, %v1208_v40  ;;  %v1261_v46 = vsub.f32 1.0, %v1252_v33 }
 0x447   :  { %v1255_v50 = vsub.f32 0.0, %v1210_v39  ;;  %v1262_v52 = vmul.f32 1.4285714e-06, %v1261_v46 }
 0x449   :  { %v1263_v56 = vadd.f32 %v1262_v52, %v1252_v33 }
 0x496   :  { %v1247_v48 = vpop.f32.mrf.mxu3 }
 0x497   :  { %v1250_v49 = vadd.f32 %v1247_v48, %v1213_v45 }
 0x499   :  { %v1256_v51 = vadd.f32 %v1255_v50, %v1250_v49  ;;  %v1259_v63 = vmul.f32 0.2, %v1250_v49 }
 0x49b   :  { %v1257_v53 = vmul.f32 0.1, %v1256_v51  ;;  %v1260_v10 = vsub.f32 %v1250_v49, %v1259_v63 }
 0x49d   :  { %v1258_v55 = vadd.f32 %v1257_v53, %v1210_v39  ;;  %v1274_v9 = vadd.f32 %v1260_v10, %v2805_v25 }
 0x49f   :  { %v1264_v58 = vsub.f32 %v1258_v55, %v1263_v56 }
 0x4a1   :  { %vm2970_vm0 = vcmp.gt.f32.partialorder %v1264_v58, 0.0 }
 0x4a2   :  { %2012 = vmatmul.msk.f32.vlgmr.msrb.gmra.mxu1 %vm2970_vm0, %v2214_v20  ;;  %v2009_v24 = vsel %vm2970_vm0, 1.0, %v2213_v19 }
 0x4a3   :  { %v1268_v57 = vsub.f32 1.0, %v2009_v24  ;;  %v1312_v0 = vmul.f32 0.0025714287, %v2009_v24  ;;  %v1270_v29 = vmul.f32 0.0, %v2009_v24 }
 0x4a5   :  { %v1269_v1 = vmul.f32 %v1268_v57, %v1258_v55  ;;  %v1313_v22 = vadd.f32 %v1312_v0, %v1263_v56 }
 0x4a7   :  { %v1271_v11 = vadd.f32 %v1270_v29, %v1269_v1  ;;  %v1322_v36 = vsub.f32 1.0, %v1313_v22 }
 0x4a9   :  { %v1316_v23 = vsub.f32 0.0, %v1271_v11  ;;  %v1323_v59 = vmul.f32 1.4285714e-06, %v1322_v36 }
 0x4aa   :  { %2023 = vmatmul.msk.f32.vlgmr.msra.gmra.mxu1 %vm2504_vm1, %v2214_v20 }
 0x4ab   :  { %v1324_v5 = vadd.f32 %v1323_v59, %v1313_v22 }
 0x4b2   :  { %2024 = vmatmul.msk.f32.gmra.mxu1 %vm2567_vm2, %v2214_v20 }
 0x4ba   :  { %2025 = vmatmul.msk.f32.gmra.mxu1 %vm2596_vm3, %v2214_v20 }
 0x4bd   :  { %v1308_v12 = vpop.f32.mrf.mxu0 }
 0x4be   :  { %v1311_v13 = vadd.f32 %v1308_v12, %v1274_v9 }
 0x4c0   :  { %v1317_v7 = vadd.f32 %v1316_v23, %v1311_v13  ;;  %v1320_v44 = vmul.f32 0.2, %v1311_v13 }
 0x4c2   :  { %v1318_v14 = vmul.f32 0.1, %v1317_v7  ;;  %2026 = vmatmul.msk.f32.gmra.mxu1 %vm2631_vm4, %v2214_v20  ;;  %v1321_v54 = vsub.f32 %v1311_v13, %v1320_v44 }
 0x4c4   :  { %v1319_v6 = vadd.f32 %v1318_v14, %v1271_v11  ;;  %v1335_v47 = vadd.f32 %v1321_v54, %v2807_v26 }
 0x4c6   :  { %v1325_v15 = vsub.f32 %v1319_v6, %v1324_v5 }
 0x4c8   :  { %vm2993_vm1 = vcmp.gt.f32.partialorder %v1325_v15, 0.0 }
 0x4c9   :  { %2014 = vmatmul.msk.f32.vlgmr.msrb.gmra.mxu2 %vm2993_vm1, %v2214_v20  ;;  %v2011_v37 = vsel %vm2993_vm1, 1.0, %v2213_v19 }
 0x4ca   :  { %2027 = vmatmul.msk.f32.gmra.mxu1 %vm2675_vm5, %v2214_v20  ;;  %v1329_v62 = vsub.f32 1.0, %v2011_v37  ;;  %v1373_v35 = vmul.f32 0.0025714287, %v2011_v37  ;;  %v1331_v25 = vmul.f32 0.0, %v2011_v37 }
 0x4cc   :  { %v1330_v18 = vmul.f32 %v1329_v62, %v1319_v6  ;;  %v1374_v32 = vadd.f32 %v1373_v35, %v1324_v5 }
 0x4ce   :  { %v1332_v43 = vadd.f32 %v1331_v25, %v1330_v18  ;;  %v1383_v42 = vsub.f32 1.0, %v1374_v32 }
 0x4d0   :  { %v1377_v3 = vsub.f32 0.0, %v1332_v43  ;;  %v1384_v17 = vmul.f32 1.4285714e-06, %v1383_v42 }
 0x4d2   :  { %2028 = vmatmul.msk.f32.gmra.mxu1 %vm2742_vm6, %v2214_v20  ;;  %v1385_v38 = vadd.f32 %v1384_v17, %v1374_v32 }
 0x4da   :  { %2029 = vmatmul.msk.f32.gmra.mxu1 %vm2773_vm7, %v2214_v20 }
 0x4e2   :  { %2030 = vmatmul.msk.f32.gmra.mxu1 %vm2818_vm8, %v2214_v20 }
 0x4ea   :  { %2031 = vmatmul.msk.f32.gmra.mxu1 %vm2845_vm9, %v2214_v20 }
 0x4f2   :  { %2032 = vmatmul.msk.f32.gmra.mxu1 %vm2872_vm10, %v2214_v20 }
 0x4fa   :  { %2033 = vmatmul.msk.f32.gmra.mxu1 %vm2899_vm11, %v2214_v20 }
 0x502   :  { %2034 = vmatmul.msk.f32.gmra.mxu1 %vm2926_vm12, %v2214_v20 }
 0x50a   :  { %2035 = vmatmul.msk.f32.gmra.mxu1 %vm2937_vm13, %v2214_v20 }
 0x512   :  { %2036 = vmatmul.msk.f32.gmra.mxu1 %vm2948_vm14, %v2214_v20 }
 0x51a   :  { %2037 = vmatmul.msk.f32.gmra.mxu1 %vm2959_vm15, %v2214_v20 }
 0x51f   :  { %v1369_v30 = vpop.f32.mrf.mxu1 }
 0x520   :  { %v1372_v16 = vadd.f32 %v1369_v30, %v1335_v47 }
 0x522   :  { %v1378_v41 = vadd.f32 %v1377_v3, %v1372_v16  ;;  %2038 = vmatmul.msk.f32.gmra.mxu1 %vm2970_vm0, %v2214_v20  ;;  %v1381_v29 = vmul.f32 0.2, %v1372_v16 }
 0x524   :  { %v1379_v2 = vmul.f32 0.1, %v1378_v41  ;;  %v1382_v36 = vsub.f32 %v1372_v16, %v1381_v29 }
 0x526   :  { %v1380_v8 = vadd.f32 %v1379_v2, %v1332_v43  ;;  %v1396_v23 = vadd.f32 %v1382_v36, %v2809_v27 }
 0x527   :  { %v1621_v40 = vpop.f32.mrf.mxu1 }
 0x528   :  { %v1622_v60 = vadd.f32 %v3040_v34, %v1621_v40  ;;  %v1386_v21 = vsub.f32 %v1380_v8, %v1385_v38 }
 0x52a   :  { %v1704_v26 = vmul.f32 0.22314355, %v1622_v60  ;;  %2039 = vmatmul.msk.f32.gmra.mxu1 %vm2993_vm1, %v2214_v20  ;;  %vm1387_vm2 = vcmp.gt.f32.partialorder %v1386_v21, 0.0 }
 0x52b   :  { %v2013_v33 = vsel %vm1387_vm2, 1.0, %v2213_v19  ;;  %2016 = vmatmul.msk.f32.vlgmr.msra.gmra.mxu3 %vm1387_vm2, %v2214_v20 }
 0x52c   :  { %1706 = vst [vmem:[#allocation11] sm:$0xff] %v1704_v26  ;;  %v1390_v39 = vsub.f32 1.0, %v2013_v33  ;;  %v1434_v45 = vmul.f32 0.0025714287, %v2013_v33  ;;  %v1392_v48 = vmul.f32 0.0, %v2013_v33 }
 0x52e   :  { %v1391_v46 = vmul.f32 %v1390_v39, %v1380_v8  ;;  %v1435_v49 = vadd.f32 %v1434_v45, %v1385_v38 }
 0x52f   :  { %v1624_v50 = vpop.f32.mrf.mxu1 }
 0x530   :  { %v1625_v51 = vadd.f32 %v3040_v34, %v1624_v50  ;;  %v1393_v52 = vadd.f32 %v1392_v48, %v1391_v46  ;;  %v1444_v7 = vsub.f32 1.0, %v1435_v49 }
 0x532   :  { %v1709_v53 = vsub.f32 %v1625_v51, %v1704_v26  ;;  %2040 = vmatmul.msk.f32.gmra.mxu1 %vm1387_vm2, %v2214_v20  ;;  %v1438_v5 = vsub.f32 0.0, %v1393_v52  ;;  %v1445_v37 = vmul.f32 1.4285714e-06, %v1444_v7 }
 0x534   :  { %v1710_v55 = vmul.f32 0.22314355, %v1709_v53  ;;  %v1446_v54 = vadd.f32 %v1445_v37, %v1435_v49 }
 0x536   :  { %v1711_v56 = vadd.f32 %v1710_v55, %v1704_v26 }
 0x537   :  { %v1627_v58 = vpop.f32.mrf.mxu1 }
 0x538   :  { %1713 = vst [vmem:[#allocation11 + $0x8] sm:$0xff] %v1711_v56  ;;  %v1628_v61 = vadd.f32 %v3040_v34, %v1627_v58 }
 0x53a   :  { %v1716_v24 = vsub.f32 %v1628_v61, %v1711_v56 }
 0x53c   :  { %v1717_v57 = vmul.f32 0.22314355, %v1716_v24 }
 0x53e   :  { %v1718_v63 = vadd.f32 %v1717_v57, %v1711_v56 }
 0x53f   :  { %v1630_v0 = vpop.f32.mrf.mxu1 }
 0x540   :  { %1720 = vst [vmem:[#allocation11 + $0x10] sm:$0xff] %v1718_v63  ;;  %v1631_v1 = vadd.f32 %v3040_v34, %v1630_v0 }
 0x542   :  { %v1723_v22 = vsub.f32 %v1631_v1, %v1718_v63 }
 0x544   :  { %v1724_v10 = vmul.f32 0.22314355, %v1723_v22 }
 0x546   :  { %v1725_v11 = vadd.f32 %v1724_v10, %v1718_v63 }
 0x547   :  { %v1633_v9 = vpop.f32.mrf.mxu1 }
 0x548   :  { %1727 = vst [vmem:[#allocation11 + $0x18] sm:$0xff] %v1725_v11  ;;  %v1634_v12 = vadd.f32 %v3040_v34, %v1633_v9 }
 0x54a   :  { %v1730_v13 = vsub.f32 %v1634_v12, %v1725_v11 }
 0x54c   :  { %v1430_v59 = vpop.f32.mrf.mxu2  ;;  %v1731_v14 = vmul.f32 0.22314355, %v1730_v13 }
 0x54d   :  { %v3054_v6 = vadd.f32 %v1430_v59, %v1396_v23 }
 0x54e   :  { %v1732_v15 = vadd.f32 %v1731_v14, %v1725_v11 }
 0x54f   :  { %v1439_v4 = vadd.f32 %v1438_v5, %v3054_v6  ;;  %v1636_v62 = vpop.f32.mrf.mxu1 }
 0x550   :  { %1734 = vst [vmem:[#allocation11 + $0x20] sm:$0xff] %v1732_v15  ;;  %v1637_v35 = vadd.f32 %v3040_v34, %v1636_v62 }
 0x551   :  { %v1440_v44 = vmul.f32 0.1, %v1439_v4 }
 0x552   :  { %v1737_v18 = vsub.f32 %v1637_v35, %v1732_v15 }
 0x553   :  { %v1441_v25 = vadd.f32 %v1440_v44, %v1393_v52 }
 0x554   :  { %v1738_v32 = vmul.f32 0.22314355, %v1737_v18 }
 0x555   :  { %v1447_v27 = vsub.f32 %v1441_v25, %v1446_v54 }
 0x556   :  { %v1739_v43 = vadd.f32 %v1738_v32, %v1732_v15 }
 0x557   :  { %vm1448_vm3 = vcmp.gt.f32.partialorder %v1447_v27, 0.0  ;;  %v1639_v42 = vpop.f32.mrf.mxu1  ;;  %v1442_v27 = vmul.f32 0.2, %v3054_v6 }
 0x558   :  { %v2015_v47 = vsel %vm1448_vm3, 1.0, %v2213_v19  ;;  %2018 = vmatmul.msk.f32.vlgmr.msrb.gmra.mxu0 %vm1448_vm3, %v2214_v20  ;;  %2041 = vmatmul.msk.f32.gmra.mxu1 %vm1448_vm3, %v2214_v20  ;;  %1741 = vst [vmem:[#allocation11 + $0x28] sm:$0xff] %v1739_v43  ;;  %v1640_v16 = vadd.f32 %v3040_v34, %v1639_v42 }
 0x559   :  { %v1451_v30 = vsub.f32 1.0, %v2015_v47  ;;  %v1495_v3 = vmul.f32 0.0025714287, %v2015_v47  ;;  %v1453_v17 = vmul.f32 0.0, %v2015_v47 }
 0x55a   :  { %v1744_v2 = vsub.f32 %v1640_v16, %v1739_v43 }
 0x55b   :  { %v1452_v41 = vmul.f32 %v1451_v30, %v1441_v25  ;;  %v3062_v8 = vadd.f32 %v1495_v3, %v1446_v54  ;;  %v1443_v30 = vsub.f32 %v3054_v6, %v1442_v27 }
 0x55c   :  { %v1745_v38 = vmul.f32 0.22314355, %v1744_v2 }
 0x55d   :  { %v3064_v40 = vadd.f32 %v1453_v17, %v1452_v41  ;;  %v1457_v41 = vadd.f32 %v1443_v30, %v2811_v28  ;;  %v1505_v17 = vsub.f32 1.0, %v3062_v8 }
 0x55e   :  { %v1746_v60 = vadd.f32 %v1745_v38, %v1739_v43 }
 0x55f   :  { %v1642_v21 = vpop.f32.mrf.mxu1 }
 0x560   :  { %1748 = vst [vmem:[#allocation11 + $0x30] sm:$0xff] %v1746_v60  ;;  %v1643_v26 = vadd.f32 %v3040_v34, %v1642_v21  ;;  %v1499_v21 = vsub.f32 0.0, %v3064_v40 }
 0x562   :  { %v1751_v33 = vsub.f32 %v1643_v26, %v1746_v60 }
 0x564   :  { %v1752_v39 = vmul.f32 0.22314355, %v1751_v33 }
 0x566   :  { %v1753_v45 = vadd.f32 %v1752_v39, %v1746_v60 }
 0x567   :  { %v1645_v46 = vpop.f32.mrf.mxu1 }
 0x568   :  { %1755 = vst [vmem:[#allocation11 + $0x38] sm:$0xff] %v1753_v45  ;;  %v1646_v48 = vadd.f32 %v3040_v34, %v1645_v46 }
 0x56a   :  { %v1758_v49 = vsub.f32 %v1646_v48, %v1753_v45 }
 0x56c   :  { %v1759_v50 = vmul.f32 0.22314355, %v1758_v49 }
 0x56e   :  { %v1760_v51 = vadd.f32 %v1759_v50, %v1753_v45  ;;  %v1506_v45 = vmul.f32 1.4285714e-06, %v1505_v17 }
 0x56f   :  { %v1648_v52 = vpop.f32.mrf.mxu1 }
 0x570   :  { %1762 = vst [vmem:[#allocation11 + $0x40] sm:$0xff] %v1760_v51  ;;  %v1649_v53 = vadd.f32 %v3040_v34, %v1648_v52  ;;  %v1507_v28 = vadd.f32 %v1506_v45, %v3062_v8 }
 0x572   :  { %v1765_v55 = vsub.f32 %v1649_v53, %v1760_v51 }
 0x574   :  { %v1766_v56 = vmul.f32 0.22314355, %v1765_v55 }
 0x576   :  { %v1767_v58 = vadd.f32 %v1766_v56, %v1760_v51 }
 0x577   :  { %v1651_v61 = vpop.f32.mrf.mxu1 }
 0x578   :  { %1769 = vst [vmem:[#allocation11 + $0x48] sm:$0xff] %v1767_v58  ;;  %v1652_v24 = vadd.f32 %v3040_v34, %v1651_v61 }
 0x57a   :  { %v1772_v57 = vsub.f32 %v1652_v24, %v1767_v58 }
 0x57c   :  { %v1773_v63 = vmul.f32 0.22314355, %v1772_v57 }
 0x57e   :  { %v1774_v0 = vadd.f32 %v1773_v63, %v1767_v58 }
 0x57f   :  { %v1654_v1 = vpop.f32.mrf.mxu1 }
 0x580   :  { %1776 = vst [vmem:[#allocation11 + $0x50] sm:$0xff] %v1774_v0  ;;  %v1655_v29 = vadd.f32 %v3040_v34, %v1654_v1 }
 0x582   :  { %v1779_v22 = vsub.f32 %v1655_v29, %v1774_v0 }
 0x584   :  { %v1780_v10 = vmul.f32 0.22314355, %v1779_v22 }
 0x586   :  { %v1781_v11 = vadd.f32 %v1780_v10, %v1774_v0 }
 0x587   :  { %v1657_v36 = vpop.f32.mrf.mxu1 }
 0x588   :  { %1783 = vst [vmem:[#allocation11 + $0x58] sm:$0xff] %v1781_v11  ;;  %v1658_v9 = vadd.f32 %v3040_v34, %v1657_v36 }
 0x58a   :  { %v1786_v12 = vsub.f32 %v1658_v9, %v1781_v11 }
 0x58c   :  { %v1787_v13 = vmul.f32 0.22314355, %v1786_v12 }
 0x58e   :  { %v1788_v23 = vadd.f32 %v1787_v13, %v1781_v11 }
 0x58f   :  { %v1660_v7 = vpop.f32.mrf.mxu1 }
 0x590   :  { %1790 = vst [vmem:[#allocation11 + $0x60] sm:$0xff] %v1788_v23  ;;  %v1661_v59 = vadd.f32 %v3040_v34, %v1660_v7 }
 0x592   :  { %v1793_v14 = vsub.f32 %v1661_v59, %v1788_v23 }
 0x594   :  { %v1794_v5 = vmul.f32 0.22314355, %v1793_v14 }
 0x596   :  { %v1795_v15 = vadd.f32 %v1794_v5, %v1788_v23 }
 0x597   :  { %v1663_v4 = vpop.f32.mrf.mxu1 }
 0x598   :  { %1797 = vst [vmem:[#allocation11 + $0x68] sm:$0xff] %v1795_v15  ;;  %v1664_v37 = vadd.f32 %v3040_v34, %v1663_v4 }
 0x59a   :  { %v1800_v62 = vsub.f32 %v1664_v37, %v1795_v15 }
 0x59c   :  { %v1801_v44 = vmul.f32 0.22314355, %v1800_v62 }
 0x59e   :  { %v1802_v35 = vadd.f32 %v1801_v44, %v1795_v15 }
 0x59f   :  { %v1666_v18 = vpop.f32.mrf.mxu1 }
 0x5a0   :  { %1804 = vst [vmem:[#allocation11 + $0x70] sm:$0xff] %v1802_v35  ;;  %v1667_v25 = vadd.f32 %v3040_v34, %v1666_v18 }
 0x5a2   :  { %v1807_v54 = vsub.f32 %v1667_v25, %v1802_v35 }
 0x5a4   :  { %v1808_v32 = vmul.f32 0.22314355, %v1807_v54 }
 0x5a6   :  { %v1809_v43 = vadd.f32 %v1808_v32, %v1802_v35 }
 0x5a7   :  { %v1669_v47 = vpop.f32.mrf.mxu1 }
 0x5a8   :  { %1811 = vst [vmem:[#allocation11 + $0x78] sm:$0xff] %v1809_v43  ;;  %v1670_v42 = vadd.f32 %v3040_v34, %v1669_v47 }
 0x5aa   :  { %v1814_v16 = vsub.f32 %v1670_v42, %v1809_v43 }
 0x5ac   :  { %v1815_v3 = vmul.f32 0.22314355, %v1814_v16 }
 0x5ae   :  { %v1816_v2 = vadd.f32 %v1815_v3, %v1809_v43  ;;  %v1491_v38 = vpop.f32.mrf.mxu3 }
 0x5af   :  { %v1494_v60 = vadd.f32 %v1491_v38, %v1457_v41  ;;  %v1672_v26 = vpop.f32.mrf.mxu1 }
 0x5b0   :  { %1818 = vst [vmem:[#allocation11 + $0x80] sm:$0xff] %v1816_v2  ;;  %v1673_v33 = vadd.f32 %v3040_v34, %v1672_v26 }
 0x5b1   :  { %v1500_v39 = vadd.f32 %v1499_v21, %v1494_v60 }
 0x5b2   :  { %v1821_v46 = vsub.f32 %v1673_v33, %v1816_v2 }
 0x5b3   :  { %v1501_v48 = vmul.f32 0.1, %v1500_v39 }
 0x5b4   :  { %v1822_v6 = vmul.f32 0.22314355, %v1821_v46 }
 0x5b5   :  { %v1502_v49 = vadd.f32 %v1501_v48, %v3064_v40 }
 0x5b6   :  { %v1823_v50 = vadd.f32 %v1822_v6, %v1816_v2 }
 0x5b7   :  { %v1508_v51 = vsub.f32 %v1502_v49, %v1507_v28 }
 0x5b8   :  { %1825 = vst [vmem:[#allocation11 + $0x88] sm:$0xff] %v1823_v50 }
 0x5b9   :  { %vm1509_vm4 = vcmp.gt.f32.partialorder %v1508_v51, 0.0 }
 0x5ba   :  { %v2017_v52 = vsel %vm1509_vm4, 1.0, %v2213_v19  ;;  %2042 = vmatmul.msk.f32.gmra.mxu1 %vm1509_vm4, %v2214_v20  ;;  %v1503_v19 = vmul.f32 0.2, %v1494_v60 }
 0x5bb   :  { %v1512_v53 = vsub.f32 1.0, %v2017_v52  ;;  %v1556_v55 = vmul.f32 0.0025714287, %v2017_v52  ;;  %1560 = vst [vmem:[#allocation13] sm:$0xff] %v2017_v52  ;;  %v1514_v58 = vmul.f32 0.0, %v2017_v52 }
 0x5bc   :  { %1864 = dma.vmem_to_hbm [thread:$0]  %s1860_s20, 128, %s1862_s22, [#allocation14]   ;;  %v1504_v20 = vsub.f32 %v1494_v60, %v1503_v19 }
 0x5bd   :  { %v1513_v56 = vmul.f32 %v1512_v53, %v1502_v49  ;;  %v1557_v61 = vadd.f32 %v1556_v55, %v1507_v28 }
 0x5be   :  { %v1518_v8 = vadd.f32 %v1504_v20, %v2816_v31 }
 0x5bf   :  { %v1515_v24 = vadd.f32 %v1514_v58, %v1513_v56  ;;  %1563 = vst [vmem:[#allocation18] sm:$0xff] %v1557_v61 }
 0x5c1   :  { %1561 = vst [vmem:[#allocation15] sm:$0xff] %v1515_v24 }
 0x5c2   :  { %1875 = dma.vmem_to_hbm [thread:$0]  %s1871_s24, 128, %s1873_s27, [#allocation14]  }
 0x5d5   :  { %v1552_v40 = vpop.f32.mrf.mxu0  ;;  %v1675_v57 = vpop.f32.mrf.mxu1 }
 0x5d6   :  { %v1555_v63 = vadd.f32 %v1552_v40, %v1518_v8  ;;  %v1676_v0 = vadd.f32 %v3040_v34, %v1675_v57 }
 0x5d8   :  { %1562 = vst [vmem:[#allocation16] sm:$0xff] %v1555_v63  ;;  %v1828_v1 = vsub.f32 %v1676_v0, %v1823_v50 }
 0x5d9   :  { %1886 = dma.vmem_to_hbm [thread:$0]  %s1882_s2, 128, %s1884_s6, [#allocation17]  }
 0x5da   :  { %v1829_v29 = vmul.f32 0.22314355, %v1828_v1  ;;  %1897 = dma.vmem_to_hbm [thread:$0]  %s1893_s30, 128, %s1895_s12, [#allocation17]  }
 0x5dc   :  { %v1830_v31 = vadd.f32 %v1829_v29, %v1823_v50 }
 0x5de   :  { %1832 = vst [vmem:[#allocation11 + $0x90] sm:$0xff] %v1830_v31 }
 0x637   :  { %v1678_v22 = vpop.f32.mrf.mxu1 }
 0x638   :  { %v1679_v10 = vadd.f32 %v3040_v34, %v1678_v22 }
 0x63a   :  { %v1835_v11 = vsub.f32 %v1679_v10, %v1830_v31 }
 0x63c   :  { %v1836_v36 = vmul.f32 0.22314355, %v1835_v11 }
 0x63e   :  { %v1837_v9 = vadd.f32 %v1836_v36, %v1830_v31 }
 0x640   :  { %1839 = vst [vmem:[#allocation11 + $0x98] sm:$0xff] %v1837_v9 }
 0x641   :  { %1853 = dma.vmem_to_hbm [thread:$0]  %s1846_s8, 2560, %s1848_s14, [#allocation12], %s2220_s15, %s2220_s15, %s2221_s16  }
 0x642   :  { %2206 = dma.done.wait [#allocation12], 2560  }
 0x643   :  { %2207 = vsyncadd [#allocation12], 4294964736 }
 0x644   :  { %2208 = dma.done.wait [#allocation14], 256  }
 0x645   :  { %2209 = vsyncadd [#allocation14], 4294967040 }
 0x646   :  { %2210 = dma.done.wait [#allocation17], 256  }
 0x647   :  { %2211 = vsyncadd [#allocation17], 4294967040 }
 0x648   :  { %1918 = vsyncpa [#allocation12], 1 }
 0x649   :  { %1919 = vsyncpa [#allocation14], 1 }
 0x64a   :  { %1920 = vsyncpa [#allocation17], 1 }
 0x64b   :  { %1921 = vsyncmov [#allocation10] }
 0x64e   :  { %s1922_s17 = vpop.sfrf %1921 }
 0x64f   :  { %p2019_p0 = scmp.ne.s32.totalorder %s1922_s17, 0 }
 0x651   :  { %1926 = shalt.err (%p2019_p0)  }
 0x652   :  { %1928 = vsyncmov [#allocation10 + $0x1] }
 0x655   :  { %s1929_s5 = vpop.sfrf %1928 }
 0x656   :  { %p2020_p1 = scmp.ne.s32.totalorder %s1929_s5, 0 }
 0x658   :  { %1933 = shalt.err (%p2020_p1)  }
 0x659   :  { %1935 = vsyncmov [#allocation10 + $0x2] }
 0x65c   :  { %s1936_s18 = vpop.sfrf %1935 }
 0x65d   :  { %p2021_p2 = scmp.ne.s32.totalorder %s1936_s18, 0 }
 0x65f   :  { %1940 = shalt.err (%p2021_p2)  }
 0x660   :  { %1942 = vsyncmov [#allocation10 + $0x3] }
 0x663   :  { %s1943_s19 = vpop.sfrf %1942 }
 0x664   :  { %p2022_p3 = scmp.ne.s32.totalorder %s1943_s19, 0 }
 0x666   :  { %1947 = shalt.err (%p2022_p3)  }

</bundles_post_ra>
